<compile_context>
chip_gen: v6e
topology: v6e:2x2x1
jax: 0.10.0
libtpu: 0.0.40
codegen_flags: <defaults>
</compile_context>

<pallas_src>
import jax
import jax.numpy as jnp
from jax.experimental import pallas as pl
from jax.experimental.pallas import tpu as pltpu

LN_EPS = 1e-5  # torch.nn.LayerNorm default


def _round_up(a, b):
    return (a + b - 1) // b * b


def _lane_pad(v):
    # VMEM native tiles are (8, 128): a minor dim < 128 still occupies 128 lanes.
    return _round_up(max(int(v), 1), 128)


def _make_qkv_kernel(c_x, num_head, layout, precision):
    d = c_x // num_head

    def kernel(x_ref, w_ref, b_ref, *out_refs):
        # Non-affine LayerNorm over channels; gamma/beta are folded into w/b.
        x = x_ref[...].astype(jnp.float32)
        mean = jnp.mean(x, axis=-1, keepdims=True)
        cen = x - mean
        var = jnp.mean(cen * cen, axis=-1, keepdims=True)
        xn = (cen * jax.lax.rsqrt(var + LN_EPS)).astype(w_ref.dtype)

        # Single fused Q|K|V projection on the MXU with f32 accumulation.
        acc = jnp.dot(xn, w_ref[...], preferred_element_type=jnp.float32,
                      precision=precision)
        acc = acc + b_ref[...]

        if layout == "fused":
            # One lane-dense (tile, 3*c_x) store.
            out_refs[0][...] = acc.astype(out_refs[0].dtype)
        elif layout == "split":
            # Three (tile, c_x) stores; slicing happens in vregs, not HBM.
            for t, r in enumerate(out_refs):
                r[...] = acc[:, t * c_x:(t + 1) * c_x].astype(r.dtype)
        else:  # "heads": emit (1, h, tile, d) directly.  The head split is done
            # with static lane slices in VMEM -> no extra HBM relayout pass.
            for t, r in enumerate(out_refs):
                base = t * c_x
                for hh in range(num_head):
                    lo = base + hh * d
                    r[0, hh, :, :] = acc[:, lo:lo + d].astype(r.dtype)

    return kernel


def self_attention_qkv(x, mask, params, *, num_head, layout="heads",
                       tile_tokens=4096, compute_dtype=jnp.bfloat16,
                       out_dtype=None, precision=None,
                       vmem_budget_bytes=20 * 1024 * 1024):
    """Pallas implementation of DistributeSelfAttention.forward.

    Args:
      x: (num_tokens, c_x) float32 or bfloat16 (bf16 input halves the read stream).
      mask: unused (the reference forward returns before touching it).
      params: dict with 'ln_gamma','ln_beta' (1,c_x), 'wq','wk','wv' (c_x,c_x)
              stored pre-transposed (in, out), 'bq' (1,c_x).
      num_head: number of heads (c_x % num_head == 0).
      layout: "heads" -> module-parity (1,h,n,d) q/k/v;
              "split" -> three lane-dense (n,c_x) slabs;
              "fused" -> one (n,3*c_x) slab (best on v5e / for downstream Pallas).
      tile_tokens: requested token tile (clamped by VMEM budget / balanced).
      compute_dtype: MXU operand dtype (bf16 recommended on v6e/v7x).
      out_dtype: output dtype; default = x.dtype. bf16 halves HBM writeback.
      precision: optional lax.Precision for the matmul (e.g. HIGHEST for
                 bit-parity with LayerNorm-then-matmul in f32).
      vmem_budget_bytes: per-step VMEM budget for tile picking (keep <=~24MiB
                 on v7x; may be raised to 32-48MiB on v5e/v6e).
    """
    del mask  # dead in the reference forward (early return)
    n, c_x = x.shape
    assert c_x % num_head == 0
    d = c_x // num_head
    out_dtype = x.dtype if out_dtype is None else out_dtype

    # ---- fold LayerNorm affine into the fused QKV weight/bias (in f32). ----
    gamma = params["ln_gamma"].reshape(c_x).astype(jnp.float32)
    beta = params["ln_beta"].reshape(1, c_x).astype(jnp.float32)
    w_fused = jnp.concatenate(
        [params["wq"], params["wk"], params["wv"]], axis=1).astype(jnp.float32)
    bq = params["bq"].reshape(1, c_x).astype(jnp.float32)
    b_fused = jnp.concatenate(
        [bq, jnp.zeros_like(bq), jnp.zeros_like(bq)], axis=1)
    w_folded = (gamma[:, None] * w_fused).astype(compute_dtype)   # (c_x, 3c)
    b_folded = (beta @ w_fused + b_fused).astype(jnp.float32)     # (1, 3c)

    in_it = jnp.dtype(x.dtype).itemsize
    out_it = jnp.dtype(out_dtype).itemsize
    w_it = jnp.dtype(compute_dtype).itemsize

    def step_bytes(t):
        # Double-buffered x tile + double-buffered output tiles; weights/bias
        # charged once (constant index_map -> not re-fetched each step).
        # Minor dims < 128 are lane-padded in VMEM, so charge the padded size.
        xin = 2 * t * _lane_pad(c_x) * in_it
        if layout == "fused":
            out = 2 * t * _lane_pad(3 * c_x) * out_it
        elif layout == "split":
            out = 2 * 3 * t * _lane_pad(c_x) * out_it
        else:  # heads: per head a (t, d) slab, lane-padded
            out = 2 * 3 * num_head * t * _lane_pad(d) * out_it
        wgt = c_x * _lane_pad(3 * c_x) * w_it
        bias = 8 * _lane_pad(3 * c_x) * 4
        return xin + out + wgt + bias

    # ---- pick a token tile: as large as fits, >=2 balanced grid steps. ----
    tile = max(16, min(_round_up(tile_tokens, 16), _round_up(n, 16)))
    while tile > 16 and step_bytes(tile) > vmem_budget_bytes:
        tile = max(16, _round_up(tile // 2, 16))
    steps = pl.cdiv(n, tile)
    if n >= 32:
        steps = max(2, steps)        # keep both v7x TensorCores busy
    tile = max(16, _round_up(pl.cdiv(n, steps), 16))  # balance -> minimal pad
    grid = (pl.cdiv(n, tile),)       # last block may be partial (masked writes)

    x_spec = pl.BlockSpec((tile, c_x), lambda i: (i, 0))
    w_spec = pl.BlockSpec((c_x, 3 * c_x), lambda i: (0, 0))
    b_spec = pl.BlockSpec((1, 3 * c_x), lambda i: (0, 0))

    if layout == "fused":
        out_shape = (jax.ShapeDtypeStruct((n, 3 * c_x), out_dtype),)
        out_specs = [pl.BlockSpec((tile, 3 * c_x), lambda i: (i, 0))]
    elif layout == "split":
        out_shape = tuple(jax.ShapeDtypeStruct((n, c_x), out_dtype)
                          for _ in range(3))
        out_specs = [pl.BlockSpec((tile, c_x), lambda i: (i, 0))
                     for _ in range(3)]
    elif layout == "heads":
        out_shape = tuple(jax.ShapeDtypeStruct((1, num_head, n, d), out_dtype)
                          for _ in range(3))
        out_specs = [pl.BlockSpec((1, num_head, tile, d),
                                  lambda i: (0, 0, i, 0))
                     for _ in range(3)]
    else:
        raise ValueError(f"unknown layout: {layout}")

    vmem_limit = int(min(64 * 1024 * 1024,
                         step_bytes(tile) + (4 << 20)))

    kernel = _make_qkv_kernel(c_x, num_head, layout, precision)
    outs = pl.pallas_call(
        kernel,
        out_shape=out_shape,
        grid_spec=pltpu.PrefetchScalarGridSpec(
            num_scalar_prefetch=0,
            grid=grid,
            in_specs=[x_spec, w_spec, b_spec],
            out_specs=out_specs,
        ),
        compiler_params=pltpu.CompilerParams(
            dimension_semantics=("parallel",),
            vmem_limit_bytes=vmem_limit),
    )(x, w_folded, b_folded)

    if layout == "fused":
        return outs[0]
    return outs


def reference_qkv(x, params, num_head):
    """Plain-JAX reference mirroring the PyTorch forward."""
    n, c_x = x.shape
    d = c_x // num_head
    xf = x.astype(jnp.float32)
    mean = jnp.mean(xf, axis=-1, keepdims=True)
    var = jnp.mean((xf - mean) ** 2, axis=-1, keepdims=True)
    xn = (xf - mean) / jnp.sqrt(var + LN_EPS)
    xn = xn * params["ln_gamma"] + params["ln_beta"]
    hp = jax.lax.Precision.HIGHEST
    q = jnp.dot(xn, params["wq"], precision=hp) + params["bq"]
    k = jnp.dot(xn, params["wk"], precision=hp)
    v = jnp.dot(xn, params["wv"], precision=hp)
    sh = lambda t: jnp.transpose(t.reshape(n, num_head, d), (1, 0, 2))[None]
    return sh(q), sh(k), sh(v)


if __name__ == "__main__":
    # Module-consistent small shapes: c_x=64, num_head=8 (qkv_dim=8), 200 tokens
    # (exercises the balanced 2-step grid with a masked partial last block).
    c_x, num_head, n = 64, 8, 200
    d = c_x // num_head
    key = jax.random.PRNGKey(0)
    kx, kq, kbk, kk, kv, kg, kbt = jax.random.split(key, 7)

    x = jax.random.normal(kx, (n, c_x), dtype=jnp.float32)
    mask = jnp.ones((n,), dtype=jnp.float32)  # unused by the forward

    scale = 1.0 / jnp.sqrt(jnp.float32(c_x))
    params = {
        "ln_gamma": 1.0 + 0.1 * jax.random.normal(kg, (1, c_x), jnp.float32),
        "ln_beta": 0.1 * jax.random.normal(kbt, (1, c_x), jnp.float32),
        "wq": scale * jax.random.normal(kq, (c_x, c_x), jnp.float32),
        "bq": 0.1 * jax.random.normal(kbk, (1, c_x), jnp.float32),
        "wk": scale * jax.random.normal(kk, (c_x, c_x), jnp.float32),
        "wv": scale * jax.random.normal(kv, (c_x, c_x), jnp.float32),
    }

    qr, kr, vr = reference_qkv(x, params, num_head)

    # 1) f32 path, module-parity (1,h,n,d) layout, head split fused in-kernel.
    q, k, v = self_attention_qkv(x, mask, params, num_head=num_head,
                                 compute_dtype=jnp.float32,
                                 out_dtype=jnp.float32)
    jax.block_until_ready((q, k, v))
    assert q.shape == (1, num_head, n, d)
    for got, ref in ((q, qr), (k, kr), (v, vr)):
        assert float(jnp.max(jnp.abs(got - ref))) < 1e-4

    # 2) bf16 fast path: bf16 MXU operands AND bf16 HBM writeback, 2 grid steps.
    qb, kb2, vb = self_attention_qkv(x, mask, params, num_head=num_head,
                                     tile_tokens=128,
                                     compute_dtype=jnp.bfloat16,
                                     out_dtype=jnp.bfloat16)
    jax.block_until_ready((qb, kb2, vb))
    for got, ref in ((qb, qr), (kb2, kr), (vb, vr)):
        assert float(jnp.max(jnp.abs(got.astype(jnp.float32) - ref))) < 1e-1

    # 3) lane-dense "split" layout: three (n, c_x) slabs, no wrapper-side slices.
    qf, kf, vf = self_attention_qkv(x, mask, params, num_head=num_head,
                                    compute_dtype=jnp.float32,
                                    out_dtype=jnp.float32, layout="split")
    jax.block_until_ready((qf, kf, vf))
    assert qf.shape == (n, c_x)
    assert float(jnp.max(jnp.abs(
        jnp.transpose(qf.reshape(n, num_head, d), (1, 0, 2))[None] - qr))) < 1e-4

    # 4) fused (n, 3*c_x) slab (v5e-friendly, for downstream Pallas consumers).
    slab = self_attention_qkv(x, mask, params, num_head=num_head,
                              compute_dtype=jnp.float32,
                              out_dtype=jnp.float32, layout="fused")
    jax.block_until_ready(slab)
    assert slab.shape == (n, 3 * c_x)
    k_from_slab = jnp.transpose(
        slab[:, c_x:2 * c_x].reshape(n, num_head, d), (1, 0, 2))[None]
    assert float(jnp.max(jnp.abs(k_from_slab - kr))) < 1e-4

    print("KERNEL_OK")
</pallas_src>

<mosaic_0001>
module attributes {stable_mosaic.version = 11 : i64} {
  func.func @kernel(%arg0: i32, %arg1: memref<112x64xf32, #tpu.memory_space<vmem>>, %arg2: memref<64x192xf32, #tpu.memory_space<vmem>>, %arg3: memref<1x192xf32, #tpu.memory_space<vmem>>, %arg4: memref<1x8x112x8xf32, #tpu.memory_space<vmem>>, %arg5: memref<1x8x112x8xf32, #tpu.memory_space<vmem>>, %arg6: memref<1x8x112x8xf32, #tpu.memory_space<vmem>>) attributes {dimension_semantics = [#tpu.dimension_semantics<parallel>], iteration_bounds = array<i64: 2>, scalar_prefetch = 0 : i64, scratch_operands = 0 : i64, tpu.core_type = #tpu.core_type<tc>, window_params = [{transform_indices = @transform_0, window_bounds = array<i64: 112, 64>}, {pipeline_mode = #tpu.pipeline_mode<synchronous>, transform_indices = @transform_1, window_bounds = array<i64: 64, 192>}, {pipeline_mode = #tpu.pipeline_mode<synchronous>, transform_indices = @transform_2, window_bounds = array<i64: 1, 192>}, {transform_indices = @transform_3, window_bounds = array<i64: 1, 8, 112, 8>}, {transform_indices = @transform_4, window_bounds = array<i64: 1, 8, 112, 8>}, {transform_indices = @transform_5, window_bounds = array<i64: 1, 8, 112, 8>}]} {
    %c0 = arith.constant 0 : index
    %c0_0 = arith.constant 0 : index
    %0 = vector.load %arg1[%c0, %c0_0] : memref<112x64xf32, #tpu.memory_space<vmem>>, vector<112x64xf32>
    %cst = arith.constant dense<0.000000e+00> : vector<112xf32>
    %1 = vector.multi_reduction <add>, %0, %cst [1] : vector<112x64xf32> to vector<112xf32>
    %2 = vector.shape_cast %1 : vector<112xf32> to vector<112x1xf32>
    %cst_1 = arith.constant 6.400000e+01 : f32
    %3 = vector.broadcast %cst_1 : f32 to vector<112x1xf32>
    %4 = arith.divf %2, %3 : vector<112x1xf32>
    %5 = vector.broadcast %4 : vector<112x1xf32> to vector<112x64xf32>
    %6 = arith.subf %0, %5 : vector<112x64xf32>
    %7 = arith.mulf %6, %6 : vector<112x64xf32>
    %cst_2 = arith.constant dense<0.000000e+00> : vector<112xf32>
    %8 = vector.multi_reduction <add>, %7, %cst_2 [1] : vector<112x64xf32> to vector<112xf32>
    %9 = vector.shape_cast %8 : vector<112xf32> to vector<112x1xf32>
    %cst_3 = arith.constant 6.400000e+01 : f32
    %10 = vector.broadcast %cst_3 : f32 to vector<112x1xf32>
    %11 = arith.divf %9, %10 : vector<112x1xf32>
    %cst_4 = arith.constant 9.99999974E-6 : f32
    %12 = vector.broadcast %cst_4 : f32 to vector<112x1xf32>
    %13 = arith.addf %11, %12 : vector<112x1xf32>
    %14 = math.rsqrt %13 : vector<112x1xf32>
    %15 = vector.broadcast %14 : vector<112x1xf32> to vector<112x64xf32>
    %16 = arith.mulf %6, %15 : vector<112x64xf32>
    %c0_5 = arith.constant 0 : index
    %c0_6 = arith.constant 0 : index
    %17 = vector.load %arg2[%c0_5, %c0_6] : memref<64x192xf32, #tpu.memory_space<vmem>>, vector<64x192xf32>
    %cst_7 = arith.constant dense<0.000000e+00> : vector<112x192xf32>
    %18 = tpu.matmul %16, %17, %cst_7 {dimension_numbers = #tpu.dot_dimension_numbers<[1], [0], [0], [1], [0, 0, 1, 1], [], []>} : vector<112x64xf32>, vector<64x192xf32>, vector<112x192xf32> -> vector<112x192xf32>
    %c0_8 = arith.constant 0 : index
    %c0_9 = arith.constant 0 : index
    %19 = vector.load %arg3[%c0_8, %c0_9] : memref<1x192xf32, #tpu.memory_space<vmem>>, vector<1x192xf32>
    %20 = vector.broadcast %19 : vector<1x192xf32> to vector<112x192xf32>
    %21 = arith.addf %18, %20 : vector<112x192xf32>
    %22 = vector.extract_strided_slice %21 {offsets = [0, 0], sizes = [112, 8], strides = [1, 1]} : vector<112x192xf32> to vector<112x8xf32>
    %c0_10 = arith.constant 0 : index
    %c0_11 = arith.constant 0 : index
    %c0_12 = arith.constant 0 : index
    %c0_13 = arith.constant 0 : index
    %23 = vector.load %arg4[%c0_10, %c0_11, %c0_12, %c0_13] : memref<1x8x112x8xf32, #tpu.memory_space<vmem>>, vector<1x1x112x8xf32>
    %24 = vector.shape_cast %23 : vector<1x1x112x8xf32> to vector<112x8xf32>
    %25 = vector.shape_cast %22 : vector<112x8xf32> to vector<1x1x112x8xf32>
    tpu.vector_store %arg4[%c0_10, %c0_11, %c0_12, %c0_13], %25 {strides = array<i32>} : memref<1x8x112x8xf32, #tpu.memory_space<vmem>>, vector<1x1x112x8xf32>,
    %26 = vector.extract_strided_slice %21 {offsets = [0, 8], sizes = [112, 8], strides = [1, 1]} : vector<112x192xf32> to vector<112x8xf32>
    %c0_14 = arith.constant 0 : index
    %c1 = arith.constant 1 : index
    %c0_15 = arith.constant 0 : index
    %c0_16 = arith.constant 0 : index
    %27 = vector.load %arg4[%c0_14, %c1, %c0_15, %c0_16] : memref<1x8x112x8xf32, #tpu.memory_space<vmem>>, vector<1x1x112x8xf32>
    %28 = vector.shape_cast %27 : vector<1x1x112x8xf32> to vector<112x8xf32>
    %29 = vector.shape_cast %26 : vector<112x8xf32> to vector<1x1x112x8xf32>
    tpu.vector_store %arg4[%c0_14, %c1, %c0_15, %c0_16], %29 {strides = array<i32>} : memref<1x8x112x8xf32, #tpu.memory_space<vmem>>, vector<1x1x112x8xf32>,
    %30 = vector.extract_strided_slice %21 {offsets = [0, 16], sizes = [112, 8], strides = [1, 1]} : vector<112x192xf32> to vector<112x8xf32>
    %c0_17 = arith.constant 0 : index
    %c2 = arith.constant 2 : index
    %c0_18 = arith.constant 0 : index
    %c0_19 = arith.constant 0 : index
    %31 = vector.load %arg4[%c0_17, %c2, %c0_18, %c0_19] : memref<1x8x112x8xf32, #tpu.memory_space<vmem>>, vector<1x1x112x8xf32>
    %32 = vector.shape_cast %31 : vector<1x1x112x8xf32> to vector<112x8xf32>
    %33 = vector.shape_cast %30 : vector<112x8xf32> to vector<1x1x112x8xf32>
    tpu.vector_store %arg4[%c0_17, %c2, %c0_18, %c0_19], %33 {strides = array<i32>} : memref<1x8x112x8xf32, #tpu.memory_space<vmem>>, vector<1x1x112x8xf32>,
    %34 = vector.extract_strided_slice %21 {offsets = [0, 24], sizes = [112, 8], strides = [1, 1]} : vector<112x192xf32> to vector<112x8xf32>
    %c0_20 = arith.constant 0 : index
    %c3 = arith.constant 3 : index
    %c0_21 = arith.constant 0 : index
    %c0_22 = arith.constant 0 : index
    %35 = vector.load %arg4[%c0_20, %c3, %c0_21, %c0_22] : memref<1x8x112x8xf32, #tpu.memory_space<vmem>>, vector<1x1x112x8xf32>
    %36 = vector.shape_cast %35 : vector<1x1x112x8xf32> to vector<112x8xf32>
    %37 = vector.shape_cast %34 : vector<112x8xf32> to vector<1x1x112x8xf32>
    tpu.vector_store %arg4[%c0_20, %c3, %c0_21, %c0_22], %37 {strides = array<i32>} : memref<1x8x112x8xf32, #tpu.memory_space<vmem>>, vector<1x1x112x8xf32>,
    %38 = vector.extract_strided_slice %21 {offsets = [0, 32], sizes = [112, 8], strides = [1, 1]} : vector<112x192xf32> to vector<112x8xf32>
    %c0_23 = arith.constant 0 : index
    %c4 = arith.constant 4 : index
    %c0_24 = arith.constant 0 : index
    %c0_25 = arith.constant 0 : index
    %39 = vector.load %arg4[%c0_23, %c4, %c0_24, %c0_25] : memref<1x8x112x8xf32, #tpu.memory_space<vmem>>, vector<1x1x112x8xf32>
    %40 = vector.shape_cast %39 : vector<1x1x112x8xf32> to vector<112x8xf32>
    %41 = vector.shape_cast %38 : vector<112x8xf32> to vector<1x1x112x8xf32>
    tpu.vector_store %arg4[%c0_23, %c4, %c0_24, %c0_25], %41 {strides = array<i32>} : memref<1x8x112x8xf32, #tpu.memory_space<vmem>>, vector<1x1x112x8xf32>,
    %42 = vector.extract_strided_slice %21 {offsets = [0, 40], sizes = [112, 8], strides = [1, 1]} : vector<112x192xf32> to vector<112x8xf32>
    %c0_26 = arith.constant 0 : index
    %c5 = arith.constant 5 : index
    %c0_27 = arith.constant 0 : index
    %c0_28 = arith.constant 0 : index
    %43 = vector.load %arg4[%c0_26, %c5, %c0_27, %c0_28] : memref<1x8x112x8xf32, #tpu.memory_space<vmem>>, vector<1x1x112x8xf32>
    %44 = vector.shape_cast %43 : vector<1x1x112x8xf32> to vector<112x8xf32>
    %45 = vector.shape_cast %42 : vector<112x8xf32> to vector<1x1x112x8xf32>
    tpu.vector_store %arg4[%c0_26, %c5, %c0_27, %c0_28], %45 {strides = array<i32>} : memref<1x8x112x8xf32, #tpu.memory_space<vmem>>, vector<1x1x112x8xf32>,
    %46 = vector.extract_strided_slice %21 {offsets = [0, 48], sizes = [112, 8], strides = [1, 1]} : vector<112x192xf32> to vector<112x8xf32>
    %c0_29 = arith.constant 0 : index
    %c6 = arith.constant 6 : index
    %c0_30 = arith.constant 0 : index
    %c0_31 = arith.constant 0 : index
    %47 = vector.load %arg4[%c0_29, %c6, %c0_30, %c0_31] : memref<1x8x112x8xf32, #tpu.memory_space<vmem>>, vector<1x1x112x8xf32>
    %48 = vector.shape_cast %47 : vector<1x1x112x8xf32> to vector<112x8xf32>
    %49 = vector.shape_cast %46 : vector<112x8xf32> to vector<1x1x112x8xf32>
    tpu.vector_store %arg4[%c0_29, %c6, %c0_30, %c0_31], %49 {strides = array<i32>} : memref<1x8x112x8xf32, #tpu.memory_space<vmem>>, vector<1x1x112x8xf32>,
    %50 = vector.extract_strided_slice %21 {offsets = [0, 56], sizes = [112, 8], strides = [1, 1]} : vector<112x192xf32> to vector<112x8xf32>
    %c0_32 = arith.constant 0 : index
    %c7 = arith.constant 7 : index
    %c0_33 = arith.constant 0 : index
    %c0_34 = arith.constant 0 : index
    %51 = vector.load %arg4[%c0_32, %c7, %c0_33, %c0_34] : memref<1x8x112x8xf32, #tpu.memory_space<vmem>>, vector<1x1x112x8xf32>
    %52 = vector.shape_cast %51 : vector<1x1x112x8xf32> to vector<112x8xf32>
    %53 = vector.shape_cast %50 : vector<112x8xf32> to vector<1x1x112x8xf32>
    tpu.vector_store %arg4[%c0_32, %c7, %c0_33, %c0_34], %53 {strides = array<i32>} : memref<1x8x112x8xf32, #tpu.memory_space<vmem>>, vector<1x1x112x8xf32>,
    %54 = vector.extract_strided_slice %21 {offsets = [0, 64], sizes = [112, 8], strides = [1, 1]} : vector<112x192xf32> to vector<112x8xf32>
    %c0_35 = arith.constant 0 : index
    %c0_36 = arith.constant 0 : index
    %c0_37 = arith.constant 0 : index
    %c0_38 = arith.constant 0 : index
    %55 = vector.load %arg5[%c0_35, %c0_36, %c0_37, %c0_38] : memref<1x8x112x8xf32, #tpu.memory_space<vmem>>, vector<1x1x112x8xf32>
    %56 = vector.shape_cast %55 : vector<1x1x112x8xf32> to vector<112x8xf32>
    %57 = vector.shape_cast %54 : vector<112x8xf32> to vector<1x1x112x8xf32>
    tpu.vector_store %arg5[%c0_35, %c0_36, %c0_37, %c0_38], %57 {strides = array<i32>} : memref<1x8x112x8xf32, #tpu.memory_space<vmem>>, vector<1x1x112x8xf32>,
    %58 = vector.extract_strided_slice %21 {offsets = [0, 72], sizes = [112, 8], strides = [1, 1]} : vector<112x192xf32> to vector<112x8xf32>
    %c0_39 = arith.constant 0 : index
    %c1_40 = arith.constant 1 : index
    %c0_41 = arith.constant 0 : index
    %c0_42 = arith.constant 0 : index
    %59 = vector.load %arg5[%c0_39, %c1_40, %c0_41, %c0_42] : memref<1x8x112x8xf32, #tpu.memory_space<vmem>>, vector<1x1x112x8xf32>
    %60 = vector.shape_cast %59 : vector<1x1x112x8xf32> to vector<112x8xf32>
    %61 = vector.shape_cast %58 : vector<112x8xf32> to vector<1x1x112x8xf32>
    tpu.vector_store %arg5[%c0_39, %c1_40, %c0_41, %c0_42], %61 {strides = array<i32>} : memref<1x8x112x8xf32, #tpu.memory_space<vmem>>, vector<1x1x112x8xf32>,
    %62 = vector.extract_strided_slice %21 {offsets = [0, 80], sizes = [112, 8], strides = [1, 1]} : vector<112x192xf32> to vector<112x8xf32>
    %c0_43 = arith.constant 0 : index
    %c2_44 = arith.constant 2 : index
    %c0_45 = arith.constant 0 : index
    %c0_46 = arith.constant 0 : index
    %63 = vector.load %arg5[%c0_43, %c2_44, %c0_45, %c0_46] : memref<1x8x112x8xf32, #tpu.memory_space<vmem>>, vector<1x1x112x8xf32>
    %64 = vector.shape_cast %63 : vector<1x1x112x8xf32> to vector<112x8xf32>
    %65 = vector.shape_cast %62 : vector<112x8xf32> to vector<1x1x112x8xf32>
    tpu.vector_store %arg5[%c0_43, %c2_44, %c0_45, %c0_46], %65 {strides = array<i32>} : memref<1x8x112x8xf32, #tpu.memory_space<vmem>>, vector<1x1x112x8xf32>,
    %66 = vector.extract_strided_slice %21 {offsets = [0, 88], sizes = [112, 8], strides = [1, 1]} : vector<112x192xf32> to vector<112x8xf32>
    %c0_47 = arith.constant 0 : index
    %c3_48 = arith.constant 3 : index
    %c0_49 = arith.constant 0 : index
    %c0_50 = arith.constant 0 : index
    %67 = vector.load %arg5[%c0_47, %c3_48, %c0_49, %c0_50] : memref<1x8x112x8xf32, #tpu.memory_space<vmem>>, vector<1x1x112x8xf32>
    %68 = vector.shape_cast %67 : vector<1x1x112x8xf32> to vector<112x8xf32>
    %69 = vector.shape_cast %66 : vector<112x8xf32> to vector<1x1x112x8xf32>
    tpu.vector_store %arg5[%c0_47, %c3_48, %c0_49, %c0_50], %69 {strides = array<i32>} : memref<1x8x112x8xf32, #tpu.memory_space<vmem>>, vector<1x1x112x8xf32>,
    %70 = vector.extract_strided_slice %21 {offsets = [0, 96], sizes = [112, 8], strides = [1, 1]} : vector<112x192xf32> to vector<112x8xf32>
    %c0_51 = arith.constant 0 : index
    %c4_52 = arith.constant 4 : index
    %c0_53 = arith.constant 0 : index
    %c0_54 = arith.constant 0 : index
    %71 = vector.load %arg5[%c0_51, %c4_52, %c0_53, %c0_54] : memref<1x8x112x8xf32, #tpu.memory_space<vmem>>, vector<1x1x112x8xf32>
    %72 = vector.shape_cast %71 : vector<1x1x112x8xf32> to vector<112x8xf32>
    %73 = vector.shape_cast %70 : vector<112x8xf32> to vector<1x1x112x8xf32>
    tpu.vector_store %arg5[%c0_51, %c4_52, %c0_53, %c0_54], %73 {strides = array<i32>} : memref<1x8x112x8xf32, #tpu.memory_space<vmem>>, vector<1x1x112x8xf32>,
    %74 = vector.extract_strided_slice %21 {offsets = [0, 104], sizes = [112, 8], strides = [1, 1]} : vector<112x192xf32> to vector<112x8xf32>
    %c0_55 = arith.constant 0 : index
    %c5_56 = arith.constant 5 : index
    %c0_57 = arith.constant 0 : index
    %c0_58 = arith.constant 0 : index
    %75 = vector.load %arg5[%c0_55, %c5_56, %c0_57, %c0_58] : memref<1x8x112x8xf32, #tpu.memory_space<vmem>>, vector<1x1x112x8xf32>
    %76 = vector.shape_cast %75 : vector<1x1x112x8xf32> to vector<112x8xf32>
    %77 = vector.shape_cast %74 : vector<112x8xf32> to vector<1x1x112x8xf32>
    tpu.vector_store %arg5[%c0_55, %c5_56, %c0_57, %c0_58], %77 {strides = array<i32>} : memref<1x8x112x8xf32, #tpu.memory_space<vmem>>, vector<1x1x112x8xf32>,
    %78 = vector.extract_strided_slice %21 {offsets = [0, 112], sizes = [112, 8], strides = [1, 1]} : vector<112x192xf32> to vector<112x8xf32>
    %c0_59 = arith.constant 0 : index
    %c6_60 = arith.constant 6 : index
    %c0_61 = arith.constant 0 : index
    %c0_62 = arith.constant 0 : index
    %79 = vector.load %arg5[%c0_59, %c6_60, %c0_61, %c0_62] : memref<1x8x112x8xf32, #tpu.memory_space<vmem>>, vector<1x1x112x8xf32>
    %80 = vector.shape_cast %79 : vector<1x1x112x8xf32> to vector<112x8xf32>
    %81 = vector.shape_cast %78 : vector<112x8xf32> to vector<1x1x112x8xf32>
    tpu.vector_store %arg5[%c0_59, %c6_60, %c0_61, %c0_62], %81 {strides = array<i32>} : memref<1x8x112x8xf32, #tpu.memory_space<vmem>>, vector<1x1x112x8xf32>,
    %82 = vector.extract_strided_slice %21 {offsets = [0, 120], sizes = [112, 8], strides = [1, 1]} : vector<112x192xf32> to vector<112x8xf32>
    %c0_63 = arith.constant 0 : index
    %c7_64 = arith.constant 7 : index
    %c0_65 = arith.constant 0 : index
    %c0_66 = arith.constant 0 : index
    %83 = vector.load %arg5[%c0_63, %c7_64, %c0_65, %c0_66] : memref<1x8x112x8xf32, #tpu.memory_space<vmem>>, vector<1x1x112x8xf32>
    %84 = vector.shape_cast %83 : vector<1x1x112x8xf32> to vector<112x8xf32>
    %85 = vector.shape_cast %82 : vector<112x8xf32> to vector<1x1x112x8xf32>
    tpu.vector_store %arg5[%c0_63, %c7_64, %c0_65, %c0_66], %85 {strides = array<i32>} : memref<1x8x112x8xf32, #tpu.memory_space<vmem>>, vector<1x1x112x8xf32>,
    %86 = vector.extract_strided_slice %21 {offsets = [0, 128], sizes = [112, 8], strides = [1, 1]} : vector<112x192xf32> to vector<112x8xf32>
    %c0_67 = arith.constant 0 : index
    %c0_68 = arith.constant 0 : index
    %c0_69 = arith.constant 0 : index
    %c0_70 = arith.constant 0 : index
    %87 = vector.load %arg6[%c0_67, %c0_68, %c0_69, %c0_70] : memref<1x8x112x8xf32, #tpu.memory_space<vmem>>, vector<1x1x112x8xf32>
    %88 = vector.shape_cast %87 : vector<1x1x112x8xf32> to vector<112x8xf32>
    %89 = vector.shape_cast %86 : vector<112x8xf32> to vector<1x1x112x8xf32>
    tpu.vector_store %arg6[%c0_67, %c0_68, %c0_69, %c0_70], %89 {strides = array<i32>} : memref<1x8x112x8xf32, #tpu.memory_space<vmem>>, vector<1x1x112x8xf32>,
    %90 = vector.extract_strided_slice %21 {offsets = [0, 136], sizes = [112, 8], strides = [1, 1]} : vector<112x192xf32> to vector<112x8xf32>
    %c0_71 = arith.constant 0 : index
    %c1_72 = arith.constant 1 : index
    %c0_73 = arith.constant 0 : index
    %c0_74 = arith.constant 0 : index
    %91 = vector.load %arg6[%c0_71, %c1_72, %c0_73, %c0_74] : memref<1x8x112x8xf32, #tpu.memory_space<vmem>>, vector<1x1x112x8xf32>
    %92 = vector.shape_cast %91 : vector<1x1x112x8xf32> to vector<112x8xf32>
    %93 = vector.shape_cast %90 : vector<112x8xf32> to vector<1x1x112x8xf32>
    tpu.vector_store %arg6[%c0_71, %c1_72, %c0_73, %c0_74], %93 {strides = array<i32>} : memref<1x8x112x8xf32, #tpu.memory_space<vmem>>, vector<1x1x112x8xf32>,
    %94 = vector.extract_strided_slice %21 {offsets = [0, 144], sizes = [112, 8], strides = [1, 1]} : vector<112x192xf32> to vector<112x8xf32>
    %c0_75 = arith.constant 0 : index
    %c2_76 = arith.constant 2 : index
    %c0_77 = arith.constant 0 : index
    %c0_78 = arith.constant 0 : index
    %95 = vector.load %arg6[%c0_75, %c2_76, %c0_77, %c0_78] : memref<1x8x112x8xf32, #tpu.memory_space<vmem>>, vector<1x1x112x8xf32>
    %96 = vector.shape_cast %95 : vector<1x1x112x8xf32> to vector<112x8xf32>
    %97 = vector.shape_cast %94 : vector<112x8xf32> to vector<1x1x112x8xf32>
    tpu.vector_store %arg6[%c0_75, %c2_76, %c0_77, %c0_78], %97 {strides = array<i32>} : memref<1x8x112x8xf32, #tpu.memory_space<vmem>>, vector<1x1x112x8xf32>,
    %98 = vector.extract_strided_slice %21 {offsets = [0, 152], sizes = [112, 8], strides = [1, 1]} : vector<112x192xf32> to vector<112x8xf32>
    %c0_79 = arith.constant 0 : index
    %c3_80 = arith.constant 3 : index
    %c0_81 = arith.constant 0 : index
    %c0_82 = arith.constant 0 : index
    %99 = vector.load %arg6[%c0_79, %c3_80, %c0_81, %c0_82] : memref<1x8x112x8xf32, #tpu.memory_space<vmem>>, vector<1x1x112x8xf32>
    %100 = vector.shape_cast %99 : vector<1x1x112x8xf32> to vector<112x8xf32>
    %101 = vector.shape_cast %98 : vector<112x8xf32> to vector<1x1x112x8xf32>
    tpu.vector_store %arg6[%c0_79, %c3_80, %c0_81, %c0_82], %101 {strides = array<i32>} : memref<1x8x112x8xf32, #tpu.memory_space<vmem>>, vector<1x1x112x8xf32>,
    %102 = vector.extract_strided_slice %21 {offsets = [0, 160], sizes = [112, 8], strides = [1, 1]} : vector<112x192xf32> to vector<112x8xf32>
    %c0_83 = arith.constant 0 : index
    %c4_84 = arith.constant 4 : index
    %c0_85 = arith.constant 0 : index
    %c0_86 = arith.constant 0 : index
    %103 = vector.load %arg6[%c0_83, %c4_84, %c0_85, %c0_86] : memref<1x8x112x8xf32, #tpu.memory_space<vmem>>, vector<1x1x112x8xf32>
    %104 = vector.shape_cast %103 : vector<1x1x112x8xf32> to vector<112x8xf32>
    %105 = vector.shape_cast %102 : vector<112x8xf32> to vector<1x1x112x8xf32>
    tpu.vector_store %arg6[%c0_83, %c4_84, %c0_85, %c0_86], %105 {strides = array<i32>} : memref<1x8x112x8xf32, #tpu.memory_space<vmem>>, vector<1x1x112x8xf32>,
    %106 = vector.extract_strided_slice %21 {offsets = [0, 168], sizes = [112, 8], strides = [1, 1]} : vector<112x192xf32> to vector<112x8xf32>
    %c0_87 = arith.constant 0 : index
    %c5_88 = arith.constant 5 : index
    %c0_89 = arith.constant 0 : index
    %c0_90 = arith.constant 0 : index
    %107 = vector.load %arg6[%c0_87, %c5_88, %c0_89, %c0_90] : memref<1x8x112x8xf32, #tpu.memory_space<vmem>>, vector<1x1x112x8xf32>
    %108 = vector.shape_cast %107 : vector<1x1x112x8xf32> to vector<112x8xf32>
    %109 = vector.shape_cast %106 : vector<112x8xf32> to vector<1x1x112x8xf32>
    tpu.vector_store %arg6[%c0_87, %c5_88, %c0_89, %c0_90], %109 {strides = array<i32>} : memref<1x8x112x8xf32, #tpu.memory_space<vmem>>, vector<1x1x112x8xf32>,
    %110 = vector.extract_strided_slice %21 {offsets = [0, 176], sizes = [112, 8], strides = [1, 1]} : vector<112x192xf32> to vector<112x8xf32>
    %c0_91 = arith.constant 0 : index
    %c6_92 = arith.constant 6 : index
    %c0_93 = arith.constant 0 : index
    %c0_94 = arith.constant 0 : index
    %111 = vector.load %arg6[%c0_91, %c6_92, %c0_93, %c0_94] : memref<1x8x112x8xf32, #tpu.memory_space<vmem>>, vector<1x1x112x8xf32>
    %112 = vector.shape_cast %111 : vector<1x1x112x8xf32> to vector<112x8xf32>
    %113 = vector.shape_cast %110 : vector<112x8xf32> to vector<1x1x112x8xf32>
    tpu.vector_store %arg6[%c0_91, %c6_92, %c0_93, %c0_94], %113 {strides = array<i32>} : memref<1x8x112x8xf32, #tpu.memory_space<vmem>>, vector<1x1x112x8xf32>,
    %114 = vector.extract_strided_slice %21 {offsets = [0, 184], sizes = [112, 8], strides = [1, 1]} : vector<112x192xf32> to vector<112x8xf32>
    %c0_95 = arith.constant 0 : index
    %c7_96 = arith.constant 7 : index
    %c0_97 = arith.constant 0 : index
    %c0_98 = arith.constant 0 : index
    %115 = vector.load %arg6[%c0_95, %c7_96, %c0_97, %c0_98] : memref<1x8x112x8xf32, #tpu.memory_space<vmem>>, vector<1x1x112x8xf32>
    %116 = vector.shape_cast %115 : vector<1x1x112x8xf32> to vector<112x8xf32>
    %117 = vector.shape_cast %114 : vector<112x8xf32> to vector<1x1x112x8xf32>
    tpu.vector_store %arg6[%c0_95, %c7_96, %c0_97, %c0_98], %117 {strides = array<i32>} : memref<1x8x112x8xf32, #tpu.memory_space<vmem>>, vector<1x1x112x8xf32>,
    return
  }
  func.func @transform_0(%arg0: i32) -> (i32, i32) {
    %c0_i32 = arith.constant 0 : i32
    %c0_i32_0 = arith.constant 0 : i32
    return %arg0, %c0_i32 : i32, i32
  }
  func.func @transform_1(%arg0: i32) -> (i32, i32) {
    %c0_i32 = arith.constant 0 : i32
    %c0_i32_0 = arith.constant 0 : i32
    %c0_i32_1 = arith.constant 0 : i32
    return %c0_i32, %c0_i32_0 : i32, i32
  }
  func.func @transform_2(%arg0: i32) -> (i32, i32) {
    %c0_i32 = arith.constant 0 : i32
    %c0_i32_0 = arith.constant 0 : i32
    %c0_i32_1 = arith.constant 0 : i32
    return %c0_i32, %c0_i32_0 : i32, i32
  }
  func.func @transform_3(%arg0: i32) -> (i32, i32, i32, i32) {
    %c0_i32 = arith.constant 0 : i32
    %c0_i32_0 = arith.constant 0 : i32
    %c0_i32_1 = arith.constant 0 : i32
    %c0_i32_2 = arith.constant 0 : i32
    return %c0_i32, %c0_i32_0, %arg0, %c0_i32_1 : i32, i32, i32, i32
  }
  func.func @transform_4(%arg0: i32) -> (i32, i32, i32, i32) {
    %c0_i32 = arith.constant 0 : i32
    %c0_i32_0 = arith.constant 0 : i32
    %c0_i32_1 = arith.constant 0 : i32
    %c0_i32_2 = arith.constant 0 : i32
    return %c0_i32, %c0_i32_0, %arg0, %c0_i32_1 : i32, i32, i32, i32
  }
  func.func @transform_5(%arg0: i32) -> (i32, i32, i32, i32) {
    %c0_i32 = arith.constant 0 : i32
    %c0_i32_0 = arith.constant 0 : i32
    %c0_i32_1 = arith.constant 0 : i32
    %c0_i32_2 = arith.constant 0 : i32
    return %c0_i32, %c0_i32_0, %arg0, %c0_i32_1 : i32, i32, i32, i32
  }
}

</mosaic_0001>

<bundles_post_ra>
// kernel: tpu_custom_call.1
= control target key start
LH: loop header
LB: loop body
LE: loop exit
PB: predicated region body
PF: predicated region fallthrough
CT: control target
= control target key end

     0   :  { %s4340_s18 = smov 0   ;;  %s4342_s19 = smov 0   ;;  %s6692_s0 = inlined_call_operand.vmem [shape: f32[200,64], index: 0, kind: input, shape index: {}]   ;;  %s6693_s1 = inlined_call_operand.vmem [shape: f32[64,192], index: 1, kind: input, shape index: {}]   ;;  %s6694_s2 = inlined_call_operand.vmem [shape: f32[1,192], index: 2, kind: input, shape index: {}]   ;;  %s6695_s3 = inlined_call_operand.vmem [shape: f32[1,8,200,8], index: 3, kind: output, shape index: {0}]   ;;  %s6696_s4 = inlined_call_operand.vmem [shape: f32[1,8,200,8], index: 4, kind: output, shape index: {1}]   ;;  %s6697_s5 = inlined_call_operand.vmem [shape: f32[1,8,200,8], index: 5, kind: output, shape index: {2}]  }
   0x1   :  { %s4344_s20 = smov 0  }
   0x2 LB: > { %s4353_s21 = sadd.s32 4294967295, %s4196_s20   ;;  %s4355_s22 = sadd.s32 1, %s4196_s20   ;;  %s4196_s20 = sphi %s4344_s20, %s6725_s20   ;;  %s4192_s19 = sphi %s4342_s19, %s6724_s19   ;;  %s4188_s18 = sphi %s4340_s18, %s6723_s18  }
   0x3   : > { %s88_s23 = ssub.s32 %s4196_s20, %s4355_s22  ;;  %s91_s24 = sadd.s32 1, %s4192_s19 }
   0x4   : > { %p89_p0 = scmp.eq.s32.totalorder %s88_s23, 0  ;;  %p101_p1 = scmp.ne.s32.totalorder %s4192_s19, %s4188_s18 }
   0x5   : > { %p102_p2 = scmp.eq.s32.totalorder %s4353_s21, 1  ;;  %p3441_p3 = scmp.ge.s32.totalorder %s4196_s20, 1 }
   0x6   : > { %s4363_s25 = scalar_select %p89_p0, %s4192_s19, %s91_s24  }
   0x7   : > { %p4365_p4 = por %p102_p2, %p101_p1  ;;  %p201_p5 = scmp.lt.s32.totalorder %s4196_s20, 3 }
   0x9   : > { %p202_p6 = pnand %p3441_p3, %p201_p5 }
   0xa   : > { %s4370_s27 = smul.u32 (!%p202_p6), 14, %s4353_s21  ;;  %s4295_s8 = smov (!%p202_p6), 120  }
   0xb   : > { %205 = sbr.rel (%p202_p6) target bundleno = 1470 (0x5be), region = 32  ;;  %s4296_s10 = smov (!%p202_p6), 112  }
   0xc   : > { %p245_p7 = scmp.lt.s32.totalorder (!%p202_p6), %s4370_s27, 24  ;;  %s4297_s11 = smov (!%p202_p6), 104  }
   0xd   : > { %s4298_s12 = smov (!%p202_p6), 96   ;;  %s4299_s13 = smov (!%p202_p6), 88  }
   0xe   : > { %s4300_s14 = smov (!%p202_p6), 80   ;;  %s4301_s15 = smov (!%p202_p6), 72  }
   0xf   : > { %s4302_s16 = smov (!%p202_p6), 64   ;;  %s4303_s17 = smov (!%p202_p6), 56  }
  0x10   : > { %s246_s28 = scalar_select %p245_p7, %s4370_s27, 24  ;;  %vm283_vm0 = vcmask 523264   ;;  %vm686_vm1 = vcmask 64512  }
  0x11   : > { %s4304_s20 = smov 48   ;;  %s4305_s23 = smov 40  }
  0x12   : > { %s3442_s29 = sshll.u32 %s246_s28, 3  ;;  %s4306_s24 = smov 32  }
  0x13   : > { %s4377_s7 = scalar_lea.vmem %s6692_s0, %s3442_s29  ;;  %s225_s29 = sand.u32 1, %s4188_s18  }
  0x14   : > { %v269_v0 = vld [vmem:[%s4377_s7] sm:$0xff]  ;;  %v271_v1 = vld [vmem:[%s4377_s7 + $0x10] sm:$0xff]  ;;  %v270_v2 = vld [vmem:[%s4377_s7 + $0x8] sm:$0xff]  ;;  %s4307_s28 = smov 24   ;;  %s4309_s30 = smov 8  }
  0x15   : > { %v284_v3 = vsel %vm283_vm0, %v269_v0, 0.0  ;;  %v290_v4 = vsel %vm283_vm0, %v271_v1, 0.0  ;;  %v272_v5 = vld [vmem:[%s4377_s7 + $0x18] sm:$0xff]  ;;  %v287_v6 = vsel %vm283_vm0, %v270_v2, 0.0  ;;  %v273_v8 = vld [vmem:[%s4377_s7 + $0x20] sm:$0xff]  ;;  %v274_v9 = vld [vmem:[%s4377_s7 + $0x28] sm:$0xff] }
  0x16   : > { %285 = vadd.xlane.f32.xlu0 %v284_v3  ;;  %291 = vadd.xlane.f32.xlu1 %v290_v4  ;;  %v293_v7 = vsel %vm283_vm0, %v272_v5, 0.0  ;;  %v296_v10 = vsel %vm283_vm0, %v273_v8, 0.0  ;;  %v299_v11 = vsel %vm283_vm0, %v274_v9, 0.0  ;;  %v275_v12 = vld [vmem:[%s4377_s7 + $0x30] sm:$0xff]  ;;  %v276_v13 = vld [vmem:[%s4377_s7 + $0x38] sm:$0xff]  ;;  %v4396_v16 = vld [vmem:[%s4377_s7 + $0x40] sm:$0xff] }
  0x17   : > { %v302_v14 = vsel %vm283_vm0, %v275_v12, 0.0  ;;  %v305_v15 = vsel %vm283_vm0, %v276_v13, 0.0  ;;  %v4399_v17 = vld [vmem:[%s4377_s7 + $0x48] sm:$0xff]  ;;  %v308_v18 = vsel %vm283_vm0, %v4396_v16, 0.0  ;;  %v4406_v20 = vld [vmem:[%s4377_s7 + $0x50] sm:$0xff]  ;;  %v4409_v21 = vld [vmem:[%s4377_s7 + $0x58] sm:$0xff] }
  0x18   : > { %v311_v19 = vsel %vm283_vm0, %v4399_v17, 0.0  ;;  %v314_v22 = vsel %vm283_vm0, %v4406_v20, 0.0  ;;  %v317_v23 = vsel %vm283_vm0, %v4409_v21, 0.0  ;;  %v4416_v24 = vld [vmem:[%s4377_s7 + $0x60] sm:$0xff]  ;;  %v4419_v25 = vld [vmem:[%s4377_s7 + $0x68] sm:$0xff]  ;;  %s4595_s7 = smul.u32 896, %s225_s29 }
  0x19   : > { %v320_v26 = vsel %vm283_vm0, %v4416_v24, 0.0  ;;  %v323_v27 = vsel %vm283_vm0, %v4419_v25, 0.0  ;;  %s4308_s29 = smov 16  }
  0x1a   : > { %288 = vadd.xlane.f32.xlu0 %v287_v6  ;;  %294 = vadd.xlane.f32.xlu1 %v293_v7  ;;  %s4605_s18 = scalar_lea.vmem [#allocation2], %s4595_s7   ;;  %s4616_s9 = scalar_lea.vmem [#allocation4], %s4595_s7  }
  0x1b   : > { %s4934_s6 = scalar_lea.vmem [#allocation3], %s4595_s7   ;;  %s2012_s7 = ssub.s32 (%p4365_p4), 25, %s4370_s27 }
  0x1c   : > { %p2013_p8 = scmp.lt.s32.totalorder (%p4365_p4), %s2012_s7, 14 }
  0x1e   : > { %297 = vadd.xlane.f32.xlu0 %v296_v10  ;;  %300 = vadd.xlane.f32.xlu1 %v299_v11 }
  0x22   : > { %303 = vadd.xlane.f32.xlu0 %v302_v14  ;;  %306 = vadd.xlane.f32.xlu1 %v305_v15 }
  0x26   : > { %309 = vadd.xlane.f32.xlu0 %v308_v18  ;;  %312 = vadd.xlane.f32.xlu1 %v311_v19 }
  0x2a   : > { %315 = vadd.xlane.f32.xlu0 %v314_v22  ;;  %318 = vadd.xlane.f32.xlu1 %v317_v23  ;;  %v481_v22 = vld [vmem:[%s6693_s1 + $0x70] sm:$0xff] }
  0x2e   : > { %321 = vadd.xlane.f32.xlu0 %v320_v26  ;;  %324 = vadd.xlane.f32.xlu1 %v323_v27 }
  0x9f   : > { %v286_v28 = vpop.xlane.xlu0 %285  ;;  %v292_v29 = vpop.xlane.xlu1 %291 }
  0xa0   : > { %v327_v30 = vmul.f32 0.015625, %v286_v28  ;;  %v329_v31 = vmul.f32 0.015625, %v292_v29 }
  0xa2   : > { %v4425_v32 = vsub.f32 %v269_v0, %v327_v30  ;;  %v4427_v33 = vsub.f32 %v271_v1, %v329_v31  ;;  %v479_v31 = vld [vmem:[%s6693_s1 + $0x60] sm:$0xff] }
  0xa3   : > { %v289_v34 = vpop.xlane.xlu0 %288  ;;  %v295_v35 = vpop.xlane.xlu1 %294 }
  0xa4   : > { %v328_v36 = vmul.f32 0.015625, %v289_v34  ;;  %v330_v37 = vmul.f32 0.015625, %v295_v35  ;;  %v355_v38 = vmul.f32 %v4425_v32, %v4425_v32  ;;  %v357_v39 = vmul.f32 %v4427_v33, %v4427_v33  ;;  %v478_v34 = vld [vmem:[%s6693_s1 + $0x58] sm:$0xff] }
  0xa6   : > { %v4433_v40 = vsub.f32 %v270_v2, %v328_v36  ;;  %v4435_v41 = vsub.f32 %v272_v5, %v330_v37  ;;  %v369_v42 = vsel %vm283_vm0, %v355_v38, 0.0  ;;  %v375_v45 = vsel %vm283_vm0, %v357_v39, 0.0  ;;  %v477_v38 = vld [vmem:[%s6693_s1 + $0x50] sm:$0xff]  ;;  %v476_v39 = vld [vmem:[%s6693_s1 + $0x48] sm:$0xff] }
  0xa7   : > { %370 = vadd.xlane.f32.xlu0 %v369_v42  ;;  %v298_v43 = vpop.xlane.xlu0 %297  ;;  %v301_v44 = vpop.xlane.xlu1 %300 }
  0xa8   : > { %v331_v46 = vmul.f32 0.015625, %v298_v43  ;;  %v332_v47 = vmul.f32 0.015625, %v301_v44  ;;  %v356_v48 = vmul.f32 %v4433_v40, %v4433_v40  ;;  %v358_v49 = vmul.f32 %v4435_v41, %v4435_v41  ;;  %v475_v43 = vld [vmem:[%s6693_s1 + $0x40] sm:$0xff] }
  0xaa   : > { %v4443_v50 = vsub.f32 %v273_v8, %v331_v46  ;;  %v4445_v51 = vsub.f32 %v274_v9, %v332_v47  ;;  %v372_v52 = vsel %vm283_vm0, %v356_v48, 0.0  ;;  %v378_v55 = vsel %vm283_vm0, %v358_v49, 0.0  ;;  %v473_v46 = vld [vmem:[%s6693_s1 + $0x30] sm:$0xff]  ;;  %v472_v48 = vld [vmem:[%s6693_s1 + $0x28] sm:$0xff]  ;;  %v471_v49 = vld [vmem:[%s6693_s1 + $0x20] sm:$0xff] }
  0xab   : > { %376 = vadd.xlane.f32.xlu0 %v375_v45  ;;  %373 = vadd.xlane.f32.xlu1 %v372_v52  ;;  %v304_v53 = vpop.xlane.xlu0 %303  ;;  %v307_v54 = vpop.xlane.xlu1 %306  ;;  %v474_v45 = vld [vmem:[%s6693_s1 + $0x38] sm:$0xff] }
  0xac   : > { %v333_v56 = vmul.f32 0.015625, %v304_v53  ;;  %v334_v57 = vmul.f32 0.015625, %v307_v54  ;;  %v359_v58 = vmul.f32 %v4443_v50, %v4443_v50  ;;  %v360_v59 = vmul.f32 %v4445_v51, %v4445_v51  ;;  %v470_v52 = vld [vmem:[%s6693_s1 + $0x18] sm:$0xff]  ;;  %v469_v53 = vld [vmem:[%s6693_s1 + $0x10] sm:$0xff]  ;;  %v468_v54 = vld [vmem:[%s6693_s1 + $0x8] sm:$0xff] }
  0xae   : > { %v4453_v60 = vsub.f32 %v275_v12, %v333_v56  ;;  %v4455_v61 = vsub.f32 %v276_v13, %v334_v57  ;;  %v381_v62 = vsel %vm283_vm0, %v359_v58, 0.0  ;;  %v384_v1 = vsel %vm283_vm0, %v360_v59, 0.0 }
  0xaf   : > { %379 = vadd.xlane.f32.xlu1 %v378_v55  ;;  %382 = vadd.xlane.f32.xlu0 %v381_v62  ;;  %v310_v63 = vpop.xlane.xlu0 %309  ;;  %v313_v0 = vpop.xlane.xlu1 %312  ;;  %v467_v55 = vld [vmem:[%s6693_s1] sm:$0xff]  ;;  %v4294_v56 = vmov 0.0  }
  0xb0   : > { %v335_v2 = vmul.f32 0.015625, %v310_v63  ;;  %v336_v3 = vmul.f32 0.015625, %v313_v0  ;;  %v361_v4 = vmul.f32 %v4453_v60, %v4453_v60  ;;  %v362_v5 = vmul.f32 %v4455_v61, %v4455_v61  ;;  %601 = vmatprep.mubr.f32.mxu0 %v4294_v56  ;;  %643 = vmatprep.mubr.f32.mxu1 %v4294_v56 }
  0xb2   : > { %v4464_v6 = vsub.f32 %v4396_v16, %v335_v2  ;;  %v4467_v7 = vsub.f32 %v4399_v17, %v336_v3  ;;  %v387_v8 = vsel %vm283_vm0, %v361_v4, 0.0  ;;  %v390_v11 = vsel %vm283_vm0, %v362_v5, 0.0  ;;  %v482_v16 = vld [vmem:[%s6693_s1 + $0x78] sm:$0xff] }
  0xb3   : > { %385 = vadd.xlane.f32.xlu1 %v384_v1  ;;  %388 = vadd.xlane.f32.xlu0 %v387_v8  ;;  %v316_v9 = vpop.xlane.xlu0 %315  ;;  %v319_v10 = vpop.xlane.xlu1 %318 }
  0xb4   : > { %v337_v12 = vmul.f32 0.015625, %v316_v9  ;;  %v338_v13 = vmul.f32 0.015625, %v319_v10  ;;  %v363_v14 = vmul.f32 %v4464_v6, %v4464_v6  ;;  %v364_v15 = vmul.f32 %v4467_v7, %v4467_v7  ;;  %553 = vmatprep.subr.mxu0 %v482_v16  ;;  %3801 = vmatprep.subr.mxu1 %v482_v16 }
  0xb5   : > { %554 = vmatpush1.msra.mxu0 %v481_v22  ;;  %3809 = vmatpush1.msra.mxu1 %v481_v22 }
  0xb6   : > { %v4479_v17 = vsub.f32 %v4406_v20, %v337_v12  ;;  %v4482_v18 = vsub.f32 %v4409_v21, %v338_v13  ;;  %v393_v19 = vsel %vm283_vm0, %v363_v14, 0.0  ;;  %v396_v27 = vsel %vm283_vm0, %v364_v15, 0.0  ;;  %v480_v20 = vld [vmem:[%s6693_s1 + $0x68] sm:$0xff] }
  0xb7   : > { %391 = vadd.xlane.f32.xlu1 %v390_v11  ;;  %394 = vadd.xlane.f32.xlu0 %v393_v19  ;;  %v322_v23 = vpop.xlane.xlu0 %321  ;;  %v325_v26 = vpop.xlane.xlu1 %324 }
  0xb8   : > { %v339_v21 = vmul.f32 0.015625, %v322_v23  ;;  %v340_v28 = vmul.f32 0.015625, %v325_v26  ;;  %v365_v29 = vmul.f32 %v4479_v17, %v4479_v17  ;;  %v366_v30 = vmul.f32 %v4482_v18, %v4482_v18  ;;  %555 = vmatprep.subr.mxu0 %v480_v20  ;;  %3802 = vmatprep.subr.mxu1 %v480_v20 }
  0xb9   : > { %556 = vmatpush1.msra.mxu0 %v479_v31  ;;  %3810 = vmatpush1.msra.mxu1 %v479_v31 }
  0xba   : > { %v4503_v35 = vsub.f32 %v4416_v24, %v339_v21  ;;  %v4506_v36 = vsub.f32 %v4419_v25, %v340_v28  ;;  %v399_v37 = vsel %vm283_vm0, %v365_v29, 0.0  ;;  %v402_v24 = vsel %vm283_vm0, %v366_v30, 0.0  ;;  %557 = vmatprep.subr.mxu0 %v478_v34  ;;  %3803 = vmatprep.subr.mxu1 %v478_v34 }
  0xbb   : > { %397 = vadd.xlane.f32.xlu1 %v396_v27  ;;  %400 = vadd.xlane.f32.xlu0 %v399_v37 }
  0xbc   : > { %v367_v25 = vmul.f32 %v4503_v35, %v4503_v35  ;;  %v368_v42 = vmul.f32 %v4506_v36, %v4506_v36  ;;  %558 = vmatpush1.msra.mxu0 %v477_v38  ;;  %3811 = vmatpush1.msra.mxu1 %v477_v38 }
  0xbd   : > { %559 = vmatprep.subr.mxu0 %v476_v39  ;;  %3804 = vmatprep.subr.mxu1 %v476_v39 }
  0xbe   : > { %v405_v44 = vsel %vm283_vm0, %v367_v25, 0.0  ;;  %v408_v47 = vsel %vm283_vm0, %v368_v42, 0.0  ;;  %560 = vmatpush1.msra.mxu0 %v475_v43  ;;  %3812 = vmatpush1.msra.mxu1 %v475_v43 }
  0xbf   : > { %403 = vadd.xlane.f32.xlu1 %v402_v24  ;;  %406 = vadd.xlane.f32.xlu0 %v405_v44 }
  0xc0   : > { %561 = vmatprep.subr.mxu0 %v474_v45  ;;  %3805 = vmatprep.subr.mxu1 %v474_v45 }
  0xc1   : > { %562 = vmatpush1.msra.mxu0 %v473_v46  ;;  %3813 = vmatpush1.msra.mxu1 %v473_v46 }
  0xc2   : > { %563 = vmatprep.subr.mxu0 %v472_v48  ;;  %3806 = vmatprep.subr.mxu1 %v472_v48 }
  0xc3   : > { %409 = vadd.xlane.f32.xlu1 %v408_v47  ;;  %564 = vmatpush1.msra.mxu0 %v471_v49 }
  0xc4   : > { %565 = vmatprep.subr.mxu0 %v470_v52  ;;  %3814 = vmatpush1.msra.mxu1 %v471_v49 }
  0xc5   : > { %566 = vmatpush1.msra.mxu0 %v469_v53  ;;  %3807 = vmatprep.subr.mxu1 %v470_v52 }
  0xc6   : > { %567 = vmatprep.subr.mxu0 %v468_v54  ;;  %3815 = vmatpush1.msra.mxu1 %v469_v53 }
  0xc7   : > { %568 = vmatpush1.msra.mxu0 %v467_v55  ;;  %3808 = vmatprep.subr.mxu1 %v468_v54 }
  0xc8   : > { %3816 = vmatpush1.msra.mxu1 %v467_v55 }
 0x130   : > { %v371_v57 = vpop.xlane.xlu0 %370 }
 0x131   : > { %v411_v58 = vmul.f32 0.015625, %v371_v57 }
 0x133   : > { %v425_v59 = vadd.f32 1e-05, %v411_v58 }
 0x134   : > { %v374_v62 = vpop.xlane.xlu1 %373  ;;  %v377_v63 = vpop.xlane.xlu0 %376 }
 0x135   : > { %4050 = vrsqrt.f32 %v425_v59  ;;  %v412_v0 = vmul.f32 0.015625, %v374_v62  ;;  %v413_v1 = vmul.f32 0.015625, %v377_v63 }
 0x137   : > { %v426_v2 = vadd.f32 1e-05, %v412_v0  ;;  %v427_v3 = vadd.f32 1e-05, %v413_v1 }
 0x138   : > { %v380_v4 = vpop.xlane.xlu1 %379  ;;  %v383_v5 = vpop.xlane.xlu0 %382 }
 0x139   : > { %4052 = vrsqrt.f32 %v426_v2  ;;  %v414_v8 = vmul.f32 0.015625, %v380_v4  ;;  %v415_v10 = vmul.f32 0.015625, %v383_v5  ;;  %v485_v5 = vlaneseq }
 0x13a   : > { %4054 = vrsqrt.f32 %v427_v3 }
 0x13b   : > { %v428_v9 = vadd.f32 1e-05, %v414_v8  ;;  %v429_v14 = vadd.f32 1e-05, %v415_v10  ;;  %v486_v8 = vshrl.u32 %v485_v5, 7 }
 0x13c   : > { %v386_v11 = vpop.xlane.xlu1 %385  ;;  %v389_v12 = vpop.xlane.xlu0 %388 }
 0x13d   : > { %v416_v13 = vmul.f32 0.015625, %v386_v11  ;;  %4056 = vrsqrt.f32 %v428_v9  ;;  %v417_v27 = vmul.f32 0.015625, %v389_v12  ;;  %v483_v9 = vld [vmem:[%s6694_s2] sm:$0x3]  ;;  %v491_v10 = vsub.s32 1, %v486_v8 }
 0x13e   : > { %4058 = vrsqrt.f32 %v429_v14 }
 0x13f   : > { %v430_v26 = vadd.f32 1e-05, %v416_v13  ;;  %v431_v37 = vadd.f32 1e-05, %v417_v27 }
 0x140   : > { %v392_v15 = vpop.xlane.xlu1 %391  ;;  %v395_v16 = vpop.xlane.xlu0 %394 }
 0x141   : > { %v418_v19 = vmul.f32 0.015625, %v392_v15  ;;  %v419_v22 = vmul.f32 0.015625, %v395_v16 }
 0x142   : > { %v4051_v23 = vpop.eup %4050 }
 0x143   : > { %v432_v20 = vadd.f32 1e-05, %v418_v19  ;;  %v433_v21 = vadd.f32 1e-05, %v419_v22  ;;  %v453_v28 = vmul.f32 %v4051_v23, %v4425_v32 }
 0x144   : > { %v398_v29 = vpop.xlane.xlu1 %397  ;;  %v401_v30 = vpop.xlane.xlu0 %400 }
 0x145   : > { %4060 = vrsqrt.f32 %v432_v20  ;;  %v420_v31 = vmul.f32 0.015625, %v398_v29  ;;  %3443 = vmatmul.mubr.msk.f32.vlgmr.msra.gmra.mxu0 %vm283_vm0, %v453_v28  ;;  %v421_v39 = vmul.f32 0.015625, %v401_v30 }
 0x146   : > { %v4053_v34 = vpop.eup %4052  ;;  %4062 = vrsqrt.f32 %v430_v26  ;;  %607 = vmatprep.mubr.f32.mxu0 %v4294_v56 }
 0x147   : > { %4064 = vrsqrt.f32 %v433_v21  ;;  %v434_v38 = vadd.f32 1e-05, %v420_v31  ;;  %v454_v24 = vmul.f32 %v4053_v34, %v4433_v40  ;;  %v4055_v25 = vpop.eup %4054  ;;  %v435_v32 = vadd.f32 1e-05, %v421_v39 }
 0x148   : > { %v404_v42 = vpop.xlane.xlu1 %403  ;;  %4066 = vrsqrt.f32 %v431_v37  ;;  %v407_v44 = vpop.xlane.xlu0 %406  ;;  %v455_v45 = vmul.f32 %v4055_v25, %v4427_v33 }
 0x149   : > { %3444 = vmatmul.mubr.msk.f32.gmra.mxu0 %vm283_vm0, %v454_v24  ;;  %4068 = vrsqrt.f32 %v434_v38  ;;  %v422_v43 = vmul.f32 0.015625, %v404_v42  ;;  %v423_v47 = vmul.f32 0.015625, %v407_v44 }
 0x14a   : > { %613 = vmatprep.mubr.f32.mxu0 %v4294_v56  ;;  %v4057_v46 = vpop.eup %4056  ;;  %4070 = vrsqrt.f32 %v435_v32 }
 0x14b   : > { %v436_v40 = vadd.f32 1e-05, %v422_v43  ;;  %v456_v48 = vmul.f32 %v4057_v46, %v4435_v41  ;;  %v4059_v49 = vpop.eup %4058  ;;  %v437_v54 = vadd.f32 1e-05, %v423_v47 }
 0x14c   : > { %v410_v52 = vpop.xlane.xlu1 %409  ;;  %v457_v57 = vmul.f32 %v4059_v49, %v4443_v50 }
 0x14d   : > { %3445 = vmatmul.mubr.msk.f32.gmra.mxu0 %vm283_vm0, %v455_v45  ;;  %4072 = vrsqrt.f32 %v436_v40  ;;  %v424_v33 = vmul.f32 0.015625, %v410_v52 }
 0x14e   : > { %619 = vmatprep.mubr.f32.mxu0 %v4294_v56  ;;  %4074 = vrsqrt.f32 %v437_v54 }
 0x14f   : > { %v438_v62 = vadd.f32 1e-05, %v424_v33 }
 0x151   : > { %3446 = vmatmul.mubr.msk.f32.gmra.mxu0 %vm283_vm0, %v456_v48  ;;  %4076 = vrsqrt.f32 %v438_v62 }
 0x152   : > { %v4061_v53 = vpop.eup %4060  ;;  %625 = vmatprep.mubr.f32.mxu0 %v4294_v56 }
 0x153   : > { %v4063_v55 = vpop.eup %4062  ;;  %v460_v58 = vmul.f32 %v4061_v53, %v4455_v61 }
 0x154   : > { %v4065_v59 = vpop.eup %4064  ;;  %v458_v63 = vmul.f32 %v4063_v55, %v4445_v51 }
 0x155   : > { %3447 = vmatmul.mubr.msk.f32.gmra.mxu0 %vm283_vm0, %v457_v57  ;;  %3450 = vmatmul.mubr.msk.f32.vlgmr.msra.gmra.mxu1 %vm283_vm0, %v460_v58  ;;  %v4067_v41 = vpop.eup %4066  ;;  %v461_v0 = vmul.f32 %v4065_v59, %v4464_v6 }
 0x156   : > { %631 = vmatprep.mubr.f32.mxu0 %v4294_v56  ;;  %649 = vmatprep.mubr.f32.mxu1 %v4294_v56  ;;  %v4069_v1 = vpop.eup %4068  ;;  %v459_v50 = vmul.f32 %v4067_v41, %v4453_v60 }
 0x157   : > { %v462_v61 = vmul.f32 %v4069_v1, %v4467_v7  ;;  %v4071_v2 = vpop.eup %4070 }
 0x158   : > { %v463_v51 = vmul.f32 %v4071_v2, %v4479_v17 }
 0x159   : > { %3448 = vmatmul.mubr.msk.f32.gmra.mxu0 %vm283_vm0, %v458_v63  ;;  %3451 = vmatmul.mubr.msk.f32.gmra.mxu1 %vm283_vm0, %v461_v0 }
 0x15a   : > { %637 = vmatprep.mubr.f32.mxu0 %v4294_v56  ;;  %655 = vmatprep.mubr.f32.mxu1 %v4294_v56  ;;  %v4073_v6 = vpop.eup %4072 }
 0x15b   : > { %v464_v3 = vmul.f32 %v4073_v6, %v4482_v18  ;;  %v4075_v60 = vpop.eup %4074  ;;  %v487_v18 = vsub.s32 0, %v486_v8 }
 0x15c   : > { %v465_v7 = vmul.f32 %v4075_v60, %v4503_v35 }
 0x15d   : > { %3449 = vmatmul.mubr.msk.f32.gmra.mxu0 %vm283_vm0, %v459_v50  ;;  %3452 = vmatmul.mubr.msk.f32.gmra.mxu1 %vm283_vm0, %v462_v61  ;;  %v4597_v35 = vrot.slane %v483_v9, %v487_v18 }
 0x15e   : > { %661 = vmatprep.mubr.f32.mxu1 %v4294_v56  ;;  %v4077_v4 = vpop.eup %4076 }
 0x15f   : > { %v466_v17 = vmul.f32 %v4077_v4, %v4506_v36 }
 0x161   : > { %3453 = vmatmul.mubr.msk.f32.gmra.mxu1 %vm283_vm0, %v463_v51 }
 0x162   : > { %667 = vmatprep.mubr.f32.mxu1 %v4294_v56 }
 0x165   : > { %3454 = vmatmul.mubr.msk.f32.gmra.mxu1 %vm283_vm0, %v464_v3 }
 0x166   : > { %673 = vmatprep.mubr.f32.mxu1 %v4294_v56 }
 0x169   : > { %3455 = vmatmul.mubr.msk.f32.gmra.mxu1 %vm283_vm0, %v465_v7 }
 0x16a   : > { %679 = vmatprep.mubr.f32.mxu1 %v4294_v56  ;;  %v4599_v56 = vrot.slane %v483_v9, %v491_v10 }
 0x16d   : > { %3456 = vmatmul.mubr.msk.f32.gmra.mxu1 %vm283_vm0, %v466_v17 }
 0x205   : > { %v603_v36 = vpop.f32.mrf.mxu0 }
 0x206   : > { %v4602_v11 = vadd.f32 %v603_v36, %v4597_v35 }
 0x207   : > { %v605_v12 = vpop.f32.mrf.mxu0 }
 0x208   : > { %687 = vst.msk [vmem:[%s4605_s18] sm:$0xff] %vm686_vm1, %v4602_v11  ;;  %v4611_v13 = vadd.f32 %v605_v12, %v4599_v56  ;;  %715 = vrot.lane.b32.xlu0 %v4602_v11, %s4295_s8 }
 0x209   : > { %v609_v14 = vpop.f32.mrf.mxu0 }
 0x20a   : > { %1569 = vst.msk [vmem:[%s4616_s9] sm:$0xff] %vm686_vm1, %v4611_v13  ;;  %v4622_v15 = vadd.f32 %v609_v14, %v4597_v35 }
 0x20b   : > { %v611_v16 = vpop.f32.mrf.mxu0 }
 0x20c   : > { %688 = vst.msk [vmem:[%s4605_s18 + $0x8] sm:$0xff] %vm686_vm1, %v4622_v15  ;;  %v4628_v19 = vadd.f32 %v611_v16, %v4599_v56  ;;  %772 = vrot.lane.b32.xlu0 %v4602_v11, %s4296_s10 }
 0x20d   : > { %v615_v22 = vpop.f32.mrf.mxu0 }
 0x20e   : > { %1570 = vst.msk [vmem:[%s4616_s9 + $0x8] sm:$0xff] %vm686_vm1, %v4628_v19  ;;  %v4636_v23 = vadd.f32 %v615_v22, %v4597_v35 }
 0x20f   : > { %v617_v26 = vpop.f32.mrf.mxu0 }
 0x210   : > { %689 = vst.msk [vmem:[%s4605_s18 + $0x10] sm:$0xff] %vm686_vm1, %v4636_v23  ;;  %v4642_v27 = vadd.f32 %v617_v26, %v4599_v56  ;;  %829 = vrot.lane.b32.xlu0 %v4602_v11, %s4297_s11 }
 0x211   : > { %v621_v20 = vpop.f32.mrf.mxu0 }
 0x212   : > { %1571 = vst.msk [vmem:[%s4616_s9 + $0x10] sm:$0xff] %vm686_vm1, %v4642_v27  ;;  %v4650_v21 = vadd.f32 %v621_v20, %v4597_v35 }
 0x213   : > { %v623_v28 = vpop.f32.mrf.mxu0 }
 0x214   : > { %690 = vst.msk [vmem:[%s4605_s18 + $0x18] sm:$0xff] %vm686_vm1, %v4650_v21  ;;  %v4656_v29 = vadd.f32 %v623_v28, %v4599_v56  ;;  %886 = vrot.lane.b32.xlu0 %v4602_v11, %s4298_s12 }
 0x215   : > { %v627_v30 = vpop.f32.mrf.mxu0  ;;  %v645_v31 = vpop.f32.mrf.mxu1 }
 0x216   : > { %1572 = vst.msk [vmem:[%s4616_s9 + $0x18] sm:$0xff] %vm686_vm1, %v4656_v29  ;;  %v4664_v34 = vadd.f32 %v627_v30, %v4597_v35  ;;  %v4667_v37 = vadd.f32 %v645_v31, %v4597_v35 }
 0x217   : > { %v629_v38 = vpop.f32.mrf.mxu0  ;;  %v647_v39 = vpop.f32.mrf.mxu1 }
 0x218   : > { %691 = vst.msk [vmem:[%s4605_s18 + $0x20] sm:$0xff] %vm686_vm1, %v4664_v34  ;;  %694 = vst.msk [vmem:[%s4605_s18 + $0x38] sm:$0xff] %vm686_vm1, %v4667_v37  ;;  %v4676_v24 = vadd.f32 %v629_v38, %v4599_v56  ;;  %v4679_v25 = vadd.f32 %v647_v39, %v4599_v56  ;;  %729 = vrot.lane.b32.xlu1 %v4667_v37, %s4295_s8  ;;  %943 = vrot.lane.b32.xlu0 %v4602_v11, %s4299_s13 }
 0x219   : > { %v633_v42 = vpop.f32.mrf.mxu0  ;;  %v651_v32 = vpop.f32.mrf.mxu1 }
 0x21a   : > { %1573 = vst.msk [vmem:[%s4616_s9 + $0x20] sm:$0xff] %vm686_vm1, %v4676_v24  ;;  %1576 = vst.msk [vmem:[%s4616_s9 + $0x38] sm:$0xff] %vm686_vm1, %v4679_v25  ;;  %v4692_v43 = vadd.f32 %v633_v42, %v4597_v35  ;;  %v4695_v44 = vadd.f32 %v651_v32, %v4597_v35 }
 0x21b   : > { %v635_v45 = vpop.f32.mrf.mxu0  ;;  %v653_v46 = vpop.f32.mrf.mxu1 }
 0x21c   : > { %692 = vst.msk [vmem:[%s4605_s18 + $0x28] sm:$0xff] %vm686_vm1, %v4692_v43  ;;  %695 = vst.msk [vmem:[%s4605_s18 + $0x40] sm:$0xff] %vm686_vm1, %v4695_v44  ;;  %v4704_v47 = vadd.f32 %v635_v45, %v4599_v56  ;;  %v4707_v40 = vadd.f32 %v653_v46, %v4599_v56  ;;  %786 = vrot.lane.b32.xlu1 %v4667_v37, %s4296_s10  ;;  %1000 = vrot.lane.b32.xlu0 %v4602_v11, %s4300_s14 }
 0x21d   : > { %v639_v48 = vpop.f32.mrf.mxu0  ;;  %v657_v49 = vpop.f32.mrf.mxu1 }
 0x21e   : > { %1574 = vst.msk [vmem:[%s4616_s9 + $0x28] sm:$0xff] %vm686_vm1, %v4704_v47  ;;  %1577 = vst.msk [vmem:[%s4616_s9 + $0x40] sm:$0xff] %vm686_vm1, %v4707_v40  ;;  %v4720_v52 = vadd.f32 %v639_v48, %v4597_v35  ;;  %v4723_v53 = vadd.f32 %v657_v49, %v4597_v35 }
 0x21f   : > { %v641_v54 = vpop.f32.mrf.mxu0  ;;  %v659_v55 = vpop.f32.mrf.mxu1 }
 0x220   : > { %693 = vst.msk [vmem:[%s4605_s18 + $0x30] sm:$0xff] %vm686_vm1, %v4720_v52  ;;  %696 = vst.msk [vmem:[%s4605_s18 + $0x48] sm:$0xff] %vm686_vm1, %v4723_v53  ;;  %v4732_v33 = vadd.f32 %v641_v54, %v4599_v56  ;;  %v4735_v57 = vadd.f32 %v659_v55, %v4599_v56  ;;  %843 = vrot.lane.b32.xlu1 %v4667_v37, %s4297_s11  ;;  %1057 = vrot.lane.b32.xlu0 %v4602_v11, %s4301_s15 }
 0x221   : > { %v663_v58 = vpop.f32.mrf.mxu1 }
 0x222   : > { %1575 = vst.msk [vmem:[%s4616_s9 + $0x30] sm:$0xff] %vm686_vm1, %v4732_v33  ;;  %1578 = vst.msk [vmem:[%s4616_s9 + $0x48] sm:$0xff] %vm686_vm1, %v4735_v57  ;;  %v4748_v59 = vadd.f32 %v663_v58, %v4597_v35 }
 0x223   : > { %v665_v41 = vpop.f32.mrf.mxu1 }
 0x224   : > { %697 = vst.msk [vmem:[%s4605_s18 + $0x50] sm:$0xff] %vm686_vm1, %v4748_v59  ;;  %v4754_v62 = vadd.f32 %v665_v41, %v4599_v56  ;;  %900 = vrot.lane.b32.xlu1 %v4667_v37, %s4298_s12  ;;  %1114 = vrot.lane.b32.xlu0 %v4602_v11, %s4302_s16 }
 0x225   : > { %v669_v63 = vpop.f32.mrf.mxu1 }
 0x226   : > { %1579 = vst.msk [vmem:[%s4616_s9 + $0x50] sm:$0xff] %vm686_vm1, %v4754_v62  ;;  %v4764_v0 = vadd.f32 %v669_v63, %v4597_v35 }
 0x227   : > { %v671_v1 = vpop.f32.mrf.mxu1 }
 0x228   : > { %698 = vst.msk [vmem:[%s4605_s18 + $0x58] sm:$0xff] %vm686_vm1, %v4764_v0  ;;  %v4770_v50 = vadd.f32 %v671_v1, %v4599_v56  ;;  %957 = vrot.lane.b32.xlu1 %v4667_v37, %s4299_s13  ;;  %1170 = vrot.lane.b32.xlu0 %v4602_v11, %s4303_s17 }
 0x229   : > { %v675_v61 = vpop.f32.mrf.mxu1 }
 0x22a   : > { %1580 = vst.msk [vmem:[%s4616_s9 + $0x58] sm:$0xff] %vm686_vm1, %v4770_v50  ;;  %v4780_v2 = vadd.f32 %v675_v61, %v4597_v35 }
 0x22b   : > { %v677_v51 = vpop.f32.mrf.mxu1 }
 0x22c   : > { %699 = vst.msk [vmem:[%s4605_s18 + $0x60] sm:$0xff] %vm686_vm1, %v4780_v2  ;;  %v4786_v6 = vadd.f32 %v677_v51, %v4599_v56  ;;  %1014 = vrot.lane.b32.xlu1 %v4667_v37, %s4300_s14  ;;  %1227 = vrot.lane.b32.xlu0 %v4602_v11, %s4304_s20 }
 0x22d   : > { %v681_v3 = vpop.f32.mrf.mxu1 }
 0x22e   : > { %1581 = vst.msk [vmem:[%s4616_s9 + $0x60] sm:$0xff] %vm686_vm1, %v4786_v6  ;;  %v4796_v60 = vadd.f32 %v681_v3, %v4597_v35 }
 0x22f   : > { %v683_v7 = vpop.f32.mrf.mxu1 }
 0x230   : > { %700 = vst.msk [vmem:[%s4605_s18 + $0x68] sm:$0xff] %vm686_vm1, %v4796_v60  ;;  %v4802_v4 = vadd.f32 %v683_v7, %v4599_v56  ;;  %1071 = vrot.lane.b32.xlu1 %v4667_v37, %s4301_s15  ;;  %1284 = vrot.lane.b32.xlu0 %v4602_v11, %s4305_s23 }
 0x232   : > { %1582 = vst.msk [vmem:[%s4616_s9 + $0x68] sm:$0xff] %vm686_vm1, %v4802_v4 }
 0x234   : > { %1128 = vrot.lane.b32.xlu1 %v4667_v37, %s4302_s16  ;;  %1341 = vrot.lane.b32.xlu0 %v4602_v11, %s4306_s24 }
 0x238   : > { %1184 = vrot.lane.b32.xlu1 %v4667_v37, %s4303_s17  ;;  %1398 = vrot.lane.b32.xlu0 %v4602_v11, %s4307_s28 }
 0x23c   : > { %1241 = vrot.lane.b32.xlu1 %v4667_v37, %s4304_s20  ;;  %1455 = vrot.lane.b32.xlu0 %v4602_v11, %s4308_s29 }
 0x240   : > { %1298 = vrot.lane.b32.xlu1 %v4667_v37, %s4305_s23  ;;  %1512 = vrot.lane.b32.xlu0 %v4602_v11, %s4309_s30 }
 0x244   : > { %1355 = vrot.lane.b32.xlu1 %v4667_v37, %s4306_s24  ;;  %1597 = vrot.lane.b32.xlu0 %v4611_v13, %s4295_s8 }
 0x248   : > { %1412 = vrot.lane.b32.xlu1 %v4667_v37, %s4307_s28  ;;  %1654 = vrot.lane.b32.xlu0 %v4611_v13, %s4296_s10 }
 0x24c   : > { %1469 = vrot.lane.b32.xlu1 %v4667_v37, %s4308_s29  ;;  %731 = vrot.lane.b32.xlu0 %v4695_v44, %s4295_s8 }
 0x250   : > { %1526 = vrot.lane.b32.xlu1 %v4667_v37, %s4309_s30  ;;  %788 = vrot.lane.b32.xlu0 %v4695_v44, %s4296_s10 }
 0x254   : > { %1611 = vrot.lane.b32.xlu1 %v4679_v25, %s4295_s8  ;;  %845 = vrot.lane.b32.xlu0 %v4695_v44, %s4297_s11 }
 0x258   : > { %1668 = vrot.lane.b32.xlu1 %v4679_v25, %s4296_s10  ;;  %902 = vrot.lane.b32.xlu0 %v4695_v44, %s4298_s12 }
 0x25c   : > { %717 = vrot.lane.b32.xlu1 %v4622_v15, %s4295_s8  ;;  %959 = vrot.lane.b32.xlu0 %v4695_v44, %s4299_s13 }
 0x260   : > { %774 = vrot.lane.b32.xlu1 %v4622_v15, %s4296_s10  ;;  %1016 = vrot.lane.b32.xlu0 %v4695_v44, %s4300_s14 }
 0x264   : > { %831 = vrot.lane.b32.xlu1 %v4622_v15, %s4297_s11  ;;  %1073 = vrot.lane.b32.xlu0 %v4695_v44, %s4301_s15 }
 0x268   : > { %888 = vrot.lane.b32.xlu1 %v4622_v15, %s4298_s12  ;;  %1130 = vrot.lane.b32.xlu0 %v4695_v44, %s4302_s16 }
 0x26c   : > { %945 = vrot.lane.b32.xlu1 %v4622_v15, %s4299_s13  ;;  %1186 = vrot.lane.b32.xlu0 %v4695_v44, %s4303_s17 }
 0x270   : > { %1002 = vrot.lane.b32.xlu1 %v4622_v15, %s4300_s14  ;;  %1243 = vrot.lane.b32.xlu0 %v4695_v44, %s4304_s20 }
 0x274   : > { %1059 = vrot.lane.b32.xlu1 %v4622_v15, %s4301_s15  ;;  %1300 = vrot.lane.b32.xlu0 %v4695_v44, %s4305_s23 }
 0x278   : > { %1116 = vrot.lane.b32.xlu1 %v4622_v15, %s4302_s16  ;;  %1357 = vrot.lane.b32.xlu0 %v4695_v44, %s4306_s24 }
 0x27a   : > { %v716_v17 = vpop.permute.xlu0 %715 }
 0x27b   : > { %3457 = vst.msk [vmem:[%s4605_s18 + $0x70] sm:$0xff] %vm686_vm1, %v716_v17 }
 0x27c   : > { %1172 = vrot.lane.b32.xlu1 %v4622_v15, %s4303_s17  ;;  %1414 = vrot.lane.b32.xlu0 %v4695_v44, %s4307_s28 }
 0x27e   : > { %v773_v5 = vpop.permute.xlu0 %772 }
 0x27f   : > { %3471 = vst.msk [vmem:[%s4605_s18 + $0xe0] sm:$0xff] %vm686_vm1, %v773_v5 }
 0x280   : > { %1229 = vrot.lane.b32.xlu1 %v4622_v15, %s4304_s20  ;;  %1471 = vrot.lane.b32.xlu0 %v4695_v44, %s4308_s29 }
 0x282   : > { %v830_v8 = vpop.permute.xlu0 %829 }
 0x283   : > { %3485 = vst.msk [vmem:[%s4605_s18 + $0x150] sm:$0xff] %vm686_vm1, %v830_v8 }
 0x284   : > { %1286 = vrot.lane.b32.xlu1 %v4622_v15, %s4305_s23  ;;  %1528 = vrot.lane.b32.xlu0 %v4695_v44, %s4309_s30 }
 0x286   : > { %v887_v18 = vpop.permute.xlu0 %886 }
 0x287   : > { %3499 = vst.msk [vmem:[%s4605_s18 + $0x1c0] sm:$0xff] %vm686_vm1, %v887_v18 }
 0x288   : > { %1343 = vrot.lane.b32.xlu1 %v4622_v15, %s4306_s24  ;;  %1613 = vrot.lane.b32.xlu0 %v4707_v40, %s4295_s8 }
 0x28a   : > { %v730_v9 = vpop.permute.xlu1 %729  ;;  %v944_v10 = vpop.permute.xlu0 %943 }
 0x28b   : > { %3464 = vst.msk [vmem:[%s4605_s18 + $0xa8] sm:$0xff] %vm686_vm1, %v730_v9  ;;  %3513 = vst.msk [vmem:[%s4605_s18 + $0x230] sm:$0xff] %vm686_vm1, %v944_v10 }
 0x28c   : > { %1400 = vrot.lane.b32.xlu1 %v4622_v15, %s4307_s28  ;;  %1670 = vrot.lane.b32.xlu0 %v4707_v40, %s4296_s10 }
 0x28e   : > { %v787_v35 = vpop.permute.xlu1 %786  ;;  %v1001_v56 = vpop.permute.xlu0 %1000 }
 0x28f   : > { %3478 = vst.msk [vmem:[%s4605_s18 + $0x118] sm:$0xff] %vm686_vm1, %v787_v35  ;;  %3527 = vst.msk [vmem:[%s4605_s18 + $0x2a0] sm:$0xff] %vm686_vm1, %v1001_v56 }
 0x290   : > { %1457 = vrot.lane.b32.xlu1 %v4622_v15, %s4308_s29  ;;  %776 = vrot.lane.b32.xlu0 %v4636_v23, %s4296_s10 }
 0x292   : > { %v844_v36 = vpop.permute.xlu1 %843  ;;  %v1058_v11 = vpop.permute.xlu0 %1057 }
 0x293   : > { %3492 = vst.msk [vmem:[%s4605_s18 + $0x188] sm:$0xff] %vm686_vm1, %v844_v36  ;;  %3541 = vst.msk [vmem:[%s4605_s18 + $0x310] sm:$0xff] %vm686_vm1, %v1058_v11 }
 0x294   : > { %1514 = vrot.lane.b32.xlu1 %v4622_v15, %s4309_s30  ;;  %833 = vrot.lane.b32.xlu0 %v4636_v23, %s4297_s11 }
 0x296   : > { %v901_v12 = vpop.permute.xlu1 %900  ;;  %v1115_v14 = vpop.permute.xlu0 %1114 }
 0x297   : > { %3506 = vst.msk [vmem:[%s4605_s18 + $0x1f8] sm:$0xff] %vm686_vm1, %v901_v12  ;;  %1156 = vst.msk [vmem:[%s4934_s6] sm:$0xff] %vm686_vm1, %v1115_v14 }
 0x298   : > { %1599 = vrot.lane.b32.xlu1 %v4628_v19, %s4295_s8  ;;  %890 = vrot.lane.b32.xlu0 %v4636_v23, %s4298_s12 }
 0x29a   : > { %v958_v15 = vpop.permute.xlu1 %957  ;;  %v1171_v16 = vpop.permute.xlu0 %1170 }
 0x29b   : > { %3520 = vst.msk [vmem:[%s4605_s18 + $0x268] sm:$0xff] %vm686_vm1, %v958_v15  ;;  %3555 = vst.msk [vmem:[%s4934_s6 + $0x70] sm:$0xff] %vm686_vm1, %v1171_v16 }
 0x29c   : > { %1656 = vrot.lane.b32.xlu1 %v4628_v19, %s4296_s10  ;;  %947 = vrot.lane.b32.xlu0 %v4636_v23, %s4299_s13 }
 0x29e   : > { %v1015_v22 = vpop.permute.xlu1 %1014  ;;  %v1228_v26 = vpop.permute.xlu0 %1227 }
 0x29f   : > { %3534 = vst.msk [vmem:[%s4605_s18 + $0x2d8] sm:$0xff] %vm686_vm1, %v1015_v22  ;;  %3569 = vst.msk [vmem:[%s4934_s6 + $0xe0] sm:$0xff] %vm686_vm1, %v1228_v26 }
 0x2a0   : > { %719 = vrot.lane.b32.xlu1 %v4636_v23, %s4295_s8  ;;  %1004 = vrot.lane.b32.xlu0 %v4636_v23, %s4300_s14 }
 0x2a2   : > { %v1072_v20 = vpop.permute.xlu1 %1071  ;;  %v1285_v28 = vpop.permute.xlu0 %1284 }
 0x2a3   : > { %3548 = vst.msk [vmem:[%s4605_s18 + $0x348] sm:$0xff] %vm686_vm1, %v1072_v20  ;;  %3583 = vst.msk [vmem:[%s4934_s6 + $0x150] sm:$0xff] %vm686_vm1, %v1285_v28 }
 0x2a4   : > { %733 = vrot.lane.b32.xlu1 %v4723_v53, %s4295_s8  ;;  %1061 = vrot.lane.b32.xlu0 %v4636_v23, %s4301_s15 }
 0x2a6   : > { %v1129_v30 = vpop.permute.xlu1 %1128  ;;  %v1342_v31 = vpop.permute.xlu0 %1341 }
 0x2a7   : > { %1163 = vst.msk [vmem:[%s4934_s6 + $0x38] sm:$0xff] %vm686_vm1, %v1129_v30  ;;  %3597 = vst.msk [vmem:[%s4934_s6 + $0x1c0] sm:$0xff] %vm686_vm1, %v1342_v31 }
 0x2a8   : > { %790 = vrot.lane.b32.xlu1 %v4723_v53, %s4296_s10  ;;  %1118 = vrot.lane.b32.xlu0 %v4636_v23, %s4302_s16 }
 0x2aa   : > { %v1185_v37 = vpop.permute.xlu1 %1184  ;;  %v1399_v38 = vpop.permute.xlu0 %1398 }
 0x2ab   : > { %3562 = vst.msk [vmem:[%s4934_s6 + $0xa8] sm:$0xff] %vm686_vm1, %v1185_v37  ;;  %3611 = vst.msk [vmem:[%s4934_s6 + $0x230] sm:$0xff] %vm686_vm1, %v1399_v38 }
 0x2ac   : > { %847 = vrot.lane.b32.xlu1 %v4723_v53, %s4297_s11  ;;  %1174 = vrot.lane.b32.xlu0 %v4636_v23, %s4303_s17 }
 0x2ae   : > { %v1242_v39 = vpop.permute.xlu1 %1241  ;;  %v1456_v42 = vpop.permute.xlu0 %1455 }
 0x2af   : > { %3576 = vst.msk [vmem:[%s4934_s6 + $0x118] sm:$0xff] %vm686_vm1, %v1242_v39  ;;  %3625 = vst.msk [vmem:[%s4934_s6 + $0x2a0] sm:$0xff] %vm686_vm1, %v1456_v42 }
 0x2b0   : > { %904 = vrot.lane.b32.xlu1 %v4723_v53, %s4298_s12  ;;  %1231 = vrot.lane.b32.xlu0 %v4636_v23, %s4304_s20 }
 0x2b2   : > { %v1299_v32 = vpop.permute.xlu1 %1298  ;;  %v1513_v44 = vpop.permute.xlu0 %1512 }
 0x2b3   : > { %3590 = vst.msk [vmem:[%s4934_s6 + $0x188] sm:$0xff] %vm686_vm1, %v1299_v32  ;;  %3639 = vst.msk [vmem:[%s4934_s6 + $0x310] sm:$0xff] %vm686_vm1, %v1513_v44 }
 0x2b4   : > { %961 = vrot.lane.b32.xlu1 %v4723_v53, %s4299_s13  ;;  %1288 = vrot.lane.b32.xlu0 %v4636_v23, %s4305_s23 }
 0x2b6   : > { %v1356_v45 = vpop.permute.xlu1 %1355  ;;  %v1598_v46 = vpop.permute.xlu0 %1597 }
 0x2b7   : > { %3604 = vst.msk [vmem:[%s4934_s6 + $0x1f8] sm:$0xff] %vm686_vm1, %v1356_v45  ;;  %3653 = vst.msk [vmem:[%s4616_s9 + $0x70] sm:$0xff] %vm686_vm1, %v1598_v46 }
 0x2b8   : > { %1018 = vrot.lane.b32.xlu1 %v4723_v53, %s4300_s14  ;;  %1345 = vrot.lane.b32.xlu0 %v4636_v23, %s4306_s24 }
 0x2ba   : > { %v1413_v48 = vpop.permute.xlu1 %1412  ;;  %v1655_v49 = vpop.permute.xlu0 %1654 }
 0x2bb   : > { %3618 = vst.msk [vmem:[%s4934_s6 + $0x268] sm:$0xff] %vm686_vm1, %v1413_v48  ;;  %3667 = vst.msk [vmem:[%s4616_s9 + $0xe0] sm:$0xff] %vm686_vm1, %v1655_v49 }
 0x2bc   : > { %1075 = vrot.lane.b32.xlu1 %v4723_v53, %s4301_s15  ;;  %1402 = vrot.lane.b32.xlu0 %v4636_v23, %s4307_s28 }
 0x2be   : > { %v1470_v54 = vpop.permute.xlu1 %1469  ;;  %v732_v55 = vpop.permute.xlu0 %731 }
 0x2bf   : > { %3632 = vst.msk [vmem:[%s4934_s6 + $0x2d8] sm:$0xff] %vm686_vm1, %v1470_v54  ;;  %3465 = vst.msk [vmem:[%s4605_s18 + $0xb0] sm:$0xff] %vm686_vm1, %v732_v55 }
 0x2c0   : > { %1132 = vrot.lane.b32.xlu1 %v4723_v53, %s4302_s16  ;;  %1459 = vrot.lane.b32.xlu0 %v4636_v23, %s4308_s29 }
 0x2c2   : > { %v1527_v58 = vpop.permute.xlu1 %1526  ;;  %v789_v41 = vpop.permute.xlu0 %788 }
 0x2c3   : > { %3646 = vst.msk [vmem:[%s4934_s6 + $0x348] sm:$0xff] %vm686_vm1, %v1527_v58  ;;  %3479 = vst.msk [vmem:[%s4605_s18 + $0x120] sm:$0xff] %vm686_vm1, %v789_v41 }
 0x2c4   : > { %1188 = vrot.lane.b32.xlu1 %v4723_v53, %s4303_s17  ;;  %1516 = vrot.lane.b32.xlu0 %v4636_v23, %s4309_s30 }
 0x2c6   : > { %v1612_v63 = vpop.permute.xlu1 %1611  ;;  %v846_v1 = vpop.permute.xlu0 %845 }
 0x2c7   : > { %3660 = vst.msk [vmem:[%s4616_s9 + $0xa8] sm:$0xff] %vm686_vm1, %v1612_v63  ;;  %3493 = vst.msk [vmem:[%s4605_s18 + $0x190] sm:$0xff] %vm686_vm1, %v846_v1 }
 0x2c8   : > { %1245 = vrot.lane.b32.xlu1 %v4723_v53, %s4304_s20  ;;  %1601 = vrot.lane.b32.xlu0 %v4642_v27, %s4295_s8 }
 0x2ca   : > { %v1669_v61 = vpop.permute.xlu1 %1668  ;;  %v903_v51 = vpop.permute.xlu0 %902 }
 0x2cb   : > { %3674 = vst.msk [vmem:[%s4616_s9 + $0x118] sm:$0xff] %vm686_vm1, %v1669_v61  ;;  %3507 = vst.msk [vmem:[%s4605_s18 + $0x200] sm:$0xff] %vm686_vm1, %v903_v51 }
 0x2cc   : > { %1302 = vrot.lane.b32.xlu1 %v4723_v53, %s4305_s23  ;;  %1658 = vrot.lane.b32.xlu0 %v4642_v27, %s4296_s10 }
 0x2ce   : > { %v718_v23 = vpop.permute.xlu1 %717  ;;  %v960_v3 = vpop.permute.xlu0 %959 }
 0x2cf   : > { %3458 = vst.msk [vmem:[%s4605_s18 + $0x78] sm:$0xff] %vm686_vm1, %v718_v23  ;;  %3521 = vst.msk [vmem:[%s4605_s18 + $0x270] sm:$0xff] %vm686_vm1, %v960_v3 }
 0x2d0   : > { %1359 = vrot.lane.b32.xlu1 %v4723_v53, %s4306_s24  ;;  %735 = vrot.lane.b32.xlu0 %v4748_v59, %s4295_s8 }
 0x2d2   : > { %v775_v7 = vpop.permute.xlu1 %774  ;;  %v1017_v17 = vpop.permute.xlu0 %1016 }
 0x2d3   : > { %3472 = vst.msk [vmem:[%s4605_s18 + $0xe8] sm:$0xff] %vm686_vm1, %v775_v7  ;;  %3535 = vst.msk [vmem:[%s4605_s18 + $0x2e0] sm:$0xff] %vm686_vm1, %v1017_v17 }
 0x2d4   : > { %1416 = vrot.lane.b32.xlu1 %v4723_v53, %s4307_s28  ;;  %792 = vrot.lane.b32.xlu0 %v4748_v59, %s4296_s10 }
 0x2d6   : > { %v832_v5 = vpop.permute.xlu1 %831  ;;  %v1074_v8 = vpop.permute.xlu0 %1073 }
 0x2d7   : > { %3486 = vst.msk [vmem:[%s4605_s18 + $0x158] sm:$0xff] %vm686_vm1, %v832_v5  ;;  %3549 = vst.msk [vmem:[%s4605_s18 + $0x350] sm:$0xff] %vm686_vm1, %v1074_v8 }
 0x2d8   : > { %1473 = vrot.lane.b32.xlu1 %v4723_v53, %s4308_s29  ;;  %849 = vrot.lane.b32.xlu0 %v4748_v59, %s4297_s11 }
 0x2da   : > { %v889_v18 = vpop.permute.xlu1 %888  ;;  %v1131_v9 = vpop.permute.xlu0 %1130 }
 0x2db   : > { %3500 = vst.msk [vmem:[%s4605_s18 + $0x1c8] sm:$0xff] %vm686_vm1, %v889_v18  ;;  %1164 = vst.msk [vmem:[%s4934_s6 + $0x40] sm:$0xff] %vm686_vm1, %v1131_v9 }
 0x2dc   : > { %1530 = vrot.lane.b32.xlu1 %v4723_v53, %s4309_s30  ;;  %906 = vrot.lane.b32.xlu0 %v4748_v59, %s4298_s12 }
 0x2de   : > { %v946_v10 = vpop.permute.xlu1 %945  ;;  %v1187_v35 = vpop.permute.xlu0 %1186 }
 0x2df   : > { %3514 = vst.msk [vmem:[%s4605_s18 + $0x238] sm:$0xff] %vm686_vm1, %v946_v10  ;;  %3563 = vst.msk [vmem:[%s4934_s6 + $0xb0] sm:$0xff] %vm686_vm1, %v1187_v35 }
 0x2e0   : > { %1615 = vrot.lane.b32.xlu1 %v4735_v57, %s4295_s8  ;;  %963 = vrot.lane.b32.xlu0 %v4748_v59, %s4299_s13 }
 0x2e2   : > { %v1003_v53 = vpop.permute.xlu1 %1002  ;;  %v1244_v56 = vpop.permute.xlu0 %1243 }
 0x2e3   : > { %3528 = vst.msk [vmem:[%s4605_s18 + $0x2a8] sm:$0xff] %vm686_vm1, %v1003_v53  ;;  %3577 = vst.msk [vmem:[%s4934_s6 + $0x120] sm:$0xff] %vm686_vm1, %v1244_v56 }
 0x2e4   : > { %721 = vrot.lane.b32.xlu1 %v4650_v21, %s4295_s8  ;;  %1020 = vrot.lane.b32.xlu0 %v4748_v59, %s4300_s14 }
 0x2e6   : > { %v1060_v36 = vpop.permute.xlu1 %1059  ;;  %v1301_v11 = vpop.permute.xlu0 %1300 }
 0x2e7   : > { %3542 = vst.msk [vmem:[%s4605_s18 + $0x318] sm:$0xff] %vm686_vm1, %v1060_v36  ;;  %3591 = vst.msk [vmem:[%s4934_s6 + $0x190] sm:$0xff] %vm686_vm1, %v1301_v11 }
 0x2e8   : > { %778 = vrot.lane.b32.xlu1 %v4650_v21, %s4296_s10  ;;  %1077 = vrot.lane.b32.xlu0 %v4748_v59, %s4301_s15 }
 0x2ea   : > { %v1117_v12 = vpop.permute.xlu1 %1116  ;;  %v1358_v14 = vpop.permute.xlu0 %1357 }
 0x2eb   : > { %1157 = vst.msk [vmem:[%s4934_s6 + $0x8] sm:$0xff] %vm686_vm1, %v1117_v12  ;;  %3605 = vst.msk [vmem:[%s4934_s6 + $0x200] sm:$0xff] %vm686_vm1, %v1358_v14 }
 0x2ec   : > { %835 = vrot.lane.b32.xlu1 %v4650_v21, %s4297_s11  ;;  %1134 = vrot.lane.b32.xlu0 %v4748_v59, %s4302_s16 }
 0x2ee   : > { %v1173_v15 = vpop.permute.xlu1 %1172  ;;  %v1415_v16 = vpop.permute.xlu0 %1414 }
 0x2ef   : > { %3556 = vst.msk [vmem:[%s4934_s6 + $0x78] sm:$0xff] %vm686_vm1, %v1173_v15  ;;  %3619 = vst.msk [vmem:[%s4934_s6 + $0x270] sm:$0xff] %vm686_vm1, %v1415_v16 }
 0x2f0   : > { %892 = vrot.lane.b32.xlu1 %v4650_v21, %s4298_s12  ;;  %1190 = vrot.lane.b32.xlu0 %v4748_v59, %s4303_s17 }
 0x2f2   : > { %v1230_v22 = vpop.permute.xlu1 %1229  ;;  %v1472_v26 = vpop.permute.xlu0 %1471 }
 0x2f3   : > { %3570 = vst.msk [vmem:[%s4934_s6 + $0xe8] sm:$0xff] %vm686_vm1, %v1230_v22  ;;  %3633 = vst.msk [vmem:[%s4934_s6 + $0x2e0] sm:$0xff] %vm686_vm1, %v1472_v26 }
 0x2f4   : > { %949 = vrot.lane.b32.xlu1 %v4650_v21, %s4299_s13  ;;  %1247 = vrot.lane.b32.xlu0 %v4748_v59, %s4304_s20 }
 0x2f6   : > { %v1287_v20 = vpop.permute.xlu1 %1286  ;;  %v1529_v28 = vpop.permute.xlu0 %1528 }
 0x2f7   : > { %3584 = vst.msk [vmem:[%s4934_s6 + $0x158] sm:$0xff] %vm686_vm1, %v1287_v20  ;;  %3647 = vst.msk [vmem:[%s4934_s6 + $0x350] sm:$0xff] %vm686_vm1, %v1529_v28 }
 0x2f8   : > { %1006 = vrot.lane.b32.xlu1 %v4650_v21, %s4300_s14  ;;  %1304 = vrot.lane.b32.xlu0 %v4748_v59, %s4305_s23 }
 0x2fa   : > { %v1344_v30 = vpop.permute.xlu1 %1343  ;;  %v1614_v31 = vpop.permute.xlu0 %1613 }
 0x2fb   : > { %3598 = vst.msk [vmem:[%s4934_s6 + $0x1c8] sm:$0xff] %vm686_vm1, %v1344_v30  ;;  %3661 = vst.msk [vmem:[%s4616_s9 + $0xb0] sm:$0xff] %vm686_vm1, %v1614_v31 }
 0x2fc   : > { %1063 = vrot.lane.b32.xlu1 %v4650_v21, %s4301_s15  ;;  %1361 = vrot.lane.b32.xlu0 %v4748_v59, %s4306_s24 }
 0x2fe   : > { %v1401_v37 = vpop.permute.xlu1 %1400  ;;  %v1671_v38 = vpop.permute.xlu0 %1670 }
 0x2ff   : > { %3612 = vst.msk [vmem:[%s4934_s6 + $0x238] sm:$0xff] %vm686_vm1, %v1401_v37  ;;  %3675 = vst.msk [vmem:[%s4616_s9 + $0x120] sm:$0xff] %vm686_vm1, %v1671_v38 }
 0x300   : > { %1120 = vrot.lane.b32.xlu1 %v4650_v21, %s4302_s16  ;;  %1418 = vrot.lane.b32.xlu0 %v4748_v59, %s4307_s28 }
 0x302   : > { %v1458_v39 = vpop.permute.xlu1 %1457  ;;  %v777_v42 = vpop.permute.xlu0 %776 }
 0x303   : > { %3626 = vst.msk [vmem:[%s4934_s6 + $0x2a8] sm:$0xff] %vm686_vm1, %v1458_v39  ;;  %3473 = vst.msk [vmem:[%s4605_s18 + $0xf0] sm:$0xff] %vm686_vm1, %v777_v42 }
 0x304   : > { %1176 = vrot.lane.b32.xlu1 %v4650_v21, %s4303_s17  ;;  %1475 = vrot.lane.b32.xlu0 %v4748_v59, %s4308_s29 }
 0x306   : > { %v1515_v32 = vpop.permute.xlu1 %1514  ;;  %v834_v44 = vpop.permute.xlu0 %833 }
 0x307   : > { %3640 = vst.msk [vmem:[%s4934_s6 + $0x318] sm:$0xff] %vm686_vm1, %v1515_v32  ;;  %3487 = vst.msk [vmem:[%s4605_s18 + $0x160] sm:$0xff] %vm686_vm1, %v834_v44 }
 0x308   : > { %1233 = vrot.lane.b32.xlu1 %v4650_v21, %s4304_s20  ;;  %1532 = vrot.lane.b32.xlu0 %v4748_v59, %s4309_s30 }
 0x30a   : > { %v1600_v45 = vpop.permute.xlu1 %1599  ;;  %v891_v46 = vpop.permute.xlu0 %890 }
 0x30b   : > { %3654 = vst.msk [vmem:[%s4616_s9 + $0x78] sm:$0xff] %vm686_vm1, %v1600_v45  ;;  %3501 = vst.msk [vmem:[%s4605_s18 + $0x1d0] sm:$0xff] %vm686_vm1, %v891_v46 }
 0x30c   : > { %1290 = vrot.lane.b32.xlu1 %v4650_v21, %s4305_s23  ;;  %1617 = vrot.lane.b32.xlu0 %v4754_v62, %s4295_s8 }
 0x30e   : > { %v1657_v48 = vpop.permute.xlu1 %1656  ;;  %v948_v49 = vpop.permute.xlu0 %947 }
 0x30f   : > { %3668 = vst.msk [vmem:[%s4616_s9 + $0xe8] sm:$0xff] %vm686_vm1, %v1657_v48  ;;  %3515 = vst.msk [vmem:[%s4605_s18 + $0x240] sm:$0xff] %vm686_vm1, %v948_v49 }
 0x310   : > { %1347 = vrot.lane.b32.xlu1 %v4650_v21, %s4306_s24  ;;  %723 = vrot.lane.b32.xlu0 %v4664_v34, %s4295_s8 }
 0x312   : > { %v720_v59 = vpop.permute.xlu1 %719  ;;  %v1005_v54 = vpop.permute.xlu0 %1004 }
 0x313   : > { %3459 = vst.msk [vmem:[%s4605_s18 + $0x80] sm:$0xff] %vm686_vm1, %v720_v59  ;;  %3529 = vst.msk [vmem:[%s4605_s18 + $0x2b0] sm:$0xff] %vm686_vm1, %v1005_v54 }
 0x314   : > { %1404 = vrot.lane.b32.xlu1 %v4650_v21, %s4307_s28  ;;  %780 = vrot.lane.b32.xlu0 %v4664_v34, %s4296_s10 }
 0x316   : > { %v734_v55 = vpop.permute.xlu1 %733  ;;  %v1062_v58 = vpop.permute.xlu0 %1061 }
 0x317   : > { %3466 = vst.msk [vmem:[%s4605_s18 + $0xb8] sm:$0xff] %vm686_vm1, %v734_v55  ;;  %3543 = vst.msk [vmem:[%s4605_s18 + $0x320] sm:$0xff] %vm686_vm1, %v1062_v58 }
 0x318   : > { %1461 = vrot.lane.b32.xlu1 %v4650_v21, %s4308_s29  ;;  %837 = vrot.lane.b32.xlu0 %v4664_v34, %s4297_s11 }
 0x31a   : > { %v791_v41 = vpop.permute.xlu1 %790  ;;  %v1119_v63 = vpop.permute.xlu0 %1118 }
 0x31b   : > { %3480 = vst.msk [vmem:[%s4605_s18 + $0x128] sm:$0xff] %vm686_vm1, %v791_v41  ;;  %1158 = vst.msk [vmem:[%s4934_s6 + $0x10] sm:$0xff] %vm686_vm1, %v1119_v63 }
 0x31c   : > { %1518 = vrot.lane.b32.xlu1 %v4650_v21, %s4309_s30  ;;  %894 = vrot.lane.b32.xlu0 %v4664_v34, %s4298_s12 }
 0x31e   : > { %v848_v1 = vpop.permute.xlu1 %847  ;;  %v1175_v61 = vpop.permute.xlu0 %1174 }
 0x31f   : > { %3494 = vst.msk [vmem:[%s4605_s18 + $0x198] sm:$0xff] %vm686_vm1, %v848_v1  ;;  %3557 = vst.msk [vmem:[%s4934_s6 + $0x80] sm:$0xff] %vm686_vm1, %v1175_v61 }
 0x320   : > { %1603 = vrot.lane.b32.xlu1 %v4656_v29, %s4295_s8  ;;  %951 = vrot.lane.b32.xlu0 %v4664_v34, %s4299_s13 }
 0x322   : > { %v905_v21 = vpop.permute.xlu1 %904  ;;  %v1232_v51 = vpop.permute.xlu0 %1231 }
 0x323   : > { %3508 = vst.msk [vmem:[%s4605_s18 + $0x208] sm:$0xff] %vm686_vm1, %v905_v21  ;;  %3571 = vst.msk [vmem:[%s4934_s6 + $0xf0] sm:$0xff] %vm686_vm1, %v1232_v51 }
 0x324   : > { %1660 = vrot.lane.b32.xlu1 %v4656_v29, %s4296_s10  ;;  %1008 = vrot.lane.b32.xlu0 %v4664_v34, %s4300_s14 }
 0x326   : > { %v962_v23 = vpop.permute.xlu1 %961  ;;  %v1289_v3 = vpop.permute.xlu0 %1288 }
 0x327   : > { %3522 = vst.msk [vmem:[%s4605_s18 + $0x278] sm:$0xff] %vm686_vm1, %v962_v23  ;;  %3585 = vst.msk [vmem:[%s4934_s6 + $0x160] sm:$0xff] %vm686_vm1, %v1289_v3 }
 0x328   : > { %737 = vrot.lane.b32.xlu1 %v4764_v0, %s4295_s8  ;;  %1065 = vrot.lane.b32.xlu0 %v4664_v34, %s4301_s15 }
 0x32a   : > { %v1019_v7 = vpop.permute.xlu1 %1018  ;;  %v1346_v17 = vpop.permute.xlu0 %1345 }
 0x32b   : > { %3536 = vst.msk [vmem:[%s4605_s18 + $0x2e8] sm:$0xff] %vm686_vm1, %v1019_v7  ;;  %3599 = vst.msk [vmem:[%s4934_s6 + $0x1d0] sm:$0xff] %vm686_vm1, %v1346_v17 }
 0x32c   : > { %794 = vrot.lane.b32.xlu1 %v4764_v0, %s4296_s10  ;;  %1122 = vrot.lane.b32.xlu0 %v4664_v34, %s4302_s16 }
 0x32e   : > { %v1076_v5 = vpop.permute.xlu1 %1075  ;;  %v1403_v8 = vpop.permute.xlu0 %1402 }
 0x32f   : > { %3550 = vst.msk [vmem:[%s4605_s18 + $0x358] sm:$0xff] %vm686_vm1, %v1076_v5  ;;  %3613 = vst.msk [vmem:[%s4934_s6 + $0x240] sm:$0xff] %vm686_vm1, %v1403_v8 }
 0x330   : > { %851 = vrot.lane.b32.xlu1 %v4764_v0, %s4297_s11  ;;  %1178 = vrot.lane.b32.xlu0 %v4664_v34, %s4303_s17 }
 0x332   : > { %v1133_v18 = vpop.permute.xlu1 %1132  ;;  %v1460_v9 = vpop.permute.xlu0 %1459 }
 0x333   : > { %1165 = vst.msk [vmem:[%s4934_s6 + $0x48] sm:$0xff] %vm686_vm1, %v1133_v18  ;;  %3627 = vst.msk [vmem:[%s4934_s6 + $0x2b0] sm:$0xff] %vm686_vm1, %v1460_v9 }
 0x334   : > { %908 = vrot.lane.b32.xlu1 %v4764_v0, %s4298_s12  ;;  %1235 = vrot.lane.b32.xlu0 %v4664_v34, %s4304_s20 }
 0x336   : > { %v1189_v10 = vpop.permute.xlu1 %1188  ;;  %v1517_v35 = vpop.permute.xlu0 %1516 }
 0x337   : > { %3564 = vst.msk [vmem:[%s4934_s6 + $0xb8] sm:$0xff] %vm686_vm1, %v1189_v10  ;;  %3641 = vst.msk [vmem:[%s4934_s6 + $0x320] sm:$0xff] %vm686_vm1, %v1517_v35 }
 0x338   : > { %965 = vrot.lane.b32.xlu1 %v4764_v0, %s4299_s13  ;;  %1292 = vrot.lane.b32.xlu0 %v4664_v34, %s4305_s23 }
 0x33a   : > { %v1246_v53 = vpop.permute.xlu1 %1245  ;;  %v1602_v56 = vpop.permute.xlu0 %1601 }
 0x33b   : > { %3578 = vst.msk [vmem:[%s4934_s6 + $0x128] sm:$0xff] %vm686_vm1, %v1246_v53  ;;  %3655 = vst.msk [vmem:[%s4616_s9 + $0x80] sm:$0xff] %vm686_vm1, %v1602_v56 }
 0x33c   : > { %1022 = vrot.lane.b32.xlu1 %v4764_v0, %s4300_s14  ;;  %1349 = vrot.lane.b32.xlu0 %v4664_v34, %s4306_s24 }
 0x33e   : > { %v1303_v36 = vpop.permute.xlu1 %1302  ;;  %v1659_v11 = vpop.permute.xlu0 %1658 }
 0x33f   : > { %3592 = vst.msk [vmem:[%s4934_s6 + $0x198] sm:$0xff] %vm686_vm1, %v1303_v36  ;;  %3669 = vst.msk [vmem:[%s4616_s9 + $0xf0] sm:$0xff] %vm686_vm1, %v1659_v11 }
 0x340   : > { %1079 = vrot.lane.b32.xlu1 %v4764_v0, %s4301_s15  ;;  %1406 = vrot.lane.b32.xlu0 %v4664_v34, %s4307_s28 }
 0x342   : > { %v1360_v12 = vpop.permute.xlu1 %1359  ;;  %v736_v14 = vpop.permute.xlu0 %735 }
 0x343   : > { %3606 = vst.msk [vmem:[%s4934_s6 + $0x208] sm:$0xff] %vm686_vm1, %v1360_v12  ;;  %3467 = vst.msk [vmem:[%s4605_s18 + $0xc0] sm:$0xff] %vm686_vm1, %v736_v14 }
 0x344   : > { %1136 = vrot.lane.b32.xlu1 %v4764_v0, %s4302_s16  ;;  %1463 = vrot.lane.b32.xlu0 %v4664_v34, %s4308_s29 }
 0x346   : > { %v1417_v15 = vpop.permute.xlu1 %1416  ;;  %v793_v16 = vpop.permute.xlu0 %792 }
 0x347   : > { %3620 = vst.msk [vmem:[%s4934_s6 + $0x278] sm:$0xff] %vm686_vm1, %v1417_v15  ;;  %3481 = vst.msk [vmem:[%s4605_s18 + $0x130] sm:$0xff] %vm686_vm1, %v793_v16 }
 0x348   : > { %1192 = vrot.lane.b32.xlu1 %v4764_v0, %s4303_s17  ;;  %1520 = vrot.lane.b32.xlu0 %v4664_v34, %s4309_s30 }
 0x34a   : > { %v1474_v22 = vpop.permute.xlu1 %1473  ;;  %v850_v26 = vpop.permute.xlu0 %849 }
 0x34b   : > { %3634 = vst.msk [vmem:[%s4934_s6 + $0x2e8] sm:$0xff] %vm686_vm1, %v1474_v22  ;;  %3495 = vst.msk [vmem:[%s4605_s18 + $0x1a0] sm:$0xff] %vm686_vm1, %v850_v26 }
 0x34c   : > { %1249 = vrot.lane.b32.xlu1 %v4764_v0, %s4304_s20  ;;  %1605 = vrot.lane.b32.xlu0 %v4676_v24, %s4295_s8 }
 0x34e   : > { %v1531_v20 = vpop.permute.xlu1 %1530  ;;  %v907_v28 = vpop.permute.xlu0 %906 }
 0x34f   : > { %3648 = vst.msk [vmem:[%s4934_s6 + $0x358] sm:$0xff] %vm686_vm1, %v1531_v20  ;;  %3509 = vst.msk [vmem:[%s4605_s18 + $0x210] sm:$0xff] %vm686_vm1, %v907_v28 }
 0x350   : > { %1306 = vrot.lane.b32.xlu1 %v4764_v0, %s4305_s23  ;;  %1662 = vrot.lane.b32.xlu0 %v4676_v24, %s4296_s10 }
 0x352   : > { %v1616_v34 = vpop.permute.xlu1 %1615  ;;  %v964_v30 = vpop.permute.xlu0 %963 }
 0x353   : > { %3662 = vst.msk [vmem:[%s4616_s9 + $0xb8] sm:$0xff] %vm686_vm1, %v1616_v34  ;;  %3523 = vst.msk [vmem:[%s4605_s18 + $0x280] sm:$0xff] %vm686_vm1, %v964_v30 }
 0x354   : > { %1363 = vrot.lane.b32.xlu1 %v4764_v0, %s4306_s24  ;;  %739 = vrot.lane.b32.xlu0 %v4780_v2, %s4295_s8 }
 0x356   : > { %v722_v31 = vpop.permute.xlu1 %721  ;;  %v1021_v37 = vpop.permute.xlu0 %1020 }
 0x357   : > { %3460 = vst.msk [vmem:[%s4605_s18 + $0x88] sm:$0xff] %vm686_vm1, %v722_v31  ;;  %3537 = vst.msk [vmem:[%s4605_s18 + $0x2f0] sm:$0xff] %vm686_vm1, %v1021_v37 }
 0x358   : > { %1420 = vrot.lane.b32.xlu1 %v4764_v0, %s4307_s28  ;;  %796 = vrot.lane.b32.xlu0 %v4780_v2, %s4296_s10 }
 0x35a   : > { %v779_v38 = vpop.permute.xlu1 %778  ;;  %v1078_v39 = vpop.permute.xlu0 %1077 }
 0x35b   : > { %3474 = vst.msk [vmem:[%s4605_s18 + $0xf8] sm:$0xff] %vm686_vm1, %v779_v38  ;;  %3551 = vst.msk [vmem:[%s4605_s18 + $0x360] sm:$0xff] %vm686_vm1, %v1078_v39 }
 0x35c   : > { %1477 = vrot.lane.b32.xlu1 %v4764_v0, %s4308_s29  ;;  %853 = vrot.lane.b32.xlu0 %v4780_v2, %s4297_s11 }
 0x35e   : > { %v836_v42 = vpop.permute.xlu1 %835  ;;  %v1135_v32 = vpop.permute.xlu0 %1134 }
 0x35f   : > { %3488 = vst.msk [vmem:[%s4605_s18 + $0x168] sm:$0xff] %vm686_vm1, %v836_v42  ;;  %1166 = vst.msk [vmem:[%s4934_s6 + $0x50] sm:$0xff] %vm686_vm1, %v1135_v32 }
 0x360   : > { %1534 = vrot.lane.b32.xlu1 %v4764_v0, %s4309_s30  ;;  %910 = vrot.lane.b32.xlu0 %v4780_v2, %s4298_s12 }
 0x362   : > { %v893_v44 = vpop.permute.xlu1 %892  ;;  %v1191_v45 = vpop.permute.xlu0 %1190 }
 0x363   : > { %3502 = vst.msk [vmem:[%s4605_s18 + $0x1d8] sm:$0xff] %vm686_vm1, %v893_v44  ;;  %3565 = vst.msk [vmem:[%s4934_s6 + $0xc0] sm:$0xff] %vm686_vm1, %v1191_v45 }
 0x364   : > { %1619 = vrot.lane.b32.xlu1 %v4770_v50, %s4295_s8  ;;  %967 = vrot.lane.b32.xlu0 %v4780_v2, %s4299_s13 }
 0x366   : > { %v950_v0 = vpop.permute.xlu1 %949  ;;  %v1248_v46 = vpop.permute.xlu0 %1247 }
 0x367   : > { %3516 = vst.msk [vmem:[%s4605_s18 + $0x248] sm:$0xff] %vm686_vm1, %v950_v0  ;;  %3579 = vst.msk [vmem:[%s4934_s6 + $0x130] sm:$0xff] %vm686_vm1, %v1248_v46 }
 0x368   : > { %725 = vrot.lane.b32.xlu1 %v4692_v43, %s4295_s8  ;;  %1024 = vrot.lane.b32.xlu0 %v4780_v2, %s4300_s14 }
 0x36a   : > { %v1007_v48 = vpop.permute.xlu1 %1006  ;;  %v1305_v49 = vpop.permute.xlu0 %1304 }
 0x36b   : > { %3530 = vst.msk [vmem:[%s4605_s18 + $0x2b8] sm:$0xff] %vm686_vm1, %v1007_v48  ;;  %3593 = vst.msk [vmem:[%s4934_s6 + $0x1a0] sm:$0xff] %vm686_vm1, %v1305_v49 }
 0x36c   : > { %782 = vrot.lane.b32.xlu1 %v4692_v43, %s4296_s10  ;;  %1081 = vrot.lane.b32.xlu0 %v4780_v2, %s4301_s15 }
 0x36e   : > { %v1064_v59 = vpop.permute.xlu1 %1063  ;;  %v1362_v54 = vpop.permute.xlu0 %1361 }
 0x36f   : > { %3544 = vst.msk [vmem:[%s4605_s18 + $0x328] sm:$0xff] %vm686_vm1, %v1064_v59  ;;  %3607 = vst.msk [vmem:[%s4934_s6 + $0x210] sm:$0xff] %vm686_vm1, %v1362_v54 }
 0x370   : > { %839 = vrot.lane.b32.xlu1 %v4692_v43, %s4297_s11  ;;  %1138 = vrot.lane.b32.xlu0 %v4780_v2, %s4302_s16 }
 0x372   : > { %v1121_v55 = vpop.permute.xlu1 %1120  ;;  %v1419_v58 = vpop.permute.xlu0 %1418 }
 0x373   : > { %1159 = vst.msk [vmem:[%s4934_s6 + $0x18] sm:$0xff] %vm686_vm1, %v1121_v55  ;;  %3621 = vst.msk [vmem:[%s4934_s6 + $0x280] sm:$0xff] %vm686_vm1, %v1419_v58 }
 0x374   : > { %896 = vrot.lane.b32.xlu1 %v4692_v43, %s4298_s12  ;;  %1194 = vrot.lane.b32.xlu0 %v4780_v2, %s4303_s17 }
 0x376   : > { %v1177_v41 = vpop.permute.xlu1 %1176  ;;  %v1476_v63 = vpop.permute.xlu0 %1475 }
 0x377   : > { %3558 = vst.msk [vmem:[%s4934_s6 + $0x88] sm:$0xff] %vm686_vm1, %v1177_v41  ;;  %3635 = vst.msk [vmem:[%s4934_s6 + $0x2f0] sm:$0xff] %vm686_vm1, %v1476_v63 }
 0x378   : > { %953 = vrot.lane.b32.xlu1 %v4692_v43, %s4299_s13  ;;  %1251 = vrot.lane.b32.xlu0 %v4780_v2, %s4304_s20 }
 0x37a   : > { %v1234_v1 = vpop.permute.xlu1 %1233  ;;  %v1533_v61 = vpop.permute.xlu0 %1532 }
 0x37b   : > { %3572 = vst.msk [vmem:[%s4934_s6 + $0xf8] sm:$0xff] %vm686_vm1, %v1234_v1  ;;  %3649 = vst.msk [vmem:[%s4934_s6 + $0x360] sm:$0xff] %vm686_vm1, %v1533_v61 }
 0x37c   : > { %1010 = vrot.lane.b32.xlu1 %v4692_v43, %s4300_s14  ;;  %1308 = vrot.lane.b32.xlu0 %v4780_v2, %s4305_s23 }
 0x37e   : > { %v1291_v21 = vpop.permute.xlu1 %1290  ;;  %v1618_v51 = vpop.permute.xlu0 %1617 }
 0x37f   : > { %3586 = vst.msk [vmem:[%s4934_s6 + $0x168] sm:$0xff] %vm686_vm1, %v1291_v21  ;;  %3663 = vst.msk [vmem:[%s4616_s9 + $0xc0] sm:$0xff] %vm686_vm1, %v1618_v51 }
 0x380   : > { %1067 = vrot.lane.b32.xlu1 %v4692_v43, %s4301_s15  ;;  %1365 = vrot.lane.b32.xlu0 %v4780_v2, %s4306_s24 }
 0x382   : > { %v1348_v23 = vpop.permute.xlu1 %1347  ;;  %v724_v3 = vpop.permute.xlu0 %723 }
 0x383   : > { %3600 = vst.msk [vmem:[%s4934_s6 + $0x1d8] sm:$0xff] %vm686_vm1, %v1348_v23  ;;  %3461 = vst.msk [vmem:[%s4605_s18 + $0x90] sm:$0xff] %vm686_vm1, %v724_v3 }
 0x384   : > { %1124 = vrot.lane.b32.xlu1 %v4692_v43, %s4302_s16  ;;  %1422 = vrot.lane.b32.xlu0 %v4780_v2, %s4307_s28 }
 0x386   : > { %v1405_v7 = vpop.permute.xlu1 %1404  ;;  %v781_v17 = vpop.permute.xlu0 %780 }
 0x387   : > { %3614 = vst.msk [vmem:[%s4934_s6 + $0x248] sm:$0xff] %vm686_vm1, %v1405_v7  ;;  %3475 = vst.msk [vmem:[%s4605_s18 + $0x100] sm:$0xff] %vm686_vm1, %v781_v17 }
 0x388   : > { %1180 = vrot.lane.b32.xlu1 %v4692_v43, %s4303_s17  ;;  %1479 = vrot.lane.b32.xlu0 %v4780_v2, %s4308_s29 }
 0x38a   : > { %v1462_v5 = vpop.permute.xlu1 %1461  ;;  %v838_v8 = vpop.permute.xlu0 %837 }
 0x38b   : > { %3628 = vst.msk [vmem:[%s4934_s6 + $0x2b8] sm:$0xff] %vm686_vm1, %v1462_v5  ;;  %3489 = vst.msk [vmem:[%s4605_s18 + $0x170] sm:$0xff] %vm686_vm1, %v838_v8 }
 0x38c   : > { %1237 = vrot.lane.b32.xlu1 %v4692_v43, %s4304_s20  ;;  %1536 = vrot.lane.b32.xlu0 %v4780_v2, %s4309_s30 }
 0x38e   : > { %v1519_v18 = vpop.permute.xlu1 %1518  ;;  %v895_v9 = vpop.permute.xlu0 %894 }
 0x38f   : > { %3642 = vst.msk [vmem:[%s4934_s6 + $0x328] sm:$0xff] %vm686_vm1, %v1519_v18  ;;  %3503 = vst.msk [vmem:[%s4605_s18 + $0x1e0] sm:$0xff] %vm686_vm1, %v895_v9 }
 0x390   : > { %1294 = vrot.lane.b32.xlu1 %v4692_v43, %s4305_s23  ;;  %1621 = vrot.lane.b32.xlu0 %v4786_v6, %s4295_s8 }
 0x392   : > { %v1604_v10 = vpop.permute.xlu1 %1603  ;;  %v952_v35 = vpop.permute.xlu0 %951 }
 0x393   : > { %3656 = vst.msk [vmem:[%s4616_s9 + $0x88] sm:$0xff] %vm686_vm1, %v1604_v10  ;;  %3517 = vst.msk [vmem:[%s4605_s18 + $0x250] sm:$0xff] %vm686_vm1, %v952_v35 }
 0x394   : > { %1351 = vrot.lane.b32.xlu1 %v4692_v43, %s4306_s24  ;;  %727 = vrot.lane.b32.xlu0 %v4720_v52, %s4295_s8 }
 0x396   : > { %v1661_v2 = vpop.permute.xlu1 %1660  ;;  %v1009_v53 = vpop.permute.xlu0 %1008 }
 0x397   : > { %3670 = vst.msk [vmem:[%s4616_s9 + $0xf8] sm:$0xff] %vm686_vm1, %v1661_v2  ;;  %3531 = vst.msk [vmem:[%s4605_s18 + $0x2c0] sm:$0xff] %vm686_vm1, %v1009_v53 }
 0x398   : > { %1408 = vrot.lane.b32.xlu1 %v4692_v43, %s4307_s28  ;;  %784 = vrot.lane.b32.xlu0 %v4720_v52, %s4296_s10 }
 0x39a   : > { %v738_v56 = vpop.permute.xlu1 %737  ;;  %v1066_v36 = vpop.permute.xlu0 %1065 }
 0x39b   : > { %3468 = vst.msk [vmem:[%s4605_s18 + $0xc8] sm:$0xff] %vm686_vm1, %v738_v56  ;;  %3545 = vst.msk [vmem:[%s4605_s18 + $0x330] sm:$0xff] %vm686_vm1, %v1066_v36 }
 0x39c   : > { %1465 = vrot.lane.b32.xlu1 %v4692_v43, %s4308_s29  ;;  %841 = vrot.lane.b32.xlu0 %v4720_v52, %s4297_s11 }
 0x39e   : > { %v795_v11 = vpop.permute.xlu1 %794  ;;  %v1123_v12 = vpop.permute.xlu0 %1122 }
 0x39f   : > { %3482 = vst.msk [vmem:[%s4605_s18 + $0x138] sm:$0xff] %vm686_vm1, %v795_v11  ;;  %1160 = vst.msk [vmem:[%s4934_s6 + $0x20] sm:$0xff] %vm686_vm1, %v1123_v12 }
 0x3a0   : > { %1522 = vrot.lane.b32.xlu1 %v4692_v43, %s4309_s30  ;;  %898 = vrot.lane.b32.xlu0 %v4720_v52, %s4298_s12 }
 0x3a2   : > { %v852_v14 = vpop.permute.xlu1 %851  ;;  %v1179_v15 = vpop.permute.xlu0 %1178 }
 0x3a3   : > { %3496 = vst.msk [vmem:[%s4605_s18 + $0x1a8] sm:$0xff] %vm686_vm1, %v852_v14  ;;  %3559 = vst.msk [vmem:[%s4934_s6 + $0x90] sm:$0xff] %vm686_vm1, %v1179_v15 }
 0x3a4   : > { %1607 = vrot.lane.b32.xlu1 %v4704_v47, %s4295_s8  ;;  %955 = vrot.lane.b32.xlu0 %v4720_v52, %s4299_s13 }
 0x3a6   : > { %v909_v43 = vpop.permute.xlu1 %908  ;;  %v1236_v16 = vpop.permute.xlu0 %1235 }
 0x3a7   : > { %3510 = vst.msk [vmem:[%s4605_s18 + $0x218] sm:$0xff] %vm686_vm1, %v909_v43  ;;  %3573 = vst.msk [vmem:[%s4934_s6 + $0x100] sm:$0xff] %vm686_vm1, %v1236_v16 }
 0x3a8   : > { %1664 = vrot.lane.b32.xlu1 %v4704_v47, %s4296_s10  ;;  %1012 = vrot.lane.b32.xlu0 %v4720_v52, %s4300_s14 }
 0x3aa   : > { %v966_v22 = vpop.permute.xlu1 %965  ;;  %v1293_v26 = vpop.permute.xlu0 %1292 }
 0x3ab   : > { %3524 = vst.msk [vmem:[%s4605_s18 + $0x288] sm:$0xff] %vm686_vm1, %v966_v22  ;;  %3587 = vst.msk [vmem:[%s4934_s6 + $0x170] sm:$0xff] %vm686_vm1, %v1293_v26 }
 0x3ac   : > { %741 = vrot.lane.b32.xlu1 %v4796_v60, %s4295_s8  ;;  %1069 = vrot.lane.b32.xlu0 %v4720_v52, %s4301_s15 }
 0x3ae   : > { %v1023_v20 = vpop.permute.xlu1 %1022  ;;  %v1350_v28 = vpop.permute.xlu0 %1349 }
 0x3af   : > { %3538 = vst.msk [vmem:[%s4605_s18 + $0x2f8] sm:$0xff] %vm686_vm1, %v1023_v20  ;;  %3601 = vst.msk [vmem:[%s4934_s6 + $0x1e0] sm:$0xff] %vm686_vm1, %v1350_v28 }
 0x3b0   : > { %798 = vrot.lane.b32.xlu1 %v4796_v60, %s4296_s10  ;;  %1126 = vrot.lane.b32.xlu0 %v4720_v52, %s4302_s16 }
 0x3b2   : > { %v1080_v34 = vpop.permute.xlu1 %1079  ;;  %v1407_v30 = vpop.permute.xlu0 %1406 }
 0x3b3   : > { %3552 = vst.msk [vmem:[%s4605_s18 + $0x368] sm:$0xff] %vm686_vm1, %v1080_v34  ;;  %3615 = vst.msk [vmem:[%s4934_s6 + $0x250] sm:$0xff] %vm686_vm1, %v1407_v30 }
 0x3b4   : > { %855 = vrot.lane.b32.xlu1 %v4796_v60, %s4297_s11  ;;  %1182 = vrot.lane.b32.xlu0 %v4720_v52, %s4303_s17 }
 0x3b6   : > { %v1137_v31 = vpop.permute.xlu1 %1136  ;;  %v1464_v37 = vpop.permute.xlu0 %1463 }
 0x3b7   : > { %1167 = vst.msk [vmem:[%s4934_s6 + $0x58] sm:$0xff] %vm686_vm1, %v1137_v31  ;;  %3629 = vst.msk [vmem:[%s4934_s6 + $0x2c0] sm:$0xff] %vm686_vm1, %v1464_v37 }
 0x3b8   : > { %912 = vrot.lane.b32.xlu1 %v4796_v60, %s4298_s12  ;;  %1239 = vrot.lane.b32.xlu0 %v4720_v52, %s4304_s20 }
 0x3ba   : > { %v1193_v38 = vpop.permute.xlu1 %1192  ;;  %v1521_v39 = vpop.permute.xlu0 %1520 }
 0x3bb   : > { %3566 = vst.msk [vmem:[%s4934_s6 + $0xc8] sm:$0xff] %vm686_vm1, %v1193_v38  ;;  %3643 = vst.msk [vmem:[%s4934_s6 + $0x330] sm:$0xff] %vm686_vm1, %v1521_v39 }
 0x3bc   : > { %969 = vrot.lane.b32.xlu1 %v4796_v60, %s4299_s13  ;;  %1296 = vrot.lane.b32.xlu0 %v4720_v52, %s4305_s23 }
 0x3be   : > { %v1250_v42 = vpop.permute.xlu1 %1249  ;;  %v1606_v32 = vpop.permute.xlu0 %1605 }
 0x3bf   : > { %3580 = vst.msk [vmem:[%s4934_s6 + $0x138] sm:$0xff] %vm686_vm1, %v1250_v42  ;;  %3657 = vst.msk [vmem:[%s4616_s9 + $0x90] sm:$0xff] %vm686_vm1, %v1606_v32 }
 0x3c0   : > { %1026 = vrot.lane.b32.xlu1 %v4796_v60, %s4300_s14  ;;  %1353 = vrot.lane.b32.xlu0 %v4720_v52, %s4306_s24 }
 0x3c2   : > { %v1307_v44 = vpop.permute.xlu1 %1306  ;;  %v1663_v45 = vpop.permute.xlu0 %1662 }
 0x3c3   : > { %3594 = vst.msk [vmem:[%s4934_s6 + $0x1a8] sm:$0xff] %vm686_vm1, %v1307_v44  ;;  %3671 = vst.msk [vmem:[%s4616_s9 + $0x100] sm:$0xff] %vm686_vm1, %v1663_v45 }
 0x3c4   : > { %1083 = vrot.lane.b32.xlu1 %v4796_v60, %s4301_s15  ;;  %1410 = vrot.lane.b32.xlu0 %v4720_v52, %s4307_s28 }
 0x3c6   : > { %v1364_v0 = vpop.permute.xlu1 %1363  ;;  %v740_v46 = vpop.permute.xlu0 %739 }
 0x3c7   : > { %3608 = vst.msk [vmem:[%s4934_s6 + $0x218] sm:$0xff] %vm686_vm1, %v1364_v0  ;;  %3469 = vst.msk [vmem:[%s4605_s18 + $0xd0] sm:$0xff] %vm686_vm1, %v740_v46 }
 0x3c8   : > { %1140 = vrot.lane.b32.xlu1 %v4796_v60, %s4302_s16  ;;  %1467 = vrot.lane.b32.xlu0 %v4720_v52, %s4308_s29 }
 0x3ca   : > { %v1421_v48 = vpop.permute.xlu1 %1420  ;;  %v797_v49 = vpop.permute.xlu0 %796 }
 0x3cb   : > { %3622 = vst.msk [vmem:[%s4934_s6 + $0x288] sm:$0xff] %vm686_vm1, %v1421_v48  ;;  %3483 = vst.msk [vmem:[%s4605_s18 + $0x140] sm:$0xff] %vm686_vm1, %v797_v49 }
 0x3cc   : > { %1196 = vrot.lane.b32.xlu1 %v4796_v60, %s4303_s17  ;;  %1524 = vrot.lane.b32.xlu0 %v4720_v52, %s4309_s30 }
 0x3ce   : > { %v1478_v59 = vpop.permute.xlu1 %1477  ;;  %v854_v54 = vpop.permute.xlu0 %853 }
 0x3cf   : > { %3636 = vst.msk [vmem:[%s4934_s6 + $0x2f8] sm:$0xff] %vm686_vm1, %v1478_v59  ;;  %3497 = vst.msk [vmem:[%s4605_s18 + $0x1b0] sm:$0xff] %vm686_vm1, %v854_v54 }
 0x3d0   : > { %1253 = vrot.lane.b32.xlu1 %v4796_v60, %s4304_s20  ;;  %1609 = vrot.lane.b32.xlu0 %v4732_v33, %s4295_s8 }
 0x3d2   : > { %v1535_v55 = vpop.permute.xlu1 %1534  ;;  %v911_v58 = vpop.permute.xlu0 %910 }
 0x3d3   : > { %3650 = vst.msk [vmem:[%s4934_s6 + $0x368] sm:$0xff] %vm686_vm1, %v1535_v55  ;;  %3511 = vst.msk [vmem:[%s4605_s18 + $0x220] sm:$0xff] %vm686_vm1, %v911_v58 }
 0x3d4   : > { %1310 = vrot.lane.b32.xlu1 %v4796_v60, %s4305_s23  ;;  %1666 = vrot.lane.b32.xlu0 %v4732_v33, %s4296_s10 }
 0x3d6   : > { %v1620_v52 = vpop.permute.xlu1 %1619  ;;  %v968_v41 = vpop.permute.xlu0 %967 }
 0x3d7   : > { %3664 = vst.msk [vmem:[%s4616_s9 + $0xc8] sm:$0xff] %vm686_vm1, %v1620_v52  ;;  %3525 = vst.msk [vmem:[%s4605_s18 + $0x290] sm:$0xff] %vm686_vm1, %v968_v41 }
 0x3d8   : > { %1367 = vrot.lane.b32.xlu1 %v4796_v60, %s4306_s24  ;;  %1674 = vrot.lane.b32.xlu0 %v4754_v62, %s4296_s10 }
 0x3da   : > { %v726_v63 = vpop.permute.xlu1 %725  ;;  %v1025_v1 = vpop.permute.xlu0 %1024 }
 0x3db   : > { %3462 = vst.msk [vmem:[%s4605_s18 + $0x98] sm:$0xff] %vm686_vm1, %v726_v63  ;;  %3539 = vst.msk [vmem:[%s4605_s18 + $0x300] sm:$0xff] %vm686_vm1, %v1025_v1 }
 0x3dc   : > { %1424 = vrot.lane.b32.xlu1 %v4796_v60, %s4307_s28  ;;  %1678 = vrot.lane.b32.xlu0 %v4786_v6, %s4296_s10 }
 0x3de   : > { %v783_v61 = vpop.permute.xlu1 %782  ;;  %v1082_v21 = vpop.permute.xlu0 %1081 }
 0x3df   : > { %3476 = vst.msk [vmem:[%s4605_s18 + $0x108] sm:$0xff] %vm686_vm1, %v783_v61  ;;  %3553 = vst.msk [vmem:[%s4605_s18 + $0x370] sm:$0xff] %vm686_vm1, %v1082_v21 }
 0x3e0   : > { %1481 = vrot.lane.b32.xlu1 %v4796_v60, %s4308_s29  ;;  %1711 = vrot.lane.b32.xlu0 %v4611_v13, %s4297_s11 }
 0x3e2   : > { %v840_v51 = vpop.permute.xlu1 %839  ;;  %v1139_v23 = vpop.permute.xlu0 %1138 }
 0x3e3   : > { %3490 = vst.msk [vmem:[%s4605_s18 + $0x178] sm:$0xff] %vm686_vm1, %v840_v51  ;;  %1168 = vst.msk [vmem:[%s4934_s6 + $0x60] sm:$0xff] %vm686_vm1, %v1139_v23 }
 0x3e4   : > { %1538 = vrot.lane.b32.xlu1 %v4796_v60, %s4309_s30  ;;  %1715 = vrot.lane.b32.xlu0 %v4642_v27, %s4297_s11 }
 0x3e6   : > { %v897_v3 = vpop.permute.xlu1 %896  ;;  %v1195_v7 = vpop.permute.xlu0 %1194 }
 0x3e7   : > { %3504 = vst.msk [vmem:[%s4605_s18 + $0x1e8] sm:$0xff] %vm686_vm1, %v897_v3  ;;  %3567 = vst.msk [vmem:[%s4934_s6 + $0xd0] sm:$0xff] %vm686_vm1, %v1195_v7 }
 0x3e8   : > { %1623 = vrot.lane.b32.xlu1 %v4802_v4, %s4295_s8  ;;  %1719 = vrot.lane.b32.xlu0 %v4676_v24, %s4297_s11  ;;  %s3792_s8 = smul.u32 (%p4365_p4), 112, %s4353_s21 }
 0x3ea   : > { %v954_v60 = vpop.permute.xlu1 %953  ;;  %v1252_v17 = vpop.permute.xlu0 %1251 }
 0x3eb   : > { %3518 = vst.msk [vmem:[%s4605_s18 + $0x258] sm:$0xff] %vm686_vm1, %v954_v60  ;;  %3581 = vst.msk [vmem:[%s4934_s6 + $0x140] sm:$0xff] %vm686_vm1, %v1252_v17 }
 0x3ec   : > { %1672 = vrot.lane.b32.xlu1 %v4735_v57, %s4296_s10  ;;  %1723 = vrot.lane.b32.xlu0 %v4732_v33, %s4297_s11 }
 0x3ee   : > { %v1011_v5 = vpop.permute.xlu1 %1010  ;;  %v1309_v8 = vpop.permute.xlu0 %1308 }
 0x3ef   : > { %3532 = vst.msk [vmem:[%s4605_s18 + $0x2c8] sm:$0xff] %vm686_vm1, %v1011_v5  ;;  %3595 = vst.msk [vmem:[%s4934_s6 + $0x1b0] sm:$0xff] %vm686_vm1, %v1309_v8 }
 0x3f0   : > { %1676 = vrot.lane.b32.xlu1 %v4770_v50, %s4296_s10  ;;  %1727 = vrot.lane.b32.xlu0 %v4707_v40, %s4297_s11 }
 0x3f2   : > { %v1068_v18 = vpop.permute.xlu1 %1067  ;;  %v1366_v9 = vpop.permute.xlu0 %1365 }
 0x3f3   : > { %3546 = vst.msk [vmem:[%s4605_s18 + $0x338] sm:$0xff] %vm686_vm1, %v1068_v18  ;;  %3609 = vst.msk [vmem:[%s4934_s6 + $0x220] sm:$0xff] %vm686_vm1, %v1366_v9 }
 0x3f4   : > { %1680 = vrot.lane.b32.xlu1 %v4802_v4, %s4296_s10  ;;  %1731 = vrot.lane.b32.xlu0 %v4754_v62, %s4297_s11 }
 0x3f6   : > { %v1125_v10 = vpop.permute.xlu1 %1124  ;;  %v1423_v35 = vpop.permute.xlu0 %1422 }
 0x3f7   : > { %1161 = vst.msk [vmem:[%s4934_s6 + $0x28] sm:$0xff] %vm686_vm1, %v1125_v10  ;;  %3623 = vst.msk [vmem:[%s4934_s6 + $0x290] sm:$0xff] %vm686_vm1, %v1423_v35 }
 0x3f8   : > { %1713 = vrot.lane.b32.xlu1 %v4628_v19, %s4297_s11  ;;  %1735 = vrot.lane.b32.xlu0 %v4786_v6, %s4297_s11 }
 0x3fa   : > { %v1181_v2 = vpop.permute.xlu1 %1180  ;;  %v1480_v53 = vpop.permute.xlu0 %1479 }
 0x3fb   : > { %3560 = vst.msk [vmem:[%s4934_s6 + $0x98] sm:$0xff] %vm686_vm1, %v1181_v2  ;;  %3637 = vst.msk [vmem:[%s4934_s6 + $0x300] sm:$0xff] %vm686_vm1, %v1480_v53 }
 0x3fc   : > { %1717 = vrot.lane.b32.xlu1 %v4656_v29, %s4297_s11  ;;  %1768 = vrot.lane.b32.xlu0 %v4611_v13, %s4298_s12 }
 0x3fe   : > { %v1238_v56 = vpop.permute.xlu1 %1237  ;;  %v1537_v36 = vpop.permute.xlu0 %1536 }
 0x3ff   : > { %3574 = vst.msk [vmem:[%s4934_s6 + $0x108] sm:$0xff] %vm686_vm1, %v1238_v56  ;;  %3651 = vst.msk [vmem:[%s4934_s6 + $0x370] sm:$0xff] %vm686_vm1, %v1537_v36 }
 0x400   : > { %1721 = vrot.lane.b32.xlu1 %v4704_v47, %s4297_s11  ;;  %1772 = vrot.lane.b32.xlu0 %v4642_v27, %s4298_s12 }
 0x402   : > { %v1295_v11 = vpop.permute.xlu1 %1294  ;;  %v1622_v12 = vpop.permute.xlu0 %1621 }
 0x403   : > { %3588 = vst.msk [vmem:[%s4934_s6 + $0x178] sm:$0xff] %vm686_vm1, %v1295_v11  ;;  %3665 = vst.msk [vmem:[%s4616_s9 + $0xd0] sm:$0xff] %vm686_vm1, %v1622_v12 }
 0x404   : > { %1725 = vrot.lane.b32.xlu1 %v4679_v25, %s4297_s11  ;;  %1776 = vrot.lane.b32.xlu0 %v4676_v24, %s4298_s12 }
 0x406   : > { %v1352_v14 = vpop.permute.xlu1 %1351  ;;  %v728_v15 = vpop.permute.xlu0 %727 }
 0x407   : > { %3602 = vst.msk [vmem:[%s4934_s6 + $0x1e8] sm:$0xff] %vm686_vm1, %v1352_v14  ;;  %3463 = vst.msk [vmem:[%s4605_s18 + $0xa0] sm:$0xff] %vm686_vm1, %v728_v15 }
 0x408   : > { %1729 = vrot.lane.b32.xlu1 %v4735_v57, %s4297_s11  ;;  %1780 = vrot.lane.b32.xlu0 %v4732_v33, %s4298_s12 }
 0x40a   : > { %v1409_v43 = vpop.permute.xlu1 %1408  ;;  %v785_v16 = vpop.permute.xlu0 %784 }
 0x40b   : > { %3616 = vst.msk [vmem:[%s4934_s6 + $0x258] sm:$0xff] %vm686_vm1, %v1409_v43  ;;  %3477 = vst.msk [vmem:[%s4605_s18 + $0x110] sm:$0xff] %vm686_vm1, %v785_v16 }
 0x40c   : > { %1733 = vrot.lane.b32.xlu1 %v4770_v50, %s4297_s11  ;;  %1784 = vrot.lane.b32.xlu0 %v4707_v40, %s4298_s12 }
 0x40e   : > { %v1466_v22 = vpop.permute.xlu1 %1465  ;;  %v842_v26 = vpop.permute.xlu0 %841 }
 0x40f   : > { %3630 = vst.msk [vmem:[%s4934_s6 + $0x2c8] sm:$0xff] %vm686_vm1, %v1466_v22  ;;  %3491 = vst.msk [vmem:[%s4605_s18 + $0x180] sm:$0xff] %vm686_vm1, %v842_v26 }
 0x410   : > { %1737 = vrot.lane.b32.xlu1 %v4802_v4, %s4297_s11  ;;  %1788 = vrot.lane.b32.xlu0 %v4754_v62, %s4298_s12 }
 0x412   : > { %v1523_v20 = vpop.permute.xlu1 %1522  ;;  %v899_v28 = vpop.permute.xlu0 %898 }
 0x413   : > { %3644 = vst.msk [vmem:[%s4934_s6 + $0x338] sm:$0xff] %vm686_vm1, %v1523_v20  ;;  %3505 = vst.msk [vmem:[%s4605_s18 + $0x1f0] sm:$0xff] %vm686_vm1, %v899_v28 }
 0x414   : > { %1770 = vrot.lane.b32.xlu1 %v4628_v19, %s4298_s12  ;;  %1792 = vrot.lane.b32.xlu0 %v4786_v6, %s4298_s12 }
 0x416   : > { %v1608_v34 = vpop.permute.xlu1 %1607  ;;  %v956_v30 = vpop.permute.xlu0 %955 }
 0x417   : > { %3658 = vst.msk [vmem:[%s4616_s9 + $0x98] sm:$0xff] %vm686_vm1, %v1608_v34  ;;  %3519 = vst.msk [vmem:[%s4605_s18 + $0x260] sm:$0xff] %vm686_vm1, %v956_v30 }
 0x418   : > { %1774 = vrot.lane.b32.xlu1 %v4656_v29, %s4298_s12  ;;  %1825 = vrot.lane.b32.xlu0 %v4611_v13, %s4299_s13 }
 0x41a   : > { %v1665_v31 = vpop.permute.xlu1 %1664  ;;  %v1013_v37 = vpop.permute.xlu0 %1012 }
 0x41b   : > { %3672 = vst.msk [vmem:[%s4616_s9 + $0x108] sm:$0xff] %vm686_vm1, %v1665_v31  ;;  %3533 = vst.msk [vmem:[%s4605_s18 + $0x2d0] sm:$0xff] %vm686_vm1, %v1013_v37 }
 0x41c   : > { %1778 = vrot.lane.b32.xlu1 %v4704_v47, %s4298_s12  ;;  %1829 = vrot.lane.b32.xlu0 %v4642_v27, %s4299_s13 }
 0x41e   : > { %v742_v38 = vpop.permute.xlu1 %741  ;;  %v1070_v39 = vpop.permute.xlu0 %1069 }
 0x41f   : > { %3470 = vst.msk [vmem:[%s4605_s18 + $0xd8] sm:$0xff] %vm686_vm1, %v742_v38  ;;  %3547 = vst.msk [vmem:[%s4605_s18 + $0x340] sm:$0xff] %vm686_vm1, %v1070_v39 }
 0x420   : > { %1782 = vrot.lane.b32.xlu1 %v4679_v25, %s4298_s12  ;;  %1833 = vrot.lane.b32.xlu0 %v4676_v24, %s4299_s13 }
 0x422   : > { %v799_v42 = vpop.permute.xlu1 %798  ;;  %v1127_v32 = vpop.permute.xlu0 %1126 }
 0x423   : > { %3484 = vst.msk [vmem:[%s4605_s18 + $0x148] sm:$0xff] %vm686_vm1, %v799_v42  ;;  %1162 = vst.msk [vmem:[%s4934_s6 + $0x30] sm:$0xff] %vm686_vm1, %v1127_v32 }
 0x424   : > { %1786 = vrot.lane.b32.xlu1 %v4735_v57, %s4298_s12  ;;  %1837 = vrot.lane.b32.xlu0 %v4732_v33, %s4299_s13 }
 0x426   : > { %v856_v44 = vpop.permute.xlu1 %855  ;;  %v1183_v45 = vpop.permute.xlu0 %1182 }
 0x427   : > { %3498 = vst.msk [vmem:[%s4605_s18 + $0x1b8] sm:$0xff] %vm686_vm1, %v856_v44  ;;  %3561 = vst.msk [vmem:[%s4934_s6 + $0xa0] sm:$0xff] %vm686_vm1, %v1183_v45 }
 0x428   : > { %1790 = vrot.lane.b32.xlu1 %v4770_v50, %s4298_s12  ;;  %1841 = vrot.lane.b32.xlu0 %v4707_v40, %s4299_s13 }
 0x42a   : > { %v913_v0 = vpop.permute.xlu1 %912  ;;  %v1240_v46 = vpop.permute.xlu0 %1239 }
 0x42b   : > { %3512 = vst.msk [vmem:[%s4605_s18 + $0x228] sm:$0xff] %vm686_vm1, %v913_v0  ;;  %3575 = vst.msk [vmem:[%s4934_s6 + $0x110] sm:$0xff] %vm686_vm1, %v1240_v46 }
 0x42c   : > { %1794 = vrot.lane.b32.xlu1 %v4802_v4, %s4298_s12  ;;  %1845 = vrot.lane.b32.xlu0 %v4754_v62, %s4299_s13  ;;  %s6017_s12 = scalar_lea.vmem (%p4365_p4), %s6695_s3, %s3792_s8  }
 0x42e   : > { %v970_v48 = vpop.permute.xlu1 %969  ;;  %v1297_v49 = vpop.permute.xlu0 %1296 }
 0x42f   : > { %3526 = vst.msk [vmem:[%s4605_s18 + $0x298] sm:$0xff] %vm686_vm1, %v970_v48  ;;  %3589 = vst.msk [vmem:[%s4934_s6 + $0x180] sm:$0xff] %vm686_vm1, %v1297_v49 }
 0x430   : > { %1827 = vrot.lane.b32.xlu1 %v4628_v19, %s4299_s13  ;;  %1849 = vrot.lane.b32.xlu0 %v4786_v6, %s4299_s13 }
 0x432   : > { %v1027_v59 = vpop.permute.xlu1 %1026  ;;  %v1354_v54 = vpop.permute.xlu0 %1353 }
 0x433   : > { %3540 = vst.msk [vmem:[%s4605_s18 + $0x308] sm:$0xff] %vm686_vm1, %v1027_v59  ;;  %3603 = vst.msk [vmem:[%s4934_s6 + $0x1f0] sm:$0xff] %vm686_vm1, %v1354_v54 }
 0x434   : > { %1831 = vrot.lane.b32.xlu1 %v4656_v29, %s4299_s13  ;;  %1882 = vrot.lane.b32.xlu0 %v4611_v13, %s4300_s14 }
 0x436   : > { %v1084_v55 = vpop.permute.xlu1 %1083  ;;  %v1411_v58 = vpop.permute.xlu0 %1410 }
 0x437   : > { %3554 = vst.msk [vmem:[%s4605_s18 + $0x378] sm:$0xff] %vm686_vm1, %v1084_v55  ;;  %3617 = vst.msk [vmem:[%s4934_s6 + $0x260] sm:$0xff] %vm686_vm1, %v1411_v58 }
 0x438   : > { %1835 = vrot.lane.b32.xlu1 %v4704_v47, %s4299_s13  ;;  %1886 = vrot.lane.b32.xlu0 %v4642_v27, %s4300_s14 }
 0x43a   : > { %v1141_v52 = vpop.permute.xlu1 %1140  ;;  %v1468_v41 = vpop.permute.xlu0 %1467 }
 0x43b   : > { %1169 = vst.msk [vmem:[%s4934_s6 + $0x68] sm:$0xff] %vm686_vm1, %v1141_v52  ;;  %3631 = vst.msk [vmem:[%s4934_s6 + $0x2d0] sm:$0xff] %vm686_vm1, %v1468_v41 }
 0x43c   : > { %1839 = vrot.lane.b32.xlu1 %v4679_v25, %s4299_s13  ;;  %1890 = vrot.lane.b32.xlu0 %v4676_v24, %s4300_s14 }
 0x43e   : > { %v1197_v63 = vpop.permute.xlu1 %1196  ;;  %v1525_v1 = vpop.permute.xlu0 %1524 }
 0x43f   : > { %3568 = vst.msk [vmem:[%s4934_s6 + $0xd8] sm:$0xff] %vm686_vm1, %v1197_v63  ;;  %3645 = vst.msk [vmem:[%s4934_s6 + $0x340] sm:$0xff] %vm686_vm1, %v1525_v1 }
 0x440   : > { %1843 = vrot.lane.b32.xlu1 %v4735_v57, %s4299_s13  ;;  %1894 = vrot.lane.b32.xlu0 %v4732_v33, %s4300_s14 }
 0x442   : > { %v1254_v61 = vpop.permute.xlu1 %1253  ;;  %v1610_v21 = vpop.permute.xlu0 %1609 }
 0x443   : > { %3582 = vst.msk [vmem:[%s4934_s6 + $0x148] sm:$0xff] %vm686_vm1, %v1254_v61  ;;  %3659 = vst.msk [vmem:[%s4616_s9 + $0xa0] sm:$0xff] %vm686_vm1, %v1610_v21 }
 0x444   : > { %1847 = vrot.lane.b32.xlu1 %v4770_v50, %s4299_s13  ;;  %1898 = vrot.lane.b32.xlu0 %v4707_v40, %s4300_s14 }
 0x446   : > { %v1311_v51 = vpop.permute.xlu1 %1310  ;;  %v1667_v23 = vpop.permute.xlu0 %1666 }
 0x447   : > { %3596 = vst.msk [vmem:[%s4934_s6 + $0x1b8] sm:$0xff] %vm686_vm1, %v1311_v51  ;;  %3673 = vst.msk [vmem:[%s4616_s9 + $0x110] sm:$0xff] %vm686_vm1, %v1667_v23 }
 0x448   : > { %1851 = vrot.lane.b32.xlu1 %v4802_v4, %s4299_s13  ;;  %1902 = vrot.lane.b32.xlu0 %v4754_v62, %s4300_s14 }
 0x44a   : > { %v1368_v3 = vpop.permute.xlu1 %1367  ;;  %v1675_v7 = vpop.permute.xlu0 %1674 }
 0x44b   : > { %3610 = vst.msk [vmem:[%s4934_s6 + $0x228] sm:$0xff] %vm686_vm1, %v1368_v3  ;;  %3677 = vst.msk [vmem:[%s4616_s9 + $0x130] sm:$0xff] %vm686_vm1, %v1675_v7 }
 0x44c   : > { %1884 = vrot.lane.b32.xlu1 %v4628_v19, %s4300_s14  ;;  %1906 = vrot.lane.b32.xlu0 %v4786_v6, %s4300_s14 }
 0x44e   : > { %v1425_v60 = vpop.permute.xlu1 %1424  ;;  %v1679_v17 = vpop.permute.xlu0 %1678 }
 0x44f   : > { %3624 = vst.msk [vmem:[%s4934_s6 + $0x298] sm:$0xff] %vm686_vm1, %v1425_v60  ;;  %3679 = vst.msk [vmem:[%s4616_s9 + $0x140] sm:$0xff] %vm686_vm1, %v1679_v17 }
 0x450   : > { %1888 = vrot.lane.b32.xlu1 %v4656_v29, %s4300_s14  ;;  %1939 = vrot.lane.b32.xlu0 %v4611_v13, %s4301_s15 }
 0x452   : > { %v1482_v5 = vpop.permute.xlu1 %1481  ;;  %v1712_v8 = vpop.permute.xlu0 %1711 }
 0x453   : > { %3638 = vst.msk [vmem:[%s4934_s6 + $0x308] sm:$0xff] %vm686_vm1, %v1482_v5  ;;  %3681 = vst.msk [vmem:[%s4616_s9 + $0x150] sm:$0xff] %vm686_vm1, %v1712_v8 }
 0x454   : > { %1892 = vrot.lane.b32.xlu1 %v4704_v47, %s4300_s14  ;;  %1943 = vrot.lane.b32.xlu0 %v4642_v27, %s4301_s15 }
 0x456   : > { %v1539_v18 = vpop.permute.xlu1 %1538  ;;  %v1716_v9 = vpop.permute.xlu0 %1715 }
 0x457   : > { %3652 = vst.msk [vmem:[%s4934_s6 + $0x378] sm:$0xff] %vm686_vm1, %v1539_v18  ;;  %3683 = vst.msk [vmem:[%s4616_s9 + $0x160] sm:$0xff] %vm686_vm1, %v1716_v9 }
 0x458   : > { %1896 = vrot.lane.b32.xlu1 %v4679_v25, %s4300_s14  ;;  %1947 = vrot.lane.b32.xlu0 %v4676_v24, %s4301_s15 }
 0x45a   : > { %v1624_v13 = vpop.permute.xlu1 %1623  ;;  %v1720_v10 = vpop.permute.xlu0 %1719 }
 0x45b   : > { %3666 = vst.msk [vmem:[%s4616_s9 + $0xd8] sm:$0xff] %vm686_vm1, %v1624_v13  ;;  %3685 = vst.msk [vmem:[%s4616_s9 + $0x170] sm:$0xff] %vm686_vm1, %v1720_v10 }
 0x45c   : > { %1900 = vrot.lane.b32.xlu1 %v4735_v57, %s4300_s14  ;;  %1951 = vrot.lane.b32.xlu0 %v4732_v33, %s4301_s15 }
 0x45e   : > { %v1673_v27 = vpop.permute.xlu1 %1672  ;;  %v1724_v35 = vpop.permute.xlu0 %1723 }
 0x45f   : > { %3676 = vst.msk [vmem:[%s4616_s9 + $0x128] sm:$0xff] %vm686_vm1, %v1673_v27  ;;  %3687 = vst.msk [vmem:[%s4616_s9 + $0x180] sm:$0xff] %vm686_vm1, %v1724_v35 }
 0x460   : > { %1904 = vrot.lane.b32.xlu1 %v4770_v50, %s4300_s14  ;;  %1955 = vrot.lane.b32.xlu0 %v4707_v40, %s4301_s15 }
 0x462   : > { %v1677_v24 = vpop.permute.xlu1 %1676  ;;  %v1728_v2 = vpop.permute.xlu0 %1727 }
 0x463   : > { %3678 = vst.msk [vmem:[%s4616_s9 + $0x138] sm:$0xff] %vm686_vm1, %v1677_v24  ;;  %3689 = vst.msk [vmem:[%s4616_s9 + $0x190] sm:$0xff] %vm686_vm1, %v1728_v2 }
 0x464   : > { %1908 = vrot.lane.b32.xlu1 %v4802_v4, %s4300_s14  ;;  %1959 = vrot.lane.b32.xlu0 %v4754_v62, %s4301_s15 }
 0x466   : > { %v1681_v33 = vpop.permute.xlu1 %1680  ;;  %v1732_v53 = vpop.permute.xlu0 %1731 }
 0x467   : > { %3680 = vst.msk [vmem:[%s4616_s9 + $0x148] sm:$0xff] %vm686_vm1, %v1681_v33  ;;  %3691 = vst.msk [vmem:[%s4616_s9 + $0x1a0] sm:$0xff] %vm686_vm1, %v1732_v53 }
 0x468   : > { %1941 = vrot.lane.b32.xlu1 %v4628_v19, %s4301_s15  ;;  %1963 = vrot.lane.b32.xlu0 %v4786_v6, %s4301_s15 }
 0x46a   : > { %v1714_v40 = vpop.permute.xlu1 %1713  ;;  %v1736_v56 = vpop.permute.xlu0 %1735 }
 0x46b   : > { %3682 = vst.msk [vmem:[%s4616_s9 + $0x158] sm:$0xff] %vm686_vm1, %v1714_v40  ;;  %3693 = vst.msk [vmem:[%s4616_s9 + $0x1b0] sm:$0xff] %vm686_vm1, %v1736_v56 }
 0x46c   : > { %1945 = vrot.lane.b32.xlu1 %v4656_v29, %s4301_s15 }
 0x46e   : > { %v1718_v62 = vpop.permute.xlu1 %1717  ;;  %v1769_v36 = vpop.permute.xlu0 %1768 }
 0x46f   : > { %3684 = vst.msk [vmem:[%s4616_s9 + $0x168] sm:$0xff] %vm686_vm1, %v1718_v62  ;;  %3695 = vst.msk [vmem:[%s4616_s9 + $0x1c0] sm:$0xff] %vm686_vm1, %v1769_v36 }
 0x470   : > { %1949 = vrot.lane.b32.xlu1 %v4704_v47, %s4301_s15 }
 0x472   : > { %v1722_v19 = vpop.permute.xlu1 %1721  ;;  %v1773_v6 = vpop.permute.xlu0 %1772 }
 0x473   : > { %3686 = vst.msk [vmem:[%s4616_s9 + $0x178] sm:$0xff] %vm686_vm1, %v1722_v19  ;;  %3697 = vst.msk [vmem:[%s4616_s9 + $0x1d0] sm:$0xff] %vm686_vm1, %v1773_v6 }
 0x474   : > { %1953 = vrot.lane.b32.xlu1 %v4679_v25, %s4301_s15 }
 0x476   : > { %v1726_v29 = vpop.permute.xlu1 %1725  ;;  %v1777_v11 = vpop.permute.xlu0 %1776 }
 0x477   : > { %3688 = vst.msk [vmem:[%s4616_s9 + $0x188] sm:$0xff] %vm686_vm1, %v1726_v29  ;;  %3699 = vst.msk [vmem:[%s4616_s9 + $0x1e0] sm:$0xff] %vm686_vm1, %v1777_v11 }
 0x478   : > { %1957 = vrot.lane.b32.xlu1 %v4735_v57, %s4301_s15 }
 0x47a   : > { %v1730_v47 = vpop.permute.xlu1 %1729  ;;  %v1781_v12 = vpop.permute.xlu0 %1780 }
 0x47b   : > { %3690 = vst.msk [vmem:[%s4616_s9 + $0x198] sm:$0xff] %vm686_vm1, %v1730_v47  ;;  %3701 = vst.msk [vmem:[%s4616_s9 + $0x1f0] sm:$0xff] %vm686_vm1, %v1781_v12 }
 0x47c   : > { %1961 = vrot.lane.b32.xlu1 %v4770_v50, %s4301_s15 }
 0x47e   : > { %v1734_v25 = vpop.permute.xlu1 %1733  ;;  %v1785_v14 = vpop.permute.xlu0 %1784 }
 0x47f   : > { %3692 = vst.msk [vmem:[%s4616_s9 + $0x1a8] sm:$0xff] %vm686_vm1, %v1734_v25  ;;  %3703 = vst.msk [vmem:[%s4616_s9 + $0x200] sm:$0xff] %vm686_vm1, %v1785_v14 }
 0x480   : > { %1965 = vrot.lane.b32.xlu1 %v4802_v4, %s4301_s15 }
 0x482   : > { %v1738_v57 = vpop.permute.xlu1 %1737  ;;  %v1789_v15 = vpop.permute.xlu0 %1788 }
 0x483   : > { %3694 = vst.msk [vmem:[%s4616_s9 + $0x1b8] sm:$0xff] %vm686_vm1, %v1738_v57  ;;  %3705 = vst.msk [vmem:[%s4616_s9 + $0x210] sm:$0xff] %vm686_vm1, %v1789_v15 }
 0x486   : > { %v1771_v50 = vpop.permute.xlu1 %1770  ;;  %v1793_v43 = vpop.permute.xlu0 %1792 }
 0x487   : > { %3696 = vst.msk [vmem:[%s4616_s9 + $0x1c8] sm:$0xff] %vm686_vm1, %v1771_v50  ;;  %3707 = vst.msk [vmem:[%s4616_s9 + $0x220] sm:$0xff] %vm686_vm1, %v1793_v43 }
 0x48a   : > { %v1775_v16 = vpop.permute.xlu1 %1774  ;;  %v1826_v22 = vpop.permute.xlu0 %1825 }
 0x48b   : > { %3698 = vst.msk [vmem:[%s4616_s9 + $0x1d8] sm:$0xff] %vm686_vm1, %v1775_v16  ;;  %3709 = vst.msk [vmem:[%s4616_s9 + $0x230] sm:$0xff] %vm686_vm1, %v1826_v22 }
 0x48e   : > { %v1779_v4 = vpop.permute.xlu1 %1778  ;;  %v1830_v26 = vpop.permute.xlu0 %1829 }
 0x48f   : > { %3700 = vst.msk [vmem:[%s4616_s9 + $0x1e8] sm:$0xff] %vm686_vm1, %v1779_v4  ;;  %3711 = vst.msk [vmem:[%s4616_s9 + $0x240] sm:$0xff] %vm686_vm1, %v1830_v26 }
 0x492   : > { %v1783_v20 = vpop.permute.xlu1 %1782  ;;  %v1834_v28 = vpop.permute.xlu0 %1833 }
 0x493   : > { %3702 = vst.msk [vmem:[%s4616_s9 + $0x1f8] sm:$0xff] %vm686_vm1, %v1783_v20  ;;  %3713 = vst.msk [vmem:[%s4616_s9 + $0x250] sm:$0xff] %vm686_vm1, %v1834_v28 }
 0x496   : > { %v1787_v34 = vpop.permute.xlu1 %1786  ;;  %v1838_v30 = vpop.permute.xlu0 %1837 }
 0x497   : > { %3704 = vst.msk [vmem:[%s4616_s9 + $0x208] sm:$0xff] %vm686_vm1, %v1787_v34  ;;  %3715 = vst.msk [vmem:[%s4616_s9 + $0x260] sm:$0xff] %vm686_vm1, %v1838_v30 }
 0x49a   : > { %v1791_v31 = vpop.permute.xlu1 %1790  ;;  %v1842_v37 = vpop.permute.xlu0 %1841 }
 0x49b   : > { %3706 = vst.msk [vmem:[%s4616_s9 + $0x218] sm:$0xff] %vm686_vm1, %v1791_v31  ;;  %3717 = vst.msk [vmem:[%s4616_s9 + $0x270] sm:$0xff] %vm686_vm1, %v1842_v37 }
 0x49e   : > { %v1795_v38 = vpop.permute.xlu1 %1794  ;;  %v1846_v39 = vpop.permute.xlu0 %1845 }
 0x49f   : > { %3708 = vst.msk [vmem:[%s4616_s9 + $0x228] sm:$0xff] %vm686_vm1, %v1795_v38  ;;  %3719 = vst.msk [vmem:[%s4616_s9 + $0x280] sm:$0xff] %vm686_vm1, %v1846_v39 }
 0x4a2   : > { %v1828_v42 = vpop.permute.xlu1 %1827  ;;  %v1850_v32 = vpop.permute.xlu0 %1849 }
 0x4a3   : > { %3710 = vst.msk [vmem:[%s4616_s9 + $0x238] sm:$0xff] %vm686_vm1, %v1828_v42  ;;  %3721 = vst.msk [vmem:[%s4616_s9 + $0x290] sm:$0xff] %vm686_vm1, %v1850_v32 }
 0x4a6   : > { %v1832_v44 = vpop.permute.xlu1 %1831  ;;  %v1883_v45 = vpop.permute.xlu0 %1882 }
 0x4a7   : > { %3712 = vst.msk [vmem:[%s4616_s9 + $0x248] sm:$0xff] %vm686_vm1, %v1832_v44  ;;  %3723 = vst.msk [vmem:[%s4616_s9 + $0x2a0] sm:$0xff] %vm686_vm1, %v1883_v45 }
 0x4aa   : > { %v1836_v0 = vpop.permute.xlu1 %1835  ;;  %v1887_v46 = vpop.permute.xlu0 %1886 }
 0x4ab   : > { %3714 = vst.msk [vmem:[%s4616_s9 + $0x258] sm:$0xff] %vm686_vm1, %v1836_v0  ;;  %3725 = vst.msk [vmem:[%s4616_s9 + $0x2b0] sm:$0xff] %vm686_vm1, %v1887_v46 }
 0x4ae   : > { %v1840_v48 = vpop.permute.xlu1 %1839  ;;  %v1891_v49 = vpop.permute.xlu0 %1890 }
 0x4af   : > { %3716 = vst.msk [vmem:[%s4616_s9 + $0x268] sm:$0xff] %vm686_vm1, %v1840_v48  ;;  %3727 = vst.msk [vmem:[%s4616_s9 + $0x2c0] sm:$0xff] %vm686_vm1, %v1891_v49 }
 0x4b2   : > { %v1844_v59 = vpop.permute.xlu1 %1843  ;;  %v1895_v54 = vpop.permute.xlu0 %1894 }
 0x4b3   : > { %3718 = vst.msk [vmem:[%s4616_s9 + $0x278] sm:$0xff] %vm686_vm1, %v1844_v59  ;;  %3729 = vst.msk [vmem:[%s4616_s9 + $0x2d0] sm:$0xff] %vm686_vm1, %v1895_v54 }
 0x4b6   : > { %v1848_v55 = vpop.permute.xlu1 %1847  ;;  %v1899_v58 = vpop.permute.xlu0 %1898 }
 0x4b7   : > { %3720 = vst.msk [vmem:[%s4616_s9 + $0x288] sm:$0xff] %vm686_vm1, %v1848_v55  ;;  %3731 = vst.msk [vmem:[%s4616_s9 + $0x2e0] sm:$0xff] %vm686_vm1, %v1899_v58 }
 0x4ba   : > { %v1852_v52 = vpop.permute.xlu1 %1851  ;;  %v1903_v41 = vpop.permute.xlu0 %1902 }
 0x4bb   : > { %3722 = vst.msk [vmem:[%s4616_s9 + $0x298] sm:$0xff] %vm686_vm1, %v1852_v52  ;;  %3733 = vst.msk [vmem:[%s4616_s9 + $0x2f0] sm:$0xff] %vm686_vm1, %v1903_v41 }
 0x4be   : > { %v1885_v63 = vpop.permute.xlu1 %1884  ;;  %v1907_v1 = vpop.permute.xlu0 %1906 }
 0x4bf   : > { %3724 = vst.msk [vmem:[%s4616_s9 + $0x2a8] sm:$0xff] %vm686_vm1, %v1885_v63  ;;  %3735 = vst.msk [vmem:[%s4616_s9 + $0x300] sm:$0xff] %vm686_vm1, %v1907_v1 }
 0x4c2   : > { %v1889_v61 = vpop.permute.xlu1 %1888  ;;  %v1940_v21 = vpop.permute.xlu0 %1939 }
 0x4c3   : > { %3726 = vst.msk [vmem:[%s4616_s9 + $0x2b8] sm:$0xff] %vm686_vm1, %v1889_v61  ;;  %3737 = vst.msk [vmem:[%s4616_s9 + $0x310] sm:$0xff] %vm686_vm1, %v1940_v21 }
 0x4c6   : > { %v1893_v51 = vpop.permute.xlu1 %1892  ;;  %v1944_v23 = vpop.permute.xlu0 %1943 }
 0x4c7   : > { %3728 = vst.msk [vmem:[%s4616_s9 + $0x2c8] sm:$0xff] %vm686_vm1, %v1893_v51  ;;  %3739 = vst.msk [vmem:[%s4616_s9 + $0x320] sm:$0xff] %vm686_vm1, %v1944_v23 }
 0x4ca   : > { %v1897_v3 = vpop.permute.xlu1 %1896  ;;  %v1948_v7 = vpop.permute.xlu0 %1947 }
 0x4cb   : > { %3730 = vst.msk [vmem:[%s4616_s9 + $0x2d8] sm:$0xff] %vm686_vm1, %v1897_v3  ;;  %3741 = vst.msk [vmem:[%s4616_s9 + $0x330] sm:$0xff] %vm686_vm1, %v1948_v7 }
 0x4ce   : > { %v1901_v60 = vpop.permute.xlu1 %1900  ;;  %v1952_v17 = vpop.permute.xlu0 %1951 }
 0x4cf   : > { %3732 = vst.msk [vmem:[%s4616_s9 + $0x2e8] sm:$0xff] %vm686_vm1, %v1901_v60  ;;  %3743 = vst.msk [vmem:[%s4616_s9 + $0x340] sm:$0xff] %vm686_vm1, %v1952_v17 }
 0x4d2   : > { %v1905_v5 = vpop.permute.xlu1 %1904  ;;  %v1956_v8 = vpop.permute.xlu0 %1955 }
 0x4d3   : > { %3734 = vst.msk [vmem:[%s4616_s9 + $0x2f8] sm:$0xff] %vm686_vm1, %v1905_v5  ;;  %3745 = vst.msk [vmem:[%s4616_s9 + $0x350] sm:$0xff] %vm686_vm1, %v1956_v8 }
 0x4d6   : > { %v1909_v18 = vpop.permute.xlu1 %1908  ;;  %v1960_v9 = vpop.permute.xlu0 %1959 }
 0x4d7   : > { %3736 = vst.msk [vmem:[%s4616_s9 + $0x308] sm:$0xff] %vm686_vm1, %v1909_v18  ;;  %3747 = vst.msk [vmem:[%s4616_s9 + $0x360] sm:$0xff] %vm686_vm1, %v1960_v9 }
 0x4da   : > { %v1942_v13 = vpop.permute.xlu1 %1941  ;;  %v1964_v10 = vpop.permute.xlu0 %1963 }
 0x4db   : > { %3738 = vst.msk [vmem:[%s4616_s9 + $0x318] sm:$0xff] %vm686_vm1, %v1942_v13  ;;  %3749 = vst.msk [vmem:[%s4616_s9 + $0x370] sm:$0xff] %vm686_vm1, %v1964_v10 }
 0x4de   : > { %v1946_v27 = vpop.permute.xlu1 %1945 }
 0x4df   : > { %3740 = vst.msk [vmem:[%s4616_s9 + $0x328] sm:$0xff] %vm686_vm1, %v1946_v27 }
 0x4e2   : > { %v1950_v35 = vpop.permute.xlu1 %1949 }
 0x4e3   : > { %3742 = vst.msk [vmem:[%s4616_s9 + $0x338] sm:$0xff] %vm686_vm1, %v1950_v35 }
 0x4e6   : > { %v1954_v24 = vpop.permute.xlu1 %1953 }
 0x4e7   : > { %3744 = vst.msk [vmem:[%s4616_s9 + $0x348] sm:$0xff] %vm686_vm1, %v1954_v24 }
 0x4ea   : > { %v1958_v2 = vpop.permute.xlu1 %1957 }
 0x4eb   : > { %3746 = vst.msk [vmem:[%s4616_s9 + $0x358] sm:$0xff] %vm686_vm1, %v1958_v2 }
 0x4ee   : > { %v1962_v33 = vpop.permute.xlu1 %1961 }
 0x4ef   : > { %3748 = vst.msk [vmem:[%s4616_s9 + $0x368] sm:$0xff] %vm686_vm1, %v1962_v33  ;;  %2010 = sbr.rel (!%p4365_p4) target bundleno = 1332 (0x534), region = 36 }
 0x4f2   : > { %v1966_v53 = vpop.permute.xlu1 %1965 }
 0x4f3   : > { %3750 = vst.msk [vmem:[%s4616_s9 + $0x378] sm:$0xff] %vm686_vm1, %v1966_v53 }
 0x4f4   : > { %s6727_s7 = smov (!%p2013_p8, %s2012_s7), 14 }
 0x4f5   : > { %s3751_s13 = sshll.u32 %s6727_s7, 10 }
 0x4f6   : > { %p3754_p9 = scmp.eq.s32.totalorder %s3751_s13, 0 }
 0x4f7   : > { %s6023_s14 = sshrl.u32 (!%p3754_p9), %s6727_s7, 3 }
 0x4f8   : > { %2021 = sbr.rel (%p3754_p9) target bundleno = 1332 (0x534), region = 40  ;;  %p3755_p10 = scmp.le.s32.totalorder (!%p3754_p9), %s6023_s14, 0 }
 0x4fd   : > { %3320 = sbr.rel (%p3755_p10) target bundleno = 1315 (0x523), region = 281  ;;  %s6699_s15 = smov (!%p3755_p10), %s6017_s12 }
 0x4fe   : > { %s6700_s16 = smov (!%p3755_p10), %s4605_s18  ;;  %s6032_s17 = smov (!%p3755_p10), 0  }
 0x4ff   : > { %s6034_s20 = smov (!%p3755_p10), 0  }
 0x502 LB: >> { %v2224_v40 = vld [vmem:[%s4204_s16] sm:$0xff]  ;;  %v2226_v56 = vld [vmem:[%s4204_s16 + $0x8] sm:$0xff]  ;;  %v2228_v62 = vld [vmem:[%s4204_s16 + $0x10] sm:$0xff]  ;;  %s2352_s23 = sadd.s32 1, %s4208_s17  ;;  %s2218_s20 = sadd.s32 1, %s4212_s20   ;;  %s4212_s20 = sphi %s6034_s20, %s2218_s20   ;;  %s4208_s17 = sphi %s6032_s17, %s6703_s17   ;;  %s4204_s16 = sphi %s6700_s16, %s6702_s16   ;;  %s4200_s15 = sphi %s6699_s15, %s6701_s15  }
 0x503   : >> { %2225 = vst [vmem:[%s4200_s15] sm:$0xff] %v2224_v40  ;;  %2227 = vst [vmem:[%s4200_s15 + $0x8] sm:$0xff] %v2226_v56  ;;  %v2230_v36 = vld [vmem:[%s4204_s16 + $0x18] sm:$0xff]  ;;  %v2232_v19 = vld [vmem:[%s4204_s16 + $0x20] sm:$0xff]  ;;  %p2353_p11 = scmp.ge.s32.totalorder %s2352_s23, %s6023_s14  ;;  %p2217_p12 = scmp.ge.s32.totalorder %s2218_s20, %s6023_s14 }
 0x504   : >> { %2229 = vst [vmem:[%s4200_s15 + $0x10] sm:$0xff] %v2228_v62  ;;  %v2234_v6 = vld [vmem:[%s4204_s16 + $0x28] sm:$0xff]  ;;  %2231 = vst [vmem:[%s4200_s15 + $0x18] sm:$0xff] %v2230_v36  ;;  %v2236_v29 = vld [vmem:[%s4204_s16 + $0x30] sm:$0xff] }
 0x505   : >> { %2233 = vst [vmem:[%s4200_s15 + $0x20] sm:$0xff] %v2232_v19  ;;  %2235 = vst [vmem:[%s4200_s15 + $0x28] sm:$0xff] %v2234_v6  ;;  %v2238_v11 = vld [vmem:[%s4204_s16 + $0x38] sm:$0xff]  ;;  %v2240_v47 = vld [vmem:[%s4204_s16 + $0x70] sm:$0xff]  ;;  %s6729_s23 = smov (%p2353_p11, %s2352_s23), 0 }
 0x506   : >> { %2237 = vst [vmem:[%s4200_s15 + $0x30] sm:$0xff] %v2236_v29  ;;  %2239 = vst [vmem:[%s4200_s15 + $0x38] sm:$0xff] %v2238_v11  ;;  %v2242_v12 = vld [vmem:[%s4204_s16 + $0x78] sm:$0xff]  ;;  %v2244_v25 = vld [vmem:[%s4204_s16 + $0x80] sm:$0xff]  ;;  %s3756_s24 = sshll.u32 %s6729_s23, 6  ;;  %s6703_s17 = smov %s6729_s23 }
 0x507   : >> { %2241 = vst [vmem:[%s4200_s15 + $0xc8] sm:$0xff] %v2240_v47  ;;  %v2246_v14 = vld [vmem:[%s4204_s16 + $0x88] sm:$0xff]  ;;  %2243 = vst [vmem:[%s4200_s15 + $0xd0] sm:$0xff] %v2242_v12  ;;  %v2248_v57 = vld [vmem:[%s4204_s16 + $0x90] sm:$0xff]  ;;  %s6090_s28 = scalar_lea.vmem %s4605_s18, %s3756_s24 [#allocation2]   ;;  %s6093_s29 = scalar_lea.vmem %s6017_s12, %s3756_s24  }
 0x508   : >> { %2245 = vst [vmem:[%s4200_s15 + $0xd8] sm:$0xff] %v2244_v25  ;;  %2247 = vst [vmem:[%s4200_s15 + $0xe0] sm:$0xff] %v2246_v14  ;;  %v2250_v15 = vld [vmem:[%s4204_s16 + $0x98] sm:$0xff]  ;;  %v2252_v50 = vld [vmem:[%s4204_s16 + $0xa0] sm:$0xff] }
 0x509   : >> { %2249 = vst [vmem:[%s4200_s15 + $0xe8] sm:$0xff] %v2248_v57  ;;  %2251 = vst [vmem:[%s4200_s15 + $0xf0] sm:$0xff] %v2250_v15  ;;  %v2254_v43 = vld [vmem:[%s4204_s16 + $0xa8] sm:$0xff]  ;;  %v2256_v16 = vld [vmem:[%s4204_s16 + $0xe0] sm:$0xff] }
 0x50a   : >> { %2253 = vst [vmem:[%s4200_s15 + $0xf8] sm:$0xff] %v2252_v50  ;;  %v2258_v22 = vld [vmem:[%s4204_s16 + $0xe8] sm:$0xff]  ;;  %2255 = vst [vmem:[%s4200_s15 + $0x100] sm:$0xff] %v2254_v43  ;;  %v2260_v4 = vld [vmem:[%s4204_s16 + $0xf0] sm:$0xff] }
 0x50b   : >> { %2257 = vst [vmem:[%s4200_s15 + $0x190] sm:$0xff] %v2256_v16  ;;  %2259 = vst [vmem:[%s4200_s15 + $0x198] sm:$0xff] %v2258_v22  ;;  %v2262_v26 = vld [vmem:[%s4204_s16 + $0xf8] sm:$0xff]  ;;  %v2264_v20 = vld [vmem:[%s4204_s16 + $0x100] sm:$0xff] }
 0x50c   : >> { %2261 = vst [vmem:[%s4200_s15 + $0x1a0] sm:$0xff] %v2260_v4  ;;  %2263 = vst [vmem:[%s4200_s15 + $0x1a8] sm:$0xff] %v2262_v26  ;;  %v2266_v28 = vld [vmem:[%s4204_s16 + $0x108] sm:$0xff]  ;;  %v2268_v34 = vld [vmem:[%s4204_s16 + $0x110] sm:$0xff] }
 0x50d   : >> { %2265 = vst [vmem:[%s4200_s15 + $0x1b0] sm:$0xff] %v2264_v20  ;;  %v2270_v30 = vld [vmem:[%s4204_s16 + $0x118] sm:$0xff]  ;;  %2267 = vst [vmem:[%s4200_s15 + $0x1b8] sm:$0xff] %v2266_v28  ;;  %v2272_v31 = vld [vmem:[%s4204_s16 + $0x150] sm:$0xff] }
 0x50e   : >> { %2269 = vst [vmem:[%s4200_s15 + $0x1c0] sm:$0xff] %v2268_v34  ;;  %2271 = vst [vmem:[%s4200_s15 + $0x1c8] sm:$0xff] %v2270_v30  ;;  %v2274_v37 = vld [vmem:[%s4204_s16 + $0x158] sm:$0xff]  ;;  %v2276_v38 = vld [vmem:[%s4204_s16 + $0x160] sm:$0xff] }
 0x50f   : >> { %2273 = vst [vmem:[%s4200_s15 + $0x258] sm:$0xff] %v2272_v31  ;;  %2275 = vst [vmem:[%s4200_s15 + $0x260] sm:$0xff] %v2274_v37  ;;  %v2278_v39 = vld [vmem:[%s4204_s16 + $0x168] sm:$0xff]  ;;  %v2280_v42 = vld [vmem:[%s4204_s16 + $0x170] sm:$0xff] }
 0x510   : >> { %2277 = vst [vmem:[%s4200_s15 + $0x268] sm:$0xff] %v2276_v38  ;;  %v2282_v32 = vld [vmem:[%s4204_s16 + $0x178] sm:$0xff]  ;;  %2279 = vst [vmem:[%s4200_s15 + $0x270] sm:$0xff] %v2278_v39  ;;  %v2284_v44 = vld [vmem:[%s4204_s16 + $0x180] sm:$0xff] }
 0x511   : >> { %2281 = vst [vmem:[%s4200_s15 + $0x278] sm:$0xff] %v2280_v42  ;;  %2283 = vst [vmem:[%s4200_s15 + $0x280] sm:$0xff] %v2282_v32  ;;  %v2286_v45 = vld [vmem:[%s4204_s16 + $0x188] sm:$0xff]  ;;  %v2288_v0 = vld [vmem:[%s4204_s16 + $0x1c0] sm:$0xff] }
 0x512   : >> { %2285 = vst [vmem:[%s4200_s15 + $0x288] sm:$0xff] %v2284_v44  ;;  %2287 = vst [vmem:[%s4200_s15 + $0x290] sm:$0xff] %v2286_v45  ;;  %v2290_v46 = vld [vmem:[%s4204_s16 + $0x1c8] sm:$0xff]  ;;  %v2292_v48 = vld [vmem:[%s4204_s16 + $0x1d0] sm:$0xff] }
 0x513   : >> { %2289 = vst [vmem:[%s4200_s15 + $0x320] sm:$0xff] %v2288_v0  ;;  %v2294_v49 = vld [vmem:[%s4204_s16 + $0x1d8] sm:$0xff]  ;;  %2291 = vst [vmem:[%s4200_s15 + $0x328] sm:$0xff] %v2290_v46  ;;  %v2296_v59 = vld [vmem:[%s4204_s16 + $0x1e0] sm:$0xff] }
 0x514   : >> { %2293 = vst [vmem:[%s4200_s15 + $0x330] sm:$0xff] %v2292_v48  ;;  %2295 = vst [vmem:[%s4200_s15 + $0x338] sm:$0xff] %v2294_v49  ;;  %v2298_v54 = vld [vmem:[%s4204_s16 + $0x1e8] sm:$0xff]  ;;  %v2300_v55 = vld [vmem:[%s4204_s16 + $0x1f0] sm:$0xff] }
 0x515   : >> { %2297 = vst [vmem:[%s4200_s15 + $0x340] sm:$0xff] %v2296_v59  ;;  %2299 = vst [vmem:[%s4200_s15 + $0x348] sm:$0xff] %v2298_v54  ;;  %v2302_v58 = vld [vmem:[%s4204_s16 + $0x1f8] sm:$0xff]  ;;  %v2304_v52 = vld [vmem:[%s4204_s16 + $0x230] sm:$0xff] }
 0x516   : >> { %2301 = vst [vmem:[%s4200_s15 + $0x350] sm:$0xff] %v2300_v55  ;;  %v2306_v41 = vld [vmem:[%s4204_s16 + $0x238] sm:$0xff]  ;;  %2303 = vst [vmem:[%s4200_s15 + $0x358] sm:$0xff] %v2302_v58  ;;  %v2308_v63 = vld [vmem:[%s4204_s16 + $0x240] sm:$0xff] }
 0x517   : >> { %2305 = vst [vmem:[%s4200_s15 + $0x3e8] sm:$0xff] %v2304_v52  ;;  %2307 = vst [vmem:[%s4200_s15 + $0x3f0] sm:$0xff] %v2306_v41  ;;  %v2310_v1 = vld [vmem:[%s4204_s16 + $0x248] sm:$0xff]  ;;  %v2312_v61 = vld [vmem:[%s4204_s16 + $0x250] sm:$0xff] }
 0x518   : >> { %2309 = vst [vmem:[%s4200_s15 + $0x3f8] sm:$0xff] %v2308_v63  ;;  %2311 = vst [vmem:[%s4200_s15 + $0x400] sm:$0xff] %v2310_v1  ;;  %v2314_v21 = vld [vmem:[%s4204_s16 + $0x258] sm:$0xff]  ;;  %v2316_v51 = vld [vmem:[%s4204_s16 + $0x260] sm:$0xff] }
 0x519   : >> { %2313 = vst [vmem:[%s4200_s15 + $0x408] sm:$0xff] %v2312_v61  ;;  %v2318_v23 = vld [vmem:[%s4204_s16 + $0x268] sm:$0xff]  ;;  %2315 = vst [vmem:[%s4200_s15 + $0x410] sm:$0xff] %v2314_v21  ;;  %v2320_v3 = vld [vmem:[%s4204_s16 + $0x2a0] sm:$0xff] }
 0x51a   : >> { %2317 = vst [vmem:[%s4200_s15 + $0x418] sm:$0xff] %v2316_v51  ;;  %2319 = vst [vmem:[%s4200_s15 + $0x420] sm:$0xff] %v2318_v23  ;;  %v2322_v7 = vld [vmem:[%s4204_s16 + $0x2a8] sm:$0xff]  ;;  %v2324_v60 = vld [vmem:[%s4204_s16 + $0x2b0] sm:$0xff] }
 0x51b   : >> { %2321 = vst [vmem:[%s4200_s15 + $0x4b0] sm:$0xff] %v2320_v3  ;;  %2323 = vst [vmem:[%s4200_s15 + $0x4b8] sm:$0xff] %v2322_v7  ;;  %v2326_v17 = vld [vmem:[%s4204_s16 + $0x2b8] sm:$0xff]  ;;  %v2328_v5 = vld [vmem:[%s4204_s16 + $0x2c0] sm:$0xff] }
 0x51c   : >> { %2325 = vst [vmem:[%s4200_s15 + $0x4c0] sm:$0xff] %v2324_v60  ;;  %v2330_v8 = vld [vmem:[%s4204_s16 + $0x2c8] sm:$0xff]  ;;  %2327 = vst [vmem:[%s4200_s15 + $0x4c8] sm:$0xff] %v2326_v17  ;;  %v2332_v18 = vld [vmem:[%s4204_s16 + $0x2d0] sm:$0xff] }
 0x51d   : >> { %2329 = vst [vmem:[%s4200_s15 + $0x4d0] sm:$0xff] %v2328_v5  ;;  %2331 = vst [vmem:[%s4200_s15 + $0x4d8] sm:$0xff] %v2330_v8  ;;  %v2334_v9 = vld [vmem:[%s4204_s16 + $0x2d8] sm:$0xff]  ;;  %v2336_v13 = vld [vmem:[%s4204_s16 + $0x310] sm:$0xff] }
 0x51e   : >> { %2333 = vst [vmem:[%s4200_s15 + $0x4e0] sm:$0xff] %v2332_v18  ;;  %2335 = vst [vmem:[%s4200_s15 + $0x4e8] sm:$0xff] %v2334_v9  ;;  %v2338_v10 = vld [vmem:[%s4204_s16 + $0x318] sm:$0xff]  ;;  %v2340_v27 = vld [vmem:[%s4204_s16 + $0x320] sm:$0xff]  ;;  %2220 = sbr.rel (!%p2217_p12) target bundleno = 1282 (0x502), region = 287 }
 0x51f   : >> { %2337 = vst [vmem:[%s4200_s15 + $0x578] sm:$0xff] %v2336_v13  ;;  %v2342_v35 = vld [vmem:[%s4204_s16 + $0x328] sm:$0xff]  ;;  %2339 = vst [vmem:[%s4200_s15 + $0x580] sm:$0xff] %v2338_v10  ;;  %v2344_v24 = vld [vmem:[%s4204_s16 + $0x330] sm:$0xff] }
 0x520   : >> { %2341 = vst [vmem:[%s4200_s15 + $0x588] sm:$0xff] %v2340_v27  ;;  %2343 = vst [vmem:[%s4200_s15 + $0x590] sm:$0xff] %v2342_v35  ;;  %v2346_v2 = vld [vmem:[%s4204_s16 + $0x338] sm:$0xff]  ;;  %v2348_v33 = vld [vmem:[%s4204_s16 + $0x340] sm:$0xff] }
 0x521   : >> { %2345 = vst [vmem:[%s4200_s15 + $0x598] sm:$0xff] %v2344_v24  ;;  %2347 = vst [vmem:[%s4200_s15 + $0x5a0] sm:$0xff] %v2346_v2  ;;  %v2350_v53 = vld [vmem:[%s4204_s16 + $0x348] sm:$0xff]  ;;  %s6702_s16 = smov %s6090_s28 }
 0x522   : >> { %2349 = vst [vmem:[%s4200_s15 + $0x5a8] sm:$0xff] %v2348_v33  ;;  %2351 = vst [vmem:[%s4200_s15 + $0x5b0] sm:$0xff] %v2350_v53  ;;  %s6701_s15 = smov %s6093_s29 }
 0x523 PF: > { %s6198_s30 = sand.u32 7, %s6727_s7   ;;  %s3793_s8 = sshll.u32 %s6023_s14, 6 }
 0x524   : > { %s6202_s10 = scalar_lea.vmem %s4605_s18, %s3793_s8 [#allocation2]   ;;  %s6205_s11 = scalar_lea.vmem %s6017_s12, %s3793_s8  }
 0x525   : > { %p3761_p13 = scmp.le.s32.totalorder %s6198_s30, 0 }
 0x526   : > { %s6704_s13 = smov (!%p3761_p13), %s6205_s11  ;;  %s6705_s15 = smov (!%p3761_p13), %s6202_s10 }
 0x527   : > { %3334 = sbr.rel (%p3761_p13) target bundleno = 1332 (0x534), region = 292  ;;  %s6214_s16 = smov (!%p3761_p13), 0  }
 0x528   : > { %s6216_s17 = smov (!%p3761_p13), 0  }
 0x52c LB: >> { %v2375_v40 = vld [vmem:[%s4220_s15] sm:$0xff]  ;;  %v2377_v56 = vld [vmem:[%s4220_s15 + $0x70] sm:$0xff]  ;;  %s2391_s18 = sadd.s32 1, %s4224_s16  ;;  %s2369_s17 = sadd.s32 1, %s4228_s17   ;;  %s4228_s17 = sphi %s6216_s17, %s2369_s17   ;;  %s4224_s16 = sphi %s6214_s16, %s6706_s16   ;;  %s4220_s15 = sphi %s6705_s15, %s2396_s15   ;;  %s4216_s13 = sphi %s6704_s13, %s2397_s13  }
 0x52d   : >> { %v2379_v62 = vld [vmem:[%s4220_s15 + $0xe0] sm:$0xff]  ;;  %2376 = vst [vmem:[%s4216_s13] sm:$0xff] %v2375_v40  ;;  %2378 = vst [vmem:[%s4216_s13 + $0xc8] sm:$0xff] %v2377_v56  ;;  %v2381_v36 = vld [vmem:[%s4220_s15 + $0x150] sm:$0xff]  ;;  %p2392_p0 = scmp.ge.s32.totalorder %s2391_s18, %s6198_s30  ;;  %p2368_p1 = scmp.ge.s32.totalorder %s2369_s17, %s6198_s30 }
 0x52e   : >> { %2380 = vst [vmem:[%s4216_s13 + $0x190] sm:$0xff] %v2379_v62  ;;  %v2383_v19 = vld [vmem:[%s4220_s15 + $0x1c0] sm:$0xff]  ;;  %v2385_v6 = vld [vmem:[%s4220_s15 + $0x230] sm:$0xff]  ;;  %2382 = vst [vmem:[%s4216_s13 + $0x258] sm:$0xff] %v2381_v36 }
 0x52f   : >> { %2384 = vst [vmem:[%s4216_s13 + $0x320] sm:$0xff] %v2383_v19  ;;  %2386 = vst [vmem:[%s4216_s13 + $0x3e8] sm:$0xff] %v2385_v6  ;;  %v2387_v29 = vld [vmem:[%s4220_s15 + $0x2a0] sm:$0xff]  ;;  %v2389_v11 = vld [vmem:[%s4220_s15 + $0x310] sm:$0xff]  ;;  %s6731_s18 = smov (%p2392_p0, %s2391_s18), 0  ;;  %2371 = sbr.rel (!%p2368_p1) target bundleno = 1324 (0x52c), region = 298 }
 0x530   : >> { %2388 = vst [vmem:[%s4216_s13 + $0x4b0] sm:$0xff] %v2387_v29  ;;  %2390 = vst [vmem:[%s4216_s13 + $0x578] sm:$0xff] %v2389_v11  ;;  %s3762_s7 = sshll.u32 %s6731_s18, 3  ;;  %s6706_s16 = smov %s6731_s18 }
 0x531   : >> { %s2396_s15 = scalar_lea.vmem %s6202_s10, %s3762_s7 [#allocation2]   ;;  %s2397_s13 = scalar_lea.vmem %s6205_s11, %s3762_s7  }
 0x534 PF: > { %2403 = sbr.rel (!%p4365_p4) target bundleno = 1401 (0x579), region = 88  ;;  %s2405_s12 = ssub.s32 (%p4365_p4), 25, %s4370_s27 }
 0x535   : > { %s3795_s14 = smul.u32 (%p4365_p4), 112, %s4353_s21  ;;  %p2406_p2 = scmp.lt.s32.totalorder (%p4365_p4), %s2405_s12, 14 }
 0x537   : > { %s6241_s24 = scalar_lea.vmem (%p4365_p4), %s6696_s4, %s3795_s14  }
 0x539   : > { %s6733_s12 = smov (!%p2406_p2, %s2405_s12), 14 }
 0x53a   : > { %s3764_s28 = sshll.u32 %s6733_s12, 10 }
 0x53b   : > { %p3767_p3 = scmp.eq.s32.totalorder %s3764_s28, 0 }
 0x53c   : > { %s6247_s29 = sshrl.u32 (!%p3767_p3), %s6733_s12, 3 }
 0x53d   : > { %2414 = sbr.rel (%p3767_p3) target bundleno = 1401 (0x579), region = 92  ;;  %p3768_p5 = scmp.le.s32.totalorder (!%p3767_p3), %s6247_s29, 0 }
 0x542   : > { %3348 = sbr.rel (%p3768_p5) target bundleno = 1384 (0x568), region = 303  ;;  %s6707_s30 = smov (!%p3768_p5), %s6241_s24 }
 0x543   : > { %s6708_s8 = smov (!%p3768_p5), %s4934_s6  ;;  %s6256_s10 = smov (!%p3768_p5), 0  }
 0x544   : > { %s6258_s11 = smov (!%p3768_p5), 0  }
 0x547 LB: >> { %v2617_v47 = vld [vmem:[%s4236_s8] sm:$0xff]  ;;  %v2619_v12 = vld [vmem:[%s4236_s8 + $0x8] sm:$0xff]  ;;  %v2621_v25 = vld [vmem:[%s4236_s8 + $0x10] sm:$0xff]  ;;  %s2745_s13 = sadd.s32 1, %s4240_s10  ;;  %s2611_s11 = sadd.s32 1, %s4244_s11   ;;  %s4244_s11 = sphi %s6258_s11, %s2611_s11   ;;  %s4240_s10 = sphi %s6256_s10, %s6711_s10   ;;  %s4236_s8 = sphi %s6708_s8, %s6710_s8   ;;  %s4232_s30 = sphi %s6707_s30, %s6709_s30  }
 0x548   : >> { %2618 = vst [vmem:[%s4232_s30] sm:$0xff] %v2617_v47  ;;  %2620 = vst [vmem:[%s4232_s30 + $0x8] sm:$0xff] %v2619_v12  ;;  %v2623_v14 = vld [vmem:[%s4236_s8 + $0x18] sm:$0xff]  ;;  %v2625_v57 = vld [vmem:[%s4236_s8 + $0x20] sm:$0xff]  ;;  %p2746_p6 = scmp.ge.s32.totalorder %s2745_s13, %s6247_s29  ;;  %p2610_p7 = scmp.ge.s32.totalorder %s2611_s11, %s6247_s29 }
 0x549   : >> { %2622 = vst [vmem:[%s4232_s30 + $0x10] sm:$0xff] %v2621_v25  ;;  %v2627_v15 = vld [vmem:[%s4236_s8 + $0x28] sm:$0xff]  ;;  %2624 = vst [vmem:[%s4232_s30 + $0x18] sm:$0xff] %v2623_v14  ;;  %v2629_v50 = vld [vmem:[%s4236_s8 + $0x30] sm:$0xff] }
 0x54a   : >> { %2626 = vst [vmem:[%s4232_s30 + $0x20] sm:$0xff] %v2625_v57  ;;  %2628 = vst [vmem:[%s4232_s30 + $0x28] sm:$0xff] %v2627_v15  ;;  %v2631_v43 = vld [vmem:[%s4236_s8 + $0x38] sm:$0xff]  ;;  %v2633_v16 = vld [vmem:[%s4236_s8 + $0x70] sm:$0xff]  ;;  %s6735_s13 = smov (%p2746_p6, %s2745_s13), 0 }
 0x54b   : >> { %2630 = vst [vmem:[%s4232_s30 + $0x30] sm:$0xff] %v2629_v50  ;;  %2632 = vst [vmem:[%s4232_s30 + $0x38] sm:$0xff] %v2631_v43  ;;  %v2635_v22 = vld [vmem:[%s4236_s8 + $0x78] sm:$0xff]  ;;  %v2637_v4 = vld [vmem:[%s4236_s8 + $0x80] sm:$0xff]  ;;  %s3769_s15 = sshll.u32 %s6735_s13, 6  ;;  %s6711_s10 = smov %s6735_s13 }
 0x54c   : >> { %2634 = vst [vmem:[%s4232_s30 + $0xc8] sm:$0xff] %v2633_v16  ;;  %v2639_v26 = vld [vmem:[%s4236_s8 + $0x88] sm:$0xff]  ;;  %2636 = vst [vmem:[%s4232_s30 + $0xd0] sm:$0xff] %v2635_v22  ;;  %v2641_v20 = vld [vmem:[%s4236_s8 + $0x90] sm:$0xff]  ;;  %s6314_s16 = scalar_lea.vmem %s4934_s6, %s3769_s15 [#allocation3]   ;;  %s6317_s17 = scalar_lea.vmem %s6241_s24, %s3769_s15  }
 0x54d   : >> { %2638 = vst [vmem:[%s4232_s30 + $0xd8] sm:$0xff] %v2637_v4  ;;  %2640 = vst [vmem:[%s4232_s30 + $0xe0] sm:$0xff] %v2639_v26  ;;  %v2643_v28 = vld [vmem:[%s4236_s8 + $0x98] sm:$0xff]  ;;  %v2645_v34 = vld [vmem:[%s4236_s8 + $0xa0] sm:$0xff] }
 0x54e   : >> { %2642 = vst [vmem:[%s4232_s30 + $0xe8] sm:$0xff] %v2641_v20  ;;  %2644 = vst [vmem:[%s4232_s30 + $0xf0] sm:$0xff] %v2643_v28  ;;  %v2647_v30 = vld [vmem:[%s4236_s8 + $0xa8] sm:$0xff]  ;;  %v2649_v31 = vld [vmem:[%s4236_s8 + $0xe0] sm:$0xff] }
 0x54f   : >> { %2646 = vst [vmem:[%s4232_s30 + $0xf8] sm:$0xff] %v2645_v34  ;;  %v2651_v37 = vld [vmem:[%s4236_s8 + $0xe8] sm:$0xff]  ;;  %2648 = vst [vmem:[%s4232_s30 + $0x100] sm:$0xff] %v2647_v30  ;;  %v2653_v38 = vld [vmem:[%s4236_s8 + $0xf0] sm:$0xff] }
 0x550   : >> { %2650 = vst [vmem:[%s4232_s30 + $0x190] sm:$0xff] %v2649_v31  ;;  %2652 = vst [vmem:[%s4232_s30 + $0x198] sm:$0xff] %v2651_v37  ;;  %v2655_v39 = vld [vmem:[%s4236_s8 + $0xf8] sm:$0xff]  ;;  %v2657_v42 = vld [vmem:[%s4236_s8 + $0x100] sm:$0xff] }
 0x551   : >> { %2654 = vst [vmem:[%s4232_s30 + $0x1a0] sm:$0xff] %v2653_v38  ;;  %2656 = vst [vmem:[%s4232_s30 + $0x1a8] sm:$0xff] %v2655_v39  ;;  %v2659_v32 = vld [vmem:[%s4236_s8 + $0x108] sm:$0xff]  ;;  %v2661_v44 = vld [vmem:[%s4236_s8 + $0x110] sm:$0xff] }
 0x552   : >> { %2658 = vst [vmem:[%s4232_s30 + $0x1b0] sm:$0xff] %v2657_v42  ;;  %v2663_v45 = vld [vmem:[%s4236_s8 + $0x118] sm:$0xff]  ;;  %2660 = vst [vmem:[%s4232_s30 + $0x1b8] sm:$0xff] %v2659_v32  ;;  %v2665_v0 = vld [vmem:[%s4236_s8 + $0x150] sm:$0xff] }
 0x553   : >> { %2662 = vst [vmem:[%s4232_s30 + $0x1c0] sm:$0xff] %v2661_v44  ;;  %2664 = vst [vmem:[%s4232_s30 + $0x1c8] sm:$0xff] %v2663_v45  ;;  %v2667_v46 = vld [vmem:[%s4236_s8 + $0x158] sm:$0xff]  ;;  %v2669_v48 = vld [vmem:[%s4236_s8 + $0x160] sm:$0xff] }
 0x554   : >> { %2666 = vst [vmem:[%s4232_s30 + $0x258] sm:$0xff] %v2665_v0  ;;  %2668 = vst [vmem:[%s4232_s30 + $0x260] sm:$0xff] %v2667_v46  ;;  %v2671_v49 = vld [vmem:[%s4236_s8 + $0x168] sm:$0xff]  ;;  %v2673_v59 = vld [vmem:[%s4236_s8 + $0x170] sm:$0xff] }
 0x555   : >> { %2670 = vst [vmem:[%s4232_s30 + $0x268] sm:$0xff] %v2669_v48  ;;  %v2675_v54 = vld [vmem:[%s4236_s8 + $0x178] sm:$0xff]  ;;  %2672 = vst [vmem:[%s4232_s30 + $0x270] sm:$0xff] %v2671_v49  ;;  %v2677_v55 = vld [vmem:[%s4236_s8 + $0x180] sm:$0xff] }
 0x556   : >> { %2674 = vst [vmem:[%s4232_s30 + $0x278] sm:$0xff] %v2673_v59  ;;  %2676 = vst [vmem:[%s4232_s30 + $0x280] sm:$0xff] %v2675_v54  ;;  %v2679_v58 = vld [vmem:[%s4236_s8 + $0x188] sm:$0xff]  ;;  %v2681_v52 = vld [vmem:[%s4236_s8 + $0x1c0] sm:$0xff] }
 0x557   : >> { %2678 = vst [vmem:[%s4232_s30 + $0x288] sm:$0xff] %v2677_v55  ;;  %2680 = vst [vmem:[%s4232_s30 + $0x290] sm:$0xff] %v2679_v58  ;;  %v2683_v41 = vld [vmem:[%s4236_s8 + $0x1c8] sm:$0xff]  ;;  %v2685_v63 = vld [vmem:[%s4236_s8 + $0x1d0] sm:$0xff] }
 0x558   : >> { %2682 = vst [vmem:[%s4232_s30 + $0x320] sm:$0xff] %v2681_v52  ;;  %v2687_v1 = vld [vmem:[%s4236_s8 + $0x1d8] sm:$0xff]  ;;  %2684 = vst [vmem:[%s4232_s30 + $0x328] sm:$0xff] %v2683_v41  ;;  %v2689_v61 = vld [vmem:[%s4236_s8 + $0x1e0] sm:$0xff] }
 0x559   : >> { %2686 = vst [vmem:[%s4232_s30 + $0x330] sm:$0xff] %v2685_v63  ;;  %2688 = vst [vmem:[%s4232_s30 + $0x338] sm:$0xff] %v2687_v1  ;;  %v2691_v21 = vld [vmem:[%s4236_s8 + $0x1e8] sm:$0xff]  ;;  %v2693_v51 = vld [vmem:[%s4236_s8 + $0x1f0] sm:$0xff] }
 0x55a   : >> { %2690 = vst [vmem:[%s4232_s30 + $0x340] sm:$0xff] %v2689_v61  ;;  %2692 = vst [vmem:[%s4232_s30 + $0x348] sm:$0xff] %v2691_v21  ;;  %v2695_v23 = vld [vmem:[%s4236_s8 + $0x1f8] sm:$0xff]  ;;  %v2697_v3 = vld [vmem:[%s4236_s8 + $0x230] sm:$0xff] }
 0x55b   : >> { %2694 = vst [vmem:[%s4232_s30 + $0x350] sm:$0xff] %v2693_v51  ;;  %v2699_v7 = vld [vmem:[%s4236_s8 + $0x238] sm:$0xff]  ;;  %2696 = vst [vmem:[%s4232_s30 + $0x358] sm:$0xff] %v2695_v23  ;;  %v2701_v60 = vld [vmem:[%s4236_s8 + $0x240] sm:$0xff] }
 0x55c   : >> { %2698 = vst [vmem:[%s4232_s30 + $0x3e8] sm:$0xff] %v2697_v3  ;;  %2700 = vst [vmem:[%s4232_s30 + $0x3f0] sm:$0xff] %v2699_v7  ;;  %v2703_v17 = vld [vmem:[%s4236_s8 + $0x248] sm:$0xff]  ;;  %v2705_v5 = vld [vmem:[%s4236_s8 + $0x250] sm:$0xff] }
 0x55d   : >> { %2702 = vst [vmem:[%s4232_s30 + $0x3f8] sm:$0xff] %v2701_v60  ;;  %2704 = vst [vmem:[%s4232_s30 + $0x400] sm:$0xff] %v2703_v17  ;;  %v2707_v8 = vld [vmem:[%s4236_s8 + $0x258] sm:$0xff]  ;;  %v2709_v18 = vld [vmem:[%s4236_s8 + $0x260] sm:$0xff] }
 0x55e   : >> { %2706 = vst [vmem:[%s4232_s30 + $0x408] sm:$0xff] %v2705_v5  ;;  %v2711_v9 = vld [vmem:[%s4236_s8 + $0x268] sm:$0xff]  ;;  %2708 = vst [vmem:[%s4232_s30 + $0x410] sm:$0xff] %v2707_v8  ;;  %v2713_v13 = vld [vmem:[%s4236_s8 + $0x2a0] sm:$0xff] }
 0x55f   : >> { %2710 = vst [vmem:[%s4232_s30 + $0x418] sm:$0xff] %v2709_v18  ;;  %2712 = vst [vmem:[%s4232_s30 + $0x420] sm:$0xff] %v2711_v9  ;;  %v2715_v10 = vld [vmem:[%s4236_s8 + $0x2a8] sm:$0xff]  ;;  %v2717_v27 = vld [vmem:[%s4236_s8 + $0x2b0] sm:$0xff] }
 0x560   : >> { %2714 = vst [vmem:[%s4232_s30 + $0x4b0] sm:$0xff] %v2713_v13  ;;  %2716 = vst [vmem:[%s4232_s30 + $0x4b8] sm:$0xff] %v2715_v10  ;;  %v2719_v35 = vld [vmem:[%s4236_s8 + $0x2b8] sm:$0xff]  ;;  %v2721_v24 = vld [vmem:[%s4236_s8 + $0x2c0] sm:$0xff] }
 0x561   : >> { %2718 = vst [vmem:[%s4232_s30 + $0x4c0] sm:$0xff] %v2717_v27  ;;  %v2723_v2 = vld [vmem:[%s4236_s8 + $0x2c8] sm:$0xff]  ;;  %2720 = vst [vmem:[%s4232_s30 + $0x4c8] sm:$0xff] %v2719_v35  ;;  %v2725_v33 = vld [vmem:[%s4236_s8 + $0x2d0] sm:$0xff] }
 0x562   : >> { %2722 = vst [vmem:[%s4232_s30 + $0x4d0] sm:$0xff] %v2721_v24  ;;  %2724 = vst [vmem:[%s4232_s30 + $0x4d8] sm:$0xff] %v2723_v2  ;;  %v2727_v53 = vld [vmem:[%s4236_s8 + $0x2d8] sm:$0xff]  ;;  %v2729_v40 = vld [vmem:[%s4236_s8 + $0x310] sm:$0xff] }
 0x563   : >> { %2726 = vst [vmem:[%s4232_s30 + $0x4e0] sm:$0xff] %v2725_v33  ;;  %2728 = vst [vmem:[%s4232_s30 + $0x4e8] sm:$0xff] %v2727_v53  ;;  %v2731_v56 = vld [vmem:[%s4236_s8 + $0x318] sm:$0xff]  ;;  %v2733_v62 = vld [vmem:[%s4236_s8 + $0x320] sm:$0xff]  ;;  %2613 = sbr.rel (!%p2610_p7) target bundleno = 1351 (0x547), region = 309 }
 0x564   : >> { %2730 = vst [vmem:[%s4232_s30 + $0x578] sm:$0xff] %v2729_v40  ;;  %v2735_v36 = vld [vmem:[%s4236_s8 + $0x328] sm:$0xff]  ;;  %2732 = vst [vmem:[%s4232_s30 + $0x580] sm:$0xff] %v2731_v56  ;;  %v2737_v19 = vld [vmem:[%s4236_s8 + $0x330] sm:$0xff] }
 0x565   : >> { %2734 = vst [vmem:[%s4232_s30 + $0x588] sm:$0xff] %v2733_v62  ;;  %2736 = vst [vmem:[%s4232_s30 + $0x590] sm:$0xff] %v2735_v36  ;;  %v2739_v6 = vld [vmem:[%s4236_s8 + $0x338] sm:$0xff]  ;;  %v2741_v29 = vld [vmem:[%s4236_s8 + $0x340] sm:$0xff] }
 0x566   : >> { %2738 = vst [vmem:[%s4232_s30 + $0x598] sm:$0xff] %v2737_v19  ;;  %2740 = vst [vmem:[%s4232_s30 + $0x5a0] sm:$0xff] %v2739_v6  ;;  %v2743_v11 = vld [vmem:[%s4236_s8 + $0x348] sm:$0xff]  ;;  %s6710_s8 = smov %s6314_s16 }
 0x567   : >> { %2742 = vst [vmem:[%s4232_s30 + $0x5a8] sm:$0xff] %v2741_v29  ;;  %2744 = vst [vmem:[%s4232_s30 + $0x5b0] sm:$0xff] %v2743_v11  ;;  %s6709_s30 = smov %s6317_s17 }
 0x568 PF: > { %s6422_s18 = sand.u32 7, %s6733_s12   ;;  %s3796_s7 = sshll.u32 %s6247_s29, 6 }
 0x569   : > { %s6426_s14 = scalar_lea.vmem %s4934_s6, %s3796_s7 [#allocation3]   ;;  %s6429_s20 = scalar_lea.vmem %s6241_s24, %s3796_s7  }
 0x56a   : > { %p3774_p8 = scmp.le.s32.totalorder %s6422_s18, 0 }
 0x56b   : > { %s6712_s23 = smov (!%p3774_p8), %s6429_s20  ;;  %s6713_s28 = smov (!%p3774_p8), %s6426_s14 }
 0x56c   : > { %3362 = sbr.rel (%p3774_p8) target bundleno = 1401 (0x579), region = 314  ;;  %s6438_s30 = smov (!%p3774_p8), 0  }
 0x56d   : > { %s6440_s8 = smov (!%p3774_p8), 0  }
 0x571 LB: >> { %v2768_v47 = vld [vmem:[%s4252_s28] sm:$0xff]  ;;  %v2770_v12 = vld [vmem:[%s4252_s28 + $0x70] sm:$0xff]  ;;  %s2784_s6 = sadd.s32 1, %s4256_s30  ;;  %s2762_s8 = sadd.s32 1, %s4260_s8   ;;  %s4260_s8 = sphi %s6440_s8, %s2762_s8   ;;  %s4256_s30 = sphi %s6438_s30, %s6714_s30   ;;  %s4252_s28 = sphi %s6713_s28, %s2789_s28   ;;  %s4248_s23 = sphi %s6712_s23, %s2790_s23  }
 0x572   : >> { %v2772_v25 = vld [vmem:[%s4252_s28 + $0xe0] sm:$0xff]  ;;  %2769 = vst [vmem:[%s4248_s23] sm:$0xff] %v2768_v47  ;;  %2771 = vst [vmem:[%s4248_s23 + $0xc8] sm:$0xff] %v2770_v12  ;;  %v2774_v14 = vld [vmem:[%s4252_s28 + $0x150] sm:$0xff]  ;;  %p2785_p9 = scmp.ge.s32.totalorder %s2784_s6, %s6422_s18  ;;  %p2761_p10 = scmp.ge.s32.totalorder %s2762_s8, %s6422_s18 }
 0x573   : >> { %2773 = vst [vmem:[%s4248_s23 + $0x190] sm:$0xff] %v2772_v25  ;;  %v2776_v57 = vld [vmem:[%s4252_s28 + $0x1c0] sm:$0xff]  ;;  %v2778_v15 = vld [vmem:[%s4252_s28 + $0x230] sm:$0xff]  ;;  %2775 = vst [vmem:[%s4248_s23 + $0x258] sm:$0xff] %v2774_v14 }
 0x574   : >> { %2777 = vst [vmem:[%s4248_s23 + $0x320] sm:$0xff] %v2776_v57  ;;  %2779 = vst [vmem:[%s4248_s23 + $0x3e8] sm:$0xff] %v2778_v15  ;;  %v2780_v50 = vld [vmem:[%s4252_s28 + $0x2a0] sm:$0xff]  ;;  %v2782_v43 = vld [vmem:[%s4252_s28 + $0x310] sm:$0xff]  ;;  %s6737_s6 = smov (%p2785_p9, %s2784_s6), 0  ;;  %2764 = sbr.rel (!%p2761_p10) target bundleno = 1393 (0x571), region = 320 }
 0x575   : >> { %2781 = vst [vmem:[%s4248_s23 + $0x4b0] sm:$0xff] %v2780_v50  ;;  %2783 = vst [vmem:[%s4248_s23 + $0x578] sm:$0xff] %v2782_v43  ;;  %s3775_s12 = sshll.u32 %s6737_s6, 3  ;;  %s6714_s30 = smov %s6737_s6 }
 0x576   : >> { %s2789_s28 = scalar_lea.vmem %s6426_s14, %s3775_s12 [#allocation3]   ;;  %s2790_s23 = scalar_lea.vmem %s6429_s20, %s3775_s12  }
 0x579 PF: > { %2796 = sbr.rel (!%p4365_p4) target bundleno = 1470 (0x5be), region = 140  ;;  %s2798_s24 = ssub.s32 (%p4365_p4), 25, %s4370_s27 }
 0x57a   : > { %s3798_s29 = smul.u32 (%p4365_p4), 112, %s4353_s21  ;;  %p2799_p11 = scmp.lt.s32.totalorder (%p4365_p4), %s2798_s24, 14 }
 0x57c   : > { %s6465_s13 = scalar_lea.vmem (%p4365_p4), %s6697_s5, %s3798_s29  }
 0x57e   : > { %s6739_s24 = smov (!%p2799_p11, %s2798_s24), 14 }
 0x57f   : > { %s3777_s15 = sshll.u32 %s6739_s24, 10 }
 0x580   : > { %p3780_p12 = scmp.eq.s32.totalorder %s3777_s15, 0 }
 0x581   : > { %s6471_s16 = sshrl.u32 (!%p3780_p12), %s6739_s24, 3 }
 0x582   : > { %2807 = sbr.rel (%p3780_p12) target bundleno = 1470 (0x5be), region = 144  ;;  %p3781_p4 = scmp.le.s32.totalorder (!%p3780_p12), %s6471_s16, 0 }
 0x587   : > { %3376 = sbr.rel (%p3781_p4) target bundleno = 1453 (0x5ad), region = 325  ;;  %s6715_s21 = smov (!%p3781_p4), %s6465_s13 }
 0x588   : > { %s6716_s26 = smov (!%p3781_p4), %s4616_s9  ;;  %s6480_s27 = smov (!%p3781_p4), 0  }
 0x589   : > { %s6482_s17 = smov (!%p3781_p4), 0  }
 0x58c LB: >> { %v3010_v16 = vld [vmem:[%s4268_s26] sm:$0xff]  ;;  %v3012_v22 = vld [vmem:[%s4268_s26 + $0x8] sm:$0xff]  ;;  %v3014_v4 = vld [vmem:[%s4268_s26 + $0x10] sm:$0xff]  ;;  %s3138_s18 = sadd.s32 1, %s4272_s27  ;;  %s3004_s17 = sadd.s32 1, %s4276_s17   ;;  %s4276_s17 = sphi %s6482_s17, %s3004_s17   ;;  %s4272_s27 = sphi %s6480_s27, %s6719_s27   ;;  %s4268_s26 = sphi %s6716_s26, %s6718_s26   ;;  %s4264_s21 = sphi %s6715_s21, %s6717_s21  }
 0x58d   : >> { %3011 = vst [vmem:[%s4264_s21] sm:$0xff] %v3010_v16  ;;  %3013 = vst [vmem:[%s4264_s21 + $0x8] sm:$0xff] %v3012_v22  ;;  %v3016_v26 = vld [vmem:[%s4268_s26 + $0x18] sm:$0xff]  ;;  %v3018_v20 = vld [vmem:[%s4268_s26 + $0x20] sm:$0xff]  ;;  %p3139_p13 = scmp.ge.s32.totalorder %s3138_s18, %s6471_s16  ;;  %p3003_p0 = scmp.ge.s32.totalorder %s3004_s17, %s6471_s16 }
 0x58e   : >> { %3015 = vst [vmem:[%s4264_s21 + $0x10] sm:$0xff] %v3014_v4  ;;  %v3020_v28 = vld [vmem:[%s4268_s26 + $0x28] sm:$0xff]  ;;  %3017 = vst [vmem:[%s4264_s21 + $0x18] sm:$0xff] %v3016_v26  ;;  %v3022_v34 = vld [vmem:[%s4268_s26 + $0x30] sm:$0xff] }
 0x58f   : >> { %3019 = vst [vmem:[%s4264_s21 + $0x20] sm:$0xff] %v3018_v20  ;;  %3021 = vst [vmem:[%s4264_s21 + $0x28] sm:$0xff] %v3020_v28  ;;  %v3024_v30 = vld [vmem:[%s4268_s26 + $0x38] sm:$0xff]  ;;  %v3026_v31 = vld [vmem:[%s4268_s26 + $0x70] sm:$0xff]  ;;  %s6741_s18 = smov (%p3139_p13, %s3138_s18), 0 }
 0x590   : >> { %3023 = vst [vmem:[%s4264_s21 + $0x30] sm:$0xff] %v3022_v34  ;;  %3025 = vst [vmem:[%s4264_s21 + $0x38] sm:$0xff] %v3024_v30  ;;  %v3028_v37 = vld [vmem:[%s4268_s26 + $0x78] sm:$0xff]  ;;  %v3030_v38 = vld [vmem:[%s4268_s26 + $0x80] sm:$0xff]  ;;  %s3782_s7 = sshll.u32 %s6741_s18, 6  ;;  %s6719_s27 = smov %s6741_s18 }
 0x591   : >> { %3027 = vst [vmem:[%s4264_s21 + $0xc8] sm:$0xff] %v3026_v31  ;;  %v3032_v39 = vld [vmem:[%s4268_s26 + $0x88] sm:$0xff]  ;;  %3029 = vst [vmem:[%s4264_s21 + $0xd0] sm:$0xff] %v3028_v37  ;;  %v3034_v42 = vld [vmem:[%s4268_s26 + $0x90] sm:$0xff]  ;;  %s6538_s14 = scalar_lea.vmem %s4616_s9, %s3782_s7 [#allocation4]   ;;  %s6541_s20 = scalar_lea.vmem %s6465_s13, %s3782_s7  }
 0x592   : >> { %3031 = vst [vmem:[%s4264_s21 + $0xd8] sm:$0xff] %v3030_v38  ;;  %3033 = vst [vmem:[%s4264_s21 + $0xe0] sm:$0xff] %v3032_v39  ;;  %v3036_v32 = vld [vmem:[%s4268_s26 + $0x98] sm:$0xff]  ;;  %v3038_v44 = vld [vmem:[%s4268_s26 + $0xa0] sm:$0xff] }
 0x593   : >> { %3035 = vst [vmem:[%s4264_s21 + $0xe8] sm:$0xff] %v3034_v42  ;;  %3037 = vst [vmem:[%s4264_s21 + $0xf0] sm:$0xff] %v3036_v32  ;;  %v3040_v45 = vld [vmem:[%s4268_s26 + $0xa8] sm:$0xff]  ;;  %v3042_v0 = vld [vmem:[%s4268_s26 + $0xe0] sm:$0xff] }
 0x594   : >> { %3039 = vst [vmem:[%s4264_s21 + $0xf8] sm:$0xff] %v3038_v44  ;;  %v3044_v46 = vld [vmem:[%s4268_s26 + $0xe8] sm:$0xff]  ;;  %3041 = vst [vmem:[%s4264_s21 + $0x100] sm:$0xff] %v3040_v45  ;;  %v3046_v48 = vld [vmem:[%s4268_s26 + $0xf0] sm:$0xff] }
 0x595   : >> { %3043 = vst [vmem:[%s4264_s21 + $0x190] sm:$0xff] %v3042_v0  ;;  %3045 = vst [vmem:[%s4264_s21 + $0x198] sm:$0xff] %v3044_v46  ;;  %v3048_v49 = vld [vmem:[%s4268_s26 + $0xf8] sm:$0xff]  ;;  %v3050_v59 = vld [vmem:[%s4268_s26 + $0x100] sm:$0xff] }
 0x596   : >> { %3047 = vst [vmem:[%s4264_s21 + $0x1a0] sm:$0xff] %v3046_v48  ;;  %3049 = vst [vmem:[%s4264_s21 + $0x1a8] sm:$0xff] %v3048_v49  ;;  %v3052_v54 = vld [vmem:[%s4268_s26 + $0x108] sm:$0xff]  ;;  %v3054_v55 = vld [vmem:[%s4268_s26 + $0x110] sm:$0xff] }
 0x597   : >> { %3051 = vst [vmem:[%s4264_s21 + $0x1b0] sm:$0xff] %v3050_v59  ;;  %v3056_v58 = vld [vmem:[%s4268_s26 + $0x118] sm:$0xff]  ;;  %3053 = vst [vmem:[%s4264_s21 + $0x1b8] sm:$0xff] %v3052_v54  ;;  %v3058_v52 = vld [vmem:[%s4268_s26 + $0x150] sm:$0xff] }
 0x598   : >> { %3055 = vst [vmem:[%s4264_s21 + $0x1c0] sm:$0xff] %v3054_v55  ;;  %3057 = vst [vmem:[%s4264_s21 + $0x1c8] sm:$0xff] %v3056_v58  ;;  %v3060_v41 = vld [vmem:[%s4268_s26 + $0x158] sm:$0xff]  ;;  %v3062_v63 = vld [vmem:[%s4268_s26 + $0x160] sm:$0xff] }
 0x599   : >> { %3059 = vst [vmem:[%s4264_s21 + $0x258] sm:$0xff] %v3058_v52  ;;  %3061 = vst [vmem:[%s4264_s21 + $0x260] sm:$0xff] %v3060_v41  ;;  %v3064_v1 = vld [vmem:[%s4268_s26 + $0x168] sm:$0xff]  ;;  %v3066_v61 = vld [vmem:[%s4268_s26 + $0x170] sm:$0xff] }
 0x59a   : >> { %3063 = vst [vmem:[%s4264_s21 + $0x268] sm:$0xff] %v3062_v63  ;;  %v3068_v21 = vld [vmem:[%s4268_s26 + $0x178] sm:$0xff]  ;;  %3065 = vst [vmem:[%s4264_s21 + $0x270] sm:$0xff] %v3064_v1  ;;  %v3070_v51 = vld [vmem:[%s4268_s26 + $0x180] sm:$0xff] }
 0x59b   : >> { %3067 = vst [vmem:[%s4264_s21 + $0x278] sm:$0xff] %v3066_v61  ;;  %3069 = vst [vmem:[%s4264_s21 + $0x280] sm:$0xff] %v3068_v21  ;;  %v3072_v23 = vld [vmem:[%s4268_s26 + $0x188] sm:$0xff]  ;;  %v3074_v3 = vld [vmem:[%s4268_s26 + $0x1c0] sm:$0xff] }
 0x59c   : >> { %3071 = vst [vmem:[%s4264_s21 + $0x288] sm:$0xff] %v3070_v51  ;;  %3073 = vst [vmem:[%s4264_s21 + $0x290] sm:$0xff] %v3072_v23  ;;  %v3076_v7 = vld [vmem:[%s4268_s26 + $0x1c8] sm:$0xff]  ;;  %v3078_v60 = vld [vmem:[%s4268_s26 + $0x1d0] sm:$0xff] }
 0x59d   : >> { %3075 = vst [vmem:[%s4264_s21 + $0x320] sm:$0xff] %v3074_v3  ;;  %v3080_v17 = vld [vmem:[%s4268_s26 + $0x1d8] sm:$0xff]  ;;  %3077 = vst [vmem:[%s4264_s21 + $0x328] sm:$0xff] %v3076_v7  ;;  %v3082_v5 = vld [vmem:[%s4268_s26 + $0x1e0] sm:$0xff] }
 0x59e   : >> { %3079 = vst [vmem:[%s4264_s21 + $0x330] sm:$0xff] %v3078_v60  ;;  %3081 = vst [vmem:[%s4264_s21 + $0x338] sm:$0xff] %v3080_v17  ;;  %v3084_v8 = vld [vmem:[%s4268_s26 + $0x1e8] sm:$0xff]  ;;  %v3086_v18 = vld [vmem:[%s4268_s26 + $0x1f0] sm:$0xff] }
 0x59f   : >> { %3083 = vst [vmem:[%s4264_s21 + $0x340] sm:$0xff] %v3082_v5  ;;  %3085 = vst [vmem:[%s4264_s21 + $0x348] sm:$0xff] %v3084_v8  ;;  %v3088_v9 = vld [vmem:[%s4268_s26 + $0x1f8] sm:$0xff]  ;;  %v3090_v13 = vld [vmem:[%s4268_s26 + $0x230] sm:$0xff] }
 0x5a0   : >> { %3087 = vst [vmem:[%s4264_s21 + $0x350] sm:$0xff] %v3086_v18  ;;  %v3092_v10 = vld [vmem:[%s4268_s26 + $0x238] sm:$0xff]  ;;  %3089 = vst [vmem:[%s4264_s21 + $0x358] sm:$0xff] %v3088_v9  ;;  %v3094_v27 = vld [vmem:[%s4268_s26 + $0x240] sm:$0xff] }
 0x5a1   : >> { %3091 = vst [vmem:[%s4264_s21 + $0x3e8] sm:$0xff] %v3090_v13  ;;  %3093 = vst [vmem:[%s4264_s21 + $0x3f0] sm:$0xff] %v3092_v10  ;;  %v3096_v35 = vld [vmem:[%s4268_s26 + $0x248] sm:$0xff]  ;;  %v3098_v24 = vld [vmem:[%s4268_s26 + $0x250] sm:$0xff] }
 0x5a2   : >> { %3095 = vst [vmem:[%s4264_s21 + $0x3f8] sm:$0xff] %v3094_v27  ;;  %3097 = vst [vmem:[%s4264_s21 + $0x400] sm:$0xff] %v3096_v35  ;;  %v3100_v2 = vld [vmem:[%s4268_s26 + $0x258] sm:$0xff]  ;;  %v3102_v33 = vld [vmem:[%s4268_s26 + $0x260] sm:$0xff] }
 0x5a3   : >> { %3099 = vst [vmem:[%s4264_s21 + $0x408] sm:$0xff] %v3098_v24  ;;  %v3104_v53 = vld [vmem:[%s4268_s26 + $0x268] sm:$0xff]  ;;  %3101 = vst [vmem:[%s4264_s21 + $0x410] sm:$0xff] %v3100_v2  ;;  %v3106_v40 = vld [vmem:[%s4268_s26 + $0x2a0] sm:$0xff] }
 0x5a4   : >> { %3103 = vst [vmem:[%s4264_s21 + $0x418] sm:$0xff] %v3102_v33  ;;  %3105 = vst [vmem:[%s4264_s21 + $0x420] sm:$0xff] %v3104_v53  ;;  %v3108_v56 = vld [vmem:[%s4268_s26 + $0x2a8] sm:$0xff]  ;;  %v3110_v62 = vld [vmem:[%s4268_s26 + $0x2b0] sm:$0xff] }
 0x5a5   : >> { %3107 = vst [vmem:[%s4264_s21 + $0x4b0] sm:$0xff] %v3106_v40  ;;  %3109 = vst [vmem:[%s4264_s21 + $0x4b8] sm:$0xff] %v3108_v56  ;;  %v3112_v36 = vld [vmem:[%s4268_s26 + $0x2b8] sm:$0xff]  ;;  %v3114_v19 = vld [vmem:[%s4268_s26 + $0x2c0] sm:$0xff] }
 0x5a6   : >> { %3111 = vst [vmem:[%s4264_s21 + $0x4c0] sm:$0xff] %v3110_v62  ;;  %v3116_v6 = vld [vmem:[%s4268_s26 + $0x2c8] sm:$0xff]  ;;  %3113 = vst [vmem:[%s4264_s21 + $0x4c8] sm:$0xff] %v3112_v36  ;;  %v3118_v29 = vld [vmem:[%s4268_s26 + $0x2d0] sm:$0xff] }
 0x5a7   : >> { %3115 = vst [vmem:[%s4264_s21 + $0x4d0] sm:$0xff] %v3114_v19  ;;  %3117 = vst [vmem:[%s4264_s21 + $0x4d8] sm:$0xff] %v3116_v6  ;;  %v3120_v11 = vld [vmem:[%s4268_s26 + $0x2d8] sm:$0xff]  ;;  %v3122_v47 = vld [vmem:[%s4268_s26 + $0x310] sm:$0xff] }
 0x5a8   : >> { %3119 = vst [vmem:[%s4264_s21 + $0x4e0] sm:$0xff] %v3118_v29  ;;  %3121 = vst [vmem:[%s4264_s21 + $0x4e8] sm:$0xff] %v3120_v11  ;;  %v3124_v12 = vld [vmem:[%s4268_s26 + $0x318] sm:$0xff]  ;;  %v3126_v25 = vld [vmem:[%s4268_s26 + $0x320] sm:$0xff]  ;;  %3006 = sbr.rel (!%p3003_p0) target bundleno = 1420 (0x58c), region = 331 }
 0x5a9   : >> { %3123 = vst [vmem:[%s4264_s21 + $0x578] sm:$0xff] %v3122_v47  ;;  %v3128_v14 = vld [vmem:[%s4268_s26 + $0x328] sm:$0xff]  ;;  %3125 = vst [vmem:[%s4264_s21 + $0x580] sm:$0xff] %v3124_v12  ;;  %v3130_v57 = vld [vmem:[%s4268_s26 + $0x330] sm:$0xff] }
 0x5aa   : >> { %3127 = vst [vmem:[%s4264_s21 + $0x588] sm:$0xff] %v3126_v25  ;;  %3129 = vst [vmem:[%s4264_s21 + $0x590] sm:$0xff] %v3128_v14  ;;  %v3132_v15 = vld [vmem:[%s4268_s26 + $0x338] sm:$0xff]  ;;  %v3134_v50 = vld [vmem:[%s4268_s26 + $0x340] sm:$0xff] }
 0x5ab   : >> { %3131 = vst [vmem:[%s4264_s21 + $0x598] sm:$0xff] %v3130_v57  ;;  %3133 = vst [vmem:[%s4264_s21 + $0x5a0] sm:$0xff] %v3132_v15  ;;  %v3136_v43 = vld [vmem:[%s4268_s26 + $0x348] sm:$0xff]  ;;  %s6718_s26 = smov %s6538_s14 }
 0x5ac   : >> { %3135 = vst [vmem:[%s4264_s21 + $0x5a8] sm:$0xff] %v3134_v50  ;;  %3137 = vst [vmem:[%s4264_s21 + $0x5b0] sm:$0xff] %v3136_v43  ;;  %s6717_s21 = smov %s6541_s20 }
 0x5ad PF: > { %s6646_s23 = sand.u32 7, %s6739_s24   ;;  %s3799_s28 = sshll.u32 %s6471_s16, 6 }
 0x5ae   : > { %s6650_s30 = scalar_lea.vmem %s4616_s9, %s3799_s28 [#allocation4]   ;;  %s6653_s8 = scalar_lea.vmem %s6465_s13, %s3799_s28  }
 0x5af   : > { %p3787_p1 = scmp.le.s32.totalorder %s6646_s23, 0 }
 0x5b0   : > { %s6720_s6 = smov (!%p3787_p1), %s6653_s8  ;;  %s6721_s12 = smov (!%p3787_p1), %s6650_s30 }
 0x5b1   : > { %3390 = sbr.rel (%p3787_p1) target bundleno = 1470 (0x5be), region = 336  ;;  %s6662_s29 = smov (!%p3787_p1), 0  }
 0x5b2   : > { %s6664_s10 = smov (!%p3787_p1), 0  }
 0x5b6 LB: >> { %v3161_v16 = vld [vmem:[%s4284_s12] sm:$0xff]  ;;  %v3163_v22 = vld [vmem:[%s4284_s12 + $0x70] sm:$0xff]  ;;  %s3177_s9 = sadd.s32 1, %s4288_s29  ;;  %s3155_s10 = sadd.s32 1, %s4292_s10   ;;  %s4292_s10 = sphi %s6664_s10, %s3155_s10   ;;  %s4288_s29 = sphi %s6662_s29, %s6722_s29   ;;  %s4284_s12 = sphi %s6721_s12, %s3182_s12   ;;  %s4280_s6 = sphi %s6720_s6, %s3183_s6  }
 0x5b7   : >> { %v3165_v4 = vld [vmem:[%s4284_s12 + $0xe0] sm:$0xff]  ;;  %3162 = vst [vmem:[%s4280_s6] sm:$0xff] %v3161_v16  ;;  %3164 = vst [vmem:[%s4280_s6 + $0xc8] sm:$0xff] %v3163_v22  ;;  %v3167_v26 = vld [vmem:[%s4284_s12 + $0x150] sm:$0xff]  ;;  %p3178_p2 = scmp.ge.s32.totalorder %s3177_s9, %s6646_s23  ;;  %p3154_p3 = scmp.ge.s32.totalorder %s3155_s10, %s6646_s23 }
 0x5b8   : >> { %3166 = vst [vmem:[%s4280_s6 + $0x190] sm:$0xff] %v3165_v4  ;;  %v3169_v20 = vld [vmem:[%s4284_s12 + $0x1c0] sm:$0xff]  ;;  %v3171_v28 = vld [vmem:[%s4284_s12 + $0x230] sm:$0xff]  ;;  %3168 = vst [vmem:[%s4280_s6 + $0x258] sm:$0xff] %v3167_v26 }
 0x5b9   : >> { %3170 = vst [vmem:[%s4280_s6 + $0x320] sm:$0xff] %v3169_v20  ;;  %3172 = vst [vmem:[%s4280_s6 + $0x3e8] sm:$0xff] %v3171_v28  ;;  %v3173_v34 = vld [vmem:[%s4284_s12 + $0x2a0] sm:$0xff]  ;;  %v3175_v30 = vld [vmem:[%s4284_s12 + $0x310] sm:$0xff]  ;;  %s6743_s9 = smov (%p3178_p2, %s3177_s9), 0  ;;  %3157 = sbr.rel (!%p3154_p3) target bundleno = 1462 (0x5b6), region = 342 }
 0x5ba   : >> { %3174 = vst [vmem:[%s4280_s6 + $0x4b0] sm:$0xff] %v3173_v34  ;;  %3176 = vst [vmem:[%s4280_s6 + $0x578] sm:$0xff] %v3175_v30  ;;  %s3788_s24 = sshll.u32 %s6743_s9, 3  ;;  %s6722_s29 = smov %s6743_s9 }
 0x5bb   : >> { %s3182_s12 = scalar_lea.vmem %s6650_s30, %s3788_s24 [#allocation4]   ;;  %s3183_s6 = scalar_lea.vmem %s6653_s8, %s3788_s24  }
 0x5be PF: > { %p13_p5 = scmp.ge.s32.totalorder %s4355_s22, 4   ;;  %s6723_s18 = smov %s4192_s19 }
 0x5bf   : > { %s6724_s19 = smov %s4363_s25  ;;  %s6725_s20 = smov %s4355_s22 }
 0x5c0   :  { %15 = sbr.rel (!%p13_p5) target bundleno = 2 (0x2), region = 353 }

</bundles_post_ra>
